<compile_context>
chip_gen: v7x
topology: tpu7x:2x2x1
jax: 0.10.0
libtpu: 0.0.40
codegen_flags: <defaults>
</compile_context>

<pallas_src>
import functools

import numpy as np
import jax
import jax.numpy as jnp
from jax import lax
from jax.experimental import pallas as pl
from jax.experimental.pallas import tpu as pltpu

_LN_EPS = 1e-5

# order of the packed (depth-stacked) parameter arrays passed to the kernel
_PARAM_ORDER = ("ln1_g", "ln1_b", "wqkvT", "pk", "pv", "wo", "bo",
                "ln2_g", "ln2_b", "w1", "b1", "w2", "b2")


def _gelu_tanh(v):
    # TODO(synk): torch nn.GELU() defaults to the exact erf-based GELU; the tanh
    # approximation is used (≈1e-3 rel diff) to avoid depending on erf lowering.
    c = 0.7978845608028654  # sqrt(2/pi)
    return 0.5 * v * (1.0 + jnp.tanh(c * (v + 0.044715 * v * v * v)))


def _layer_norm(v, g, b):
    mu = jnp.mean(v, axis=-1, keepdims=True)
    var = jnp.mean((v - mu) ** 2, axis=-1, keepdims=True)
    return (v - mu) * lax.rsqrt(var + _LN_EPS) * g + b


# ---------------------------------------------------------------------------
# Pallas kernel: whole Linformer stack.  grid = (batch, depth); the residual
# stream for one batch element stays resident in the output VMEM block across
# the depth axis (output BlockSpec index is constant in d).
# ---------------------------------------------------------------------------
def _linformer_stack_kernel(x_ref,
                            ln1_g_ref, ln1_b_ref, wqkvT_ref,
                            pk_ref, pv_ref, wo_ref, bo_ref,
                            ln2_g_ref, ln2_b_ref, w1_ref, b1_ref, w2_ref, b2_ref,
                            o_ref, *, heads, dim_head):
    d = pl.program_id(1)
    bf16 = jnp.bfloat16
    H, E = heads, dim_head
    HD = H * E

    # load the residual stream from HBM once per batch element
    @pl.when(d == 0)
    def _():
        o_ref[0] = x_ref[0]

    x = o_ref[0]                                       # (N, D) f32

    # ---- PreNorm + Linformer self-attention ----
    h = _layer_norm(x, ln1_g_ref[0], ln1_b_ref[0])     # (N, D) f32
    hT = h.T.astype(bf16)                              # (D, N)

    # fused Q/K/V projection in transposed layout:
    # (3*H*dh, D) @ (D, N) -> (3*H*dh, N).  Wq rows are pre-scaled by dh**-0.5.
    qkvT = jnp.dot(wqkvT_ref[0], hT, preferred_element_type=jnp.float32)
    qT = qkvT[:HD]                                     # (H*dh, N)
    kT = qkvT[HD:2 * HD]                               # (H*dh, N)
    vT = qkvT[2 * HD:]                                 # (H*dh, N)

    # Linformer sequence compression: (H*dh, N) @ (N, K) -> (H*dh, K)
    keysT = jnp.dot(kT.astype(bf16), pk_ref[0], preferred_element_type=jnp.float32)
    valsT = jnp.dot(vT.astype(bf16), pv_ref[0], preferred_element_type=jnp.float32)

    N = qT.shape[1]
    K = keysT.shape[1]

    # head-major split along the sublane axis (dh is a multiple of 8 -> aligned)
    q3 = qT.reshape(H, E, N)                           # (H, dh, N)
    k3 = keysT.reshape(H, E, K)                        # (H, dh, K)
    v3 = valsT.reshape(H, E, K)                        # (H, dh, K)
    q_hm = jnp.transpose(q3, (0, 2, 1))                # (H, N, dh)  minor-dim swap

    # all heads at once: (H, N, dh) x (H, dh, K) -> (H, N, K)
    dots = lax.dot_general(q_hm.astype(bf16), k3.astype(bf16),
                           (((2,), (1,)), ((0,), (0,))),
                           preferred_element_type=jnp.float32)
    m = jnp.max(dots, axis=-1, keepdims=True)
    p = jnp.exp(dots - m)
    s = jnp.sum(p, axis=-1, keepdims=True)
    attn = p * pl.reciprocal(s, approx=True)           # (H, N, K) f32

    # weighted values, produced directly head-major-transposed:
    # (H, dh, K) x (H, N, K) -> (H, dh, N)
    outT = lax.dot_general(v3.astype(bf16), attn.astype(bf16),
                           (((2,), (2,)), ((0,), (0,))),
                           preferred_element_type=jnp.float32)
    out_flat = outT.reshape(HD, N)                     # (H*dh, N)

    # output projection contracting the (head, dh) axis directly (no concat):
    # (H*dh, N) . (H*dh, D) -> (N, D)
    attn_out = lax.dot_general(out_flat.astype(bf16), wo_ref[0],
                               (((0,), (0,)), ((), ())),
                               preferred_element_type=jnp.float32)
    x = x + attn_out + bo_ref[0]

    # ---- PreNorm + FeedForward (GELU, mult=4) ----
    h2 = _layer_norm(x, ln2_g_ref[0], ln2_b_ref[0])
    ff = jnp.dot(h2.astype(bf16), w1_ref[0],
                 preferred_element_type=jnp.float32) + b1_ref[0]
    ff = _gelu_tanh(ff)
    ff = jnp.dot(ff.astype(bf16), w2_ref[0],
                 preferred_element_type=jnp.float32) + b2_ref[0]

    # residual stream stays resident in the output block; HBM writeback happens
    # automatically when the batch index changes (i.e. after the last layer).
    o_ref[0] = x + ff


# ---------------------------------------------------------------------------
# Parameter packing (depth-stacked, kernel-friendly layouts) and the wrapper
# ---------------------------------------------------------------------------
def _pack_layer_params(layers, dim_head):
    """Stack per-layer params along a leading depth axis in kernel layout:
       matmul weights -> bf16 (Wq/Wk/Wv pre-transposed + fused, scale folded
       into Wq), LayerNorm params / biases -> f32 with shape (depth, 1, w)."""
    bf16 = jnp.bfloat16
    scale = dim_head ** -0.5

    def stack(fn):
        return jnp.stack([fn(l) for l in layers])

    def stack_w(name):
        return stack(lambda l: l[name]).astype(bf16)

    def stack_v(name):  # 1-D per-layer vectors -> (depth, 1, width) f32
        return stack(lambda l: l[name][None, :]).astype(jnp.float32)

    wqkvT = stack(lambda l: jnp.concatenate(
        [(l["wq"] * scale).T, l["wk"].T, l["wv"].T], axis=0)).astype(bf16)

    packed = {
        "ln1_g": stack_v("ln1_g"), "ln1_b": stack_v("ln1_b"),
        "wqkvT": wqkvT,
        "pk": stack_w("pk"), "pv": stack_w("pv"),
        "wo": stack_w("wo"), "bo": stack_v("bo"),
        "ln2_g": stack_v("ln2_g"), "ln2_b": stack_v("ln2_b"),
        "w1": stack_w("w1"), "b1": stack_v("b1"),
        "w2": stack_w("w2"), "b2": stack_v("b2"),
    }
    return [packed[name] for name in _PARAM_ORDER]


def _param_spec(shape):
    # leading depth axis is streamed one layer at a time; last two dims are full
    return pl.BlockSpec((1,) + tuple(shape[1:]), lambda b, d: (d, 0, 0))


def linformer_lm_forward(tokens, token_emb, pos_emb, layers, heads, dim_head):
    B, N = tokens.shape
    D = token_emb.shape[1]
    depth = len(layers)

    # embedding gathers stay in plain JAX (glue); the hot path runs in Pallas
    x = token_emb[tokens] + pos_emb[jnp.arange(N)]
    packed = _pack_layer_params(layers, dim_head)

    kernel = functools.partial(_linformer_stack_kernel,
                               heads=heads, dim_head=dim_head)
    in_specs = [pl.BlockSpec((1, N, D), lambda b, d: (b, 0, 0))]
    in_specs += [_param_spec(w.shape) for w in packed]

    return pl.pallas_call(
        kernel,
        out_shape=jax.ShapeDtypeStruct((B, N, D), jnp.float32),
        grid=(B, depth),
        in_specs=in_specs,
        out_specs=pl.BlockSpec((1, N, D), lambda b, d: (b, 0, 0)),
        compiler_params=pltpu.CompilerParams(
            dimension_semantics=("parallel", "arbitrary")),
    )(x, *packed)


# ---------------------------------------------------------------------------
# Parameter init (deterministic, synthetic)
# ---------------------------------------------------------------------------
def init_linformer_lm_params(key, num_tokens, dim, seq_len, depth, k, heads, dim_head):
    hd = heads * dim_head
    hidden = dim * 4
    keys = jax.random.split(key, 2 + depth)
    token_emb = 0.02 * jax.random.normal(keys[0], (num_tokens, dim), jnp.float32)
    pos_emb = 0.02 * jax.random.normal(keys[1], (seq_len, dim), jnp.float32)

    def u(kk, shape, fan_in):
        bound = 1.0 / np.sqrt(fan_in)
        return jax.random.uniform(kk, shape, jnp.float32, -bound, bound)

    layers = []
    for li in range(depth):
        ks = jax.random.split(keys[2 + li], 9)
        layers.append({
            "ln1_g": jnp.ones((dim,), jnp.float32),
            "ln1_b": jnp.zeros((dim,), jnp.float32),
            "wq": u(ks[0], (dim, hd), dim),
            "wk": u(ks[1], (dim, hd), dim),
            "wv": u(ks[2], (dim, hd), dim),
            "pk": u(ks[3], (seq_len, k), k),   # proj_k ~ init_ (uniform, std 1/sqrt(k))
            "pv": u(ks[4], (seq_len, k), k),
            "wo": u(ks[5], (hd, dim), hd),
            "bo": u(ks[6], (dim,), hd),
            "ln2_g": jnp.ones((dim,), jnp.float32),
            "ln2_b": jnp.zeros((dim,), jnp.float32),
            "w1": u(ks[7], (dim, hidden), dim),
            "b1": jnp.zeros((hidden,), jnp.float32),
            "w2": u(ks[8], (hidden, dim), hidden),
            "b2": jnp.zeros((dim,), jnp.float32),
        })
    return token_emb, pos_emb, layers


# ---------------------------------------------------------------------------
# Pure-JAX f32 reference (module semantics) for correctness check
# ---------------------------------------------------------------------------
def _layer_ref(x, p, heads, dim_head):
    B, N, _ = x.shape
    h = _layer_norm(x, p["ln1_g"], p["ln1_b"])
    q, ks, vs = h @ p["wq"], h @ p["wk"], h @ p["wv"]
    keys = jnp.einsum("bnd,nk->bkd", ks, p["pk"])
    vals = jnp.einsum("bnd,nk->bkd", vs, p["pv"])
    K = keys.shape[1]
    qh = q.reshape(B, N, heads, dim_head).transpose(0, 2, 1, 3)
    kh = keys.reshape(B, K, heads, dim_head).transpose(0, 2, 1, 3)
    vh = vals.reshape(B, K, heads, dim_head).transpose(0, 2, 1, 3)
    dots = jnp.einsum("bhnd,bhkd->bhnk", qh, kh) * dim_head ** -0.5
    attn = jax.nn.softmax(dots, axis=-1)
    out = jnp.einsum("bhnk,bhkd->bhnd", attn, vh)
    out = out.transpose(0, 2, 1, 3).reshape(B, N, heads * dim_head)
    x = x + out @ p["wo"] + p["bo"]
    h2 = _layer_norm(x, p["ln2_g"], p["ln2_b"])
    ff = _gelu_tanh(h2 @ p["w1"] + p["b1"])
    x = x + ff @ p["w2"] + p["b2"]
    return x


def reference_forward(tokens, token_emb, pos_emb, layers, heads, dim_head):
    n = tokens.shape[1]
    x = token_emb[tokens] + pos_emb[jnp.arange(n)]
    for p in layers:
        x = _layer_ref(x, p, heads, dim_head)
    return x


if __name__ == "__main__":
    # Small but lane-friendly config (D and H*dh = 128, hidden = 512, dh mult of 8)
    NUM_TOKENS, DIM, SEQ_LEN, DEPTH, K_PROJ, HEADS = 256, 128, 64, 2, 16, 4
    DIM_HEAD = DIM // HEADS  # dim_head=None -> dim // heads
    B = 2

    key = jax.random.PRNGKey(0)
    k_tok, k_params = jax.random.split(key)
    tokens = jax.random.randint(k_tok, (B, SEQ_LEN), 0, NUM_TOKENS, dtype=jnp.int32)
    token_emb, pos_emb, layers = init_linformer_lm_params(
        k_params, NUM_TOKENS, DIM, SEQ_LEN, DEPTH, K_PROJ, HEADS, DIM_HEAD)

    out = linformer_lm_forward(tokens, token_emb, pos_emb, layers, HEADS, DIM_HEAD)
    out = jax.block_until_ready(out)

    ref = reference_forward(tokens, token_emb, pos_emb, layers, HEADS, DIM_HEAD)
    assert out.shape == (B, SEQ_LEN, DIM), out.shape
    # kernel uses bf16 matmul inputs (f32 accumulation) -> compare with bf16-level tolerance
    np.testing.assert_allclose(np.asarray(out), np.asarray(ref), rtol=5e-2, atol=2e-2)

    print("KERNEL_OK")
</pallas_src>

<mosaic_0001>
module attributes {stable_mosaic.version = 11 : i64} {
  func.func @_linformer_stack_kernel(%arg0: i32, %arg1: i32, %arg2: memref<1x64x128xf32, #tpu.memory_space<vmem>>, %arg3: memref<1x1x128xf32, #tpu.memory_space<vmem>>, %arg4: memref<1x1x128xf32, #tpu.memory_space<vmem>>, %arg5: memref<1x384x128xbf16, #tpu.memory_space<vmem>>, %arg6: memref<1x64x16xbf16, #tpu.memory_space<vmem>>, %arg7: memref<1x64x16xbf16, #tpu.memory_space<vmem>>, %arg8: memref<1x128x128xbf16, #tpu.memory_space<vmem>>, %arg9: memref<1x1x128xf32, #tpu.memory_space<vmem>>, %arg10: memref<1x1x128xf32, #tpu.memory_space<vmem>>, %arg11: memref<1x1x128xf32, #tpu.memory_space<vmem>>, %arg12: memref<1x128x512xbf16, #tpu.memory_space<vmem>>, %arg13: memref<1x1x512xf32, #tpu.memory_space<vmem>>, %arg14: memref<1x512x128xbf16, #tpu.memory_space<vmem>>, %arg15: memref<1x1x128xf32, #tpu.memory_space<vmem>>, %arg16: memref<1x64x128xf32, #tpu.memory_space<vmem>>) attributes {dimension_semantics = [#tpu.dimension_semantics<parallel>, #tpu.dimension_semantics<arbitrary>], iteration_bounds = array<i64: 2, 2>, scalar_prefetch = 0 : i64, scratch_operands = 0 : i64, tpu.core_type = #tpu.core_type<tc>, window_params = [{transform_indices = @transform_0, window_bounds = array<i64: 1, 64, 128>}, {transform_indices = @transform_1, window_bounds = array<i64: 1, 1, 128>}, {transform_indices = @transform_2, window_bounds = array<i64: 1, 1, 128>}, {transform_indices = @transform_3, window_bounds = array<i64: 1, 384, 128>}, {transform_indices = @transform_4, window_bounds = array<i64: 1, 64, 16>}, {transform_indices = @transform_5, window_bounds = array<i64: 1, 64, 16>}, {transform_indices = @transform_6, window_bounds = array<i64: 1, 128, 128>}, {transform_indices = @transform_7, window_bounds = array<i64: 1, 1, 128>}, {transform_indices = @transform_8, window_bounds = array<i64: 1, 1, 128>}, {transform_indices = @transform_9, window_bounds = array<i64: 1, 1, 128>}, {transform_indices = @transform_10, window_bounds = array<i64: 1, 128, 512>}, {transform_indices = @transform_11, window_bounds = array<i64: 1, 1, 512>}, {transform_indices = @transform_12, window_bounds = array<i64: 1, 512, 128>}, {transform_indices = @transform_13, window_bounds = array<i64: 1, 1, 128>}, {transform_indices = @transform_14, window_bounds = array<i64: 1, 64, 128>}]} {
    %c0_i32 = arith.constant 0 : i32
    %0 = arith.cmpi eq, %arg1, %c0_i32 : i32
    %1 = arith.extui %0 : i1 to i32
    %c0_i32_0 = arith.constant 0 : i32
    %2 = arith.cmpi ne, %1, %c0_i32_0 : i32
    scf.if %2 {
      %c0_68 = arith.constant 0 : index
      %c0_69 = arith.constant 0 : index
      %c0_70 = arith.constant 0 : index
      %136 = vector.load %arg2[%c0_68, %c0_69, %c0_70] : memref<1x64x128xf32, #tpu.memory_space<vmem>>, vector<1x64x128xf32>
      %137 = vector.shape_cast %136 : vector<1x64x128xf32> to vector<64x128xf32>
      %c0_71 = arith.constant 0 : index
      %c0_72 = arith.constant 0 : index
      %c0_73 = arith.constant 0 : index
      %138 = vector.load %arg16[%c0_71, %c0_72, %c0_73] : memref<1x64x128xf32, #tpu.memory_space<vmem>>, vector<1x64x128xf32>
      %139 = vector.shape_cast %138 : vector<1x64x128xf32> to vector<64x128xf32>
      %140 = vector.shape_cast %137 : vector<64x128xf32> to vector<1x64x128xf32>
      tpu.vector_store %arg16[%c0_71, %c0_72, %c0_73], %140 {strides = array<i32>} : memref<1x64x128xf32, #tpu.memory_space<vmem>>, vector<1x64x128xf32>,
    } else {
    }
    %c0 = arith.constant 0 : index
    %c0_1 = arith.constant 0 : index
    %c0_2 = arith.constant 0 : index
    %3 = vector.load %arg16[%c0, %c0_1, %c0_2] : memref<1x64x128xf32, #tpu.memory_space<vmem>>, vector<1x64x128xf32>
    %4 = vector.shape_cast %3 : vector<1x64x128xf32> to vector<64x128xf32>
    %c0_3 = arith.constant 0 : index
    %c0_4 = arith.constant 0 : index
    %c0_5 = arith.constant 0 : index
    %5 = vector.load %arg3[%c0_3, %c0_4, %c0_5] : memref<1x1x128xf32, #tpu.memory_space<vmem>>, vector<1x1x128xf32>
    %6 = vector.shape_cast %5 : vector<1x1x128xf32> to vector<1x128xf32>
    %c0_6 = arith.constant 0 : index
    %c0_7 = arith.constant 0 : index
    %c0_8 = arith.constant 0 : index
    %7 = vector.load %arg4[%c0_6, %c0_7, %c0_8] : memref<1x1x128xf32, #tpu.memory_space<vmem>>, vector<1x1x128xf32>
    %8 = vector.shape_cast %7 : vector<1x1x128xf32> to vector<1x128xf32>
    %cst = arith.constant dense<0.000000e+00> : vector<64xf32>
    %9 = vector.multi_reduction <add>, %4, %cst [1] : vector<64x128xf32> to vector<64xf32>
    %10 = vector.shape_cast %9 : vector<64xf32> to vector<64x1xf32>
    %cst_9 = arith.constant 1.280000e+02 : f32
    %11 = vector.broadcast %cst_9 : f32 to vector<64x1xf32>
    %12 = arith.divf %10, %11 : vector<64x1xf32>
    %13 = vector.broadcast %12 : vector<64x1xf32> to vector<64x128xf32>
    %14 = arith.subf %4, %13 : vector<64x128xf32>
    %15 = arith.mulf %14, %14 : vector<64x128xf32>
    %cst_10 = arith.constant dense<0.000000e+00> : vector<64xf32>
    %16 = vector.multi_reduction <add>, %15, %cst_10 [1] : vector<64x128xf32> to vector<64xf32>
    %17 = vector.shape_cast %16 : vector<64xf32> to vector<64x1xf32>
    %cst_11 = arith.constant 1.280000e+02 : f32
    %18 = vector.broadcast %cst_11 : f32 to vector<64x1xf32>
    %19 = arith.divf %17, %18 : vector<64x1xf32>
    %20 = vector.broadcast %12 : vector<64x1xf32> to vector<64x128xf32>
    %21 = arith.subf %4, %20 : vector<64x128xf32>
    %cst_12 = arith.constant 9.99999974E-6 : f32
    %22 = vector.broadcast %cst_12 : f32 to vector<64x1xf32>
    %23 = arith.addf %19, %22 : vector<64x1xf32>
    %24 = math.rsqrt %23 : vector<64x1xf32>
    %25 = vector.broadcast %24 : vector<64x1xf32> to vector<64x128xf32>
    %26 = arith.mulf %21, %25 : vector<64x128xf32>
    %27 = vector.broadcast %6 : vector<1x128xf32> to vector<64x128xf32>
    %28 = arith.mulf %26, %27 : vector<64x128xf32>
    %29 = vector.broadcast %8 : vector<1x128xf32> to vector<64x128xf32>
    %30 = arith.addf %28, %29 : vector<64x128xf32>
    %31 = tpu.transpose %30, [1, 0] : vector<64x128xf32> -> vector<128x64xf32>
    %32 = arith.truncf %31 : vector<128x64xf32> to vector<128x64xbf16>
    %c0_13 = arith.constant 0 : index
    %c0_14 = arith.constant 0 : index
    %c0_15 = arith.constant 0 : index
    %33 = vector.load %arg5[%c0_13, %c0_14, %c0_15] : memref<1x384x128xbf16, #tpu.memory_space<vmem>>, vector<1x384x128xbf16>
    %34 = vector.shape_cast %33 : vector<1x384x128xbf16> to vector<384x128xbf16>
    %cst_16 = arith.constant dense<0.000000e+00> : vector<384x64xf32>
    %35 = tpu.matmul %34, %32, %cst_16 {dimension_numbers = #tpu.dot_dimension_numbers<[1], [0], [0], [1], [0, 0, 1, 1], [], []>} : vector<384x128xbf16>, vector<128x64xbf16>, vector<384x64xf32> -> vector<384x64xf32>
    %36 = vector.extract_strided_slice %35 {offsets = [0, 0], sizes = [128, 64], strides = [1, 1]} : vector<384x64xf32> to vector<128x64xf32>
    %37 = vector.extract_strided_slice %35 {offsets = [128, 0], sizes = [128, 64], strides = [1, 1]} : vector<384x64xf32> to vector<128x64xf32>
    %38 = vector.extract_strided_slice %35 {offsets = [256, 0], sizes = [128, 64], strides = [1, 1]} : vector<384x64xf32> to vector<128x64xf32>
    %39 = arith.truncf %37 : vector<128x64xf32> to vector<128x64xbf16>
    %c0_17 = arith.constant 0 : index
    %c0_18 = arith.constant 0 : index
    %c0_19 = arith.constant 0 : index
    %40 = vector.load %arg6[%c0_17, %c0_18, %c0_19] : memref<1x64x16xbf16, #tpu.memory_space<vmem>>, vector<1x64x16xbf16>
    %41 = vector.shape_cast %40 : vector<1x64x16xbf16> to vector<64x16xbf16>
    %cst_20 = arith.constant dense<0.000000e+00> : vector<128x16xf32>
    %42 = tpu.matmul %39, %41, %cst_20 {dimension_numbers = #tpu.dot_dimension_numbers<[1], [0], [0], [1], [0, 0, 1, 1], [], []>} : vector<128x64xbf16>, vector<64x16xbf16>, vector<128x16xf32> -> vector<128x16xf32>
    %43 = arith.truncf %38 : vector<128x64xf32> to vector<128x64xbf16>
    %c0_21 = arith.constant 0 : index
    %c0_22 = arith.constant 0 : index
    %c0_23 = arith.constant 0 : index
    %44 = vector.load %arg7[%c0_21, %c0_22, %c0_23] : memref<1x64x16xbf16, #tpu.memory_space<vmem>>, vector<1x64x16xbf16>
    %45 = vector.shape_cast %44 : vector<1x64x16xbf16> to vector<64x16xbf16>
    %cst_24 = arith.constant dense<0.000000e+00> : vector<128x16xf32>
    %46 = tpu.matmul %43, %45, %cst_24 {dimension_numbers = #tpu.dot_dimension_numbers<[1], [0], [0], [1], [0, 0, 1, 1], [], []>} : vector<128x64xbf16>, vector<64x16xbf16>, vector<128x16xf32> -> vector<128x16xf32>
    %47 = vector.shape_cast %36 : vector<128x64xf32> to vector<4x32x64xf32>
    %48 = vector.shape_cast %42 : vector<128x16xf32> to vector<4x32x16xf32>
    %49 = vector.shape_cast %46 : vector<128x16xf32> to vector<4x32x16xf32>
    %50 = tpu.transpose %47, [0, 2, 1] : vector<4x32x64xf32> -> vector<4x64x32xf32>
    %51 = arith.truncf %50 : vector<4x64x32xf32> to vector<4x64x32xbf16>
    %52 = arith.truncf %48 : vector<4x32x16xf32> to vector<4x32x16xbf16>
    %cst_25 = arith.constant dense<0.000000e+00> : vector<4x64x16xf32>
    %53 = tpu.matmul %51, %52, %cst_25 {dimension_numbers = #tpu.dot_dimension_numbers<[2], [1], [1], [2], [0, 0, 0, 1, 1, 2], [0], [0]>} : vector<4x64x32xbf16>, vector<4x32x16xbf16>, vector<4x64x16xf32> -> vector<4x64x16xf32>
    %cst_26 = arith.constant dense<0xFF800000> : vector<4x64xf32>
    %54 = vector.multi_reduction <maximumf>, %53, %cst_26 [2] : vector<4x64x16xf32> to vector<4x64xf32>
    %55 = vector.shape_cast %54 : vector<4x64xf32> to vector<4x64x1xf32>
    %56 = vector.broadcast %55 : vector<4x64x1xf32> to vector<4x64x16xf32>
    %57 = arith.subf %53, %56 : vector<4x64x16xf32>
    %58 = math.exp %57 : vector<4x64x16xf32>
    %cst_27 = arith.constant dense<0.000000e+00> : vector<4x64xf32>
    %59 = vector.multi_reduction <add>, %58, %cst_27 [2] : vector<4x64x16xf32> to vector<4x64xf32>
    %60 = vector.shape_cast %59 : vector<4x64xf32> to vector<4x64x1xf32>
    %61 = tpu.reciprocal %60 {approx = true} : vector<4x64x1xf32> -> vector<4x64x1xf32>
    %62 = vector.broadcast %61 : vector<4x64x1xf32> to vector<4x64x16xf32>
    %63 = arith.mulf %58, %62 : vector<4x64x16xf32>
    %64 = arith.truncf %49 : vector<4x32x16xf32> to vector<4x32x16xbf16>
    %65 = arith.truncf %63 : vector<4x64x16xf32> to vector<4x64x16xbf16>
    %cst_28 = arith.constant dense<0.000000e+00> : vector<4x32x64xf32>
    %66 = tpu.matmul %64, %65, %cst_28 {dimension_numbers = #tpu.dot_dimension_numbers<[2], [2], [1], [1], [0, 0, 0, 1, 1, 1], [0], [0]>} : vector<4x32x16xbf16>, vector<4x64x16xbf16>, vector<4x32x64xf32> -> vector<4x32x64xf32>
    %67 = vector.shape_cast %66 : vector<4x32x64xf32> to vector<128x64xf32>
    %68 = arith.truncf %67 : vector<128x64xf32> to vector<128x64xbf16>
    %c0_29 = arith.constant 0 : index
    %c0_30 = arith.constant 0 : index
    %c0_31 = arith.constant 0 : index
    %69 = vector.load %arg8[%c0_29, %c0_30, %c0_31] : memref<1x128x128xbf16, #tpu.memory_space<vmem>>, vector<1x128x128xbf16>
    %70 = vector.shape_cast %69 : vector<1x128x128xbf16> to vector<128x128xbf16>
    %cst_32 = arith.constant dense<0.000000e+00> : vector<64x128xf32>
    %71 = tpu.matmul %68, %70, %cst_32 {dimension_numbers = #tpu.dot_dimension_numbers<[0], [0], [1], [1], [0, 1, 1, 1], [], []>} : vector<128x64xbf16>, vector<128x128xbf16>, vector<64x128xf32> -> vector<64x128xf32>
    %72 = arith.addf %4, %71 : vector<64x128xf32>
    %c0_33 = arith.constant 0 : index
    %c0_34 = arith.constant 0 : index
    %c0_35 = arith.constant 0 : index
    %73 = vector.load %arg9[%c0_33, %c0_34, %c0_35] : memref<1x1x128xf32, #tpu.memory_space<vmem>>, vector<1x1x128xf32>
    %74 = vector.shape_cast %73 : vector<1x1x128xf32> to vector<1x128xf32>
    %75 = vector.broadcast %74 : vector<1x128xf32> to vector<64x128xf32>
    %76 = arith.addf %72, %75 : vector<64x128xf32>
    %c0_36 = arith.constant 0 : index
    %c0_37 = arith.constant 0 : index
    %c0_38 = arith.constant 0 : index
    %77 = vector.load %arg10[%c0_36, %c0_37, %c0_38] : memref<1x1x128xf32, #tpu.memory_space<vmem>>, vector<1x1x128xf32>
    %78 = vector.shape_cast %77 : vector<1x1x128xf32> to vector<1x128xf32>
    %c0_39 = arith.constant 0 : index
    %c0_40 = arith.constant 0 : index
    %c0_41 = arith.constant 0 : index
    %79 = vector.load %arg11[%c0_39, %c0_40, %c0_41] : memref<1x1x128xf32, #tpu.memory_space<vmem>>, vector<1x1x128xf32>
    %80 = vector.shape_cast %79 : vector<1x1x128xf32> to vector<1x128xf32>
    %cst_42 = arith.constant dense<0.000000e+00> : vector<64xf32>
    %81 = vector.multi_reduction <add>, %76, %cst_42 [1] : vector<64x128xf32> to vector<64xf32>
    %82 = vector.shape_cast %81 : vector<64xf32> to vector<64x1xf32>
    %cst_43 = arith.constant 1.280000e+02 : f32
    %83 = vector.broadcast %cst_43 : f32 to vector<64x1xf32>
    %84 = arith.divf %82, %83 : vector<64x1xf32>
    %85 = vector.broadcast %84 : vector<64x1xf32> to vector<64x128xf32>
    %86 = arith.subf %76, %85 : vector<64x128xf32>
    %87 = arith.mulf %86, %86 : vector<64x128xf32>
    %cst_44 = arith.constant dense<0.000000e+00> : vector<64xf32>
    %88 = vector.multi_reduction <add>, %87, %cst_44 [1] : vector<64x128xf32> to vector<64xf32>
    %89 = vector.shape_cast %88 : vector<64xf32> to vector<64x1xf32>
    %cst_45 = arith.constant 1.280000e+02 : f32
    %90 = vector.broadcast %cst_45 : f32 to vector<64x1xf32>
    %91 = arith.divf %89, %90 : vector<64x1xf32>
    %92 = vector.broadcast %84 : vector<64x1xf32> to vector<64x128xf32>
    %93 = arith.subf %76, %92 : vector<64x128xf32>
    %cst_46 = arith.constant 9.99999974E-6 : f32
    %94 = vector.broadcast %cst_46 : f32 to vector<64x1xf32>
    %95 = arith.addf %91, %94 : vector<64x1xf32>
    %96 = math.rsqrt %95 : vector<64x1xf32>
    %97 = vector.broadcast %96 : vector<64x1xf32> to vector<64x128xf32>
    %98 = arith.mulf %93, %97 : vector<64x128xf32>
    %99 = vector.broadcast %78 : vector<1x128xf32> to vector<64x128xf32>
    %100 = arith.mulf %98, %99 : vector<64x128xf32>
    %101 = vector.broadcast %80 : vector<1x128xf32> to vector<64x128xf32>
    %102 = arith.addf %100, %101 : vector<64x128xf32>
    %103 = arith.truncf %102 : vector<64x128xf32> to vector<64x128xbf16>
    %c0_47 = arith.constant 0 : index
    %c0_48 = arith.constant 0 : index
    %c0_49 = arith.constant 0 : index
    %104 = vector.load %arg12[%c0_47, %c0_48, %c0_49] : memref<1x128x512xbf16, #tpu.memory_space<vmem>>, vector<1x128x512xbf16>
    %105 = vector.shape_cast %104 : vector<1x128x512xbf16> to vector<128x512xbf16>
    %cst_50 = arith.constant dense<0.000000e+00> : vector<64x512xf32>
    %106 = tpu.matmul %103, %105, %cst_50 {dimension_numbers = #tpu.dot_dimension_numbers<[1], [0], [0], [1], [0, 0, 1, 1], [], []>} : vector<64x128xbf16>, vector<128x512xbf16>, vector<64x512xf32> -> vector<64x512xf32>
    %c0_51 = arith.constant 0 : index
    %c0_52 = arith.constant 0 : index
    %c0_53 = arith.constant 0 : index
    %107 = vector.load %arg13[%c0_51, %c0_52, %c0_53] : memref<1x1x512xf32, #tpu.memory_space<vmem>>, vector<1x1x512xf32>
    %108 = vector.shape_cast %107 : vector<1x1x512xf32> to vector<1x512xf32>
    %109 = vector.broadcast %108 : vector<1x512xf32> to vector<64x512xf32>
    %110 = arith.addf %106, %109 : vector<64x512xf32>
    %cst_54 = arith.constant 5.000000e-01 : f32
    %111 = vector.broadcast %cst_54 : f32 to vector<64x512xf32>
    %112 = arith.mulf %111, %110 : vector<64x512xf32>
    %cst_55 = arith.constant 4.471500e-02 : f32
    %113 = vector.broadcast %cst_55 : f32 to vector<64x512xf32>
    %114 = arith.mulf %113, %110 : vector<64x512xf32>
    %115 = arith.mulf %114, %110 : vector<64x512xf32>
    %116 = arith.mulf %115, %110 : vector<64x512xf32>
    %117 = arith.addf %110, %116 : vector<64x512xf32>
    %cst_56 = arith.constant 0.797884583 : f32
    %118 = vector.broadcast %cst_56 : f32 to vector<64x512xf32>
    %119 = arith.mulf %118, %117 : vector<64x512xf32>
    %120 = math.tanh %119 : vector<64x512xf32>
    %cst_57 = arith.constant 1.000000e+00 : f32
    %121 = vector.broadcast %cst_57 : f32 to vector<64x512xf32>
    %122 = arith.addf %121, %120 : vector<64x512xf32>
    %123 = arith.mulf %112, %122 : vector<64x512xf32>
    %124 = arith.truncf %123 : vector<64x512xf32> to vector<64x512xbf16>
    %c0_58 = arith.constant 0 : index
    %c0_59 = arith.constant 0 : index
    %c0_60 = arith.constant 0 : index
    %125 = vector.load %arg14[%c0_58, %c0_59, %c0_60] : memref<1x512x128xbf16, #tpu.memory_space<vmem>>, vector<1x512x128xbf16>
    %126 = vector.shape_cast %125 : vector<1x512x128xbf16> to vector<512x128xbf16>
    %cst_61 = arith.constant dense<0.000000e+00> : vector<64x128xf32>
    %127 = tpu.matmul %124, %126, %cst_61 {dimension_numbers = #tpu.dot_dimension_numbers<[1], [0], [0], [1], [0, 0, 1, 1], [], []>} : vector<64x512xbf16>, vector<512x128xbf16>, vector<64x128xf32> -> vector<64x128xf32>
    %c0_62 = arith.constant 0 : index
    %c0_63 = arith.constant 0 : index
    %c0_64 = arith.constant 0 : index
    %128 = vector.load %arg15[%c0_62, %c0_63, %c0_64] : memref<1x1x128xf32, #tpu.memory_space<vmem>>, vector<1x1x128xf32>
    %129 = vector.shape_cast %128 : vector<1x1x128xf32> to vector<1x128xf32>
    %130 = vector.broadcast %129 : vector<1x128xf32> to vector<64x128xf32>
    %131 = arith.addf %127, %130 : vector<64x128xf32>
    %132 = arith.addf %76, %131 : vector<64x128xf32>
    %c0_65 = arith.constant 0 : index
    %c0_66 = arith.constant 0 : index
    %c0_67 = arith.constant 0 : index
    %133 = vector.load %arg16[%c0_65, %c0_66, %c0_67] : memref<1x64x128xf32, #tpu.memory_space<vmem>>, vector<1x64x128xf32>
    %134 = vector.shape_cast %133 : vector<1x64x128xf32> to vector<64x128xf32>
    %135 = vector.shape_cast %132 : vector<64x128xf32> to vector<1x64x128xf32>
    tpu.vector_store %arg16[%c0_65, %c0_66, %c0_67], %135 {strides = array<i32>} : memref<1x64x128xf32, #tpu.memory_space<vmem>>, vector<1x64x128xf32>,
    return
  }
  func.func @transform_0(%arg0: i32, %arg1: i32) -> (i32, i32, i32) {
    %c0_i32 = arith.constant 0 : i32
    %c0_i32_0 = arith.constant 0 : i32
    %c0_i32_1 = arith.constant 0 : i32
    return %arg0, %c0_i32, %c0_i32_0 : i32, i32, i32
  }
  func.func @transform_1(%arg0: i32, %arg1: i32) -> (i32, i32, i32) {
    %c0_i32 = arith.constant 0 : i32
    %c0_i32_0 = arith.constant 0 : i32
    %c0_i32_1 = arith.constant 0 : i32
    return %arg1, %c0_i32, %c0_i32_0 : i32, i32, i32
  }
  func.func @transform_2(%arg0: i32, %arg1: i32) -> (i32, i32, i32) {
    %c0_i32 = arith.constant 0 : i32
    %c0_i32_0 = arith.constant 0 : i32
    %c0_i32_1 = arith.constant 0 : i32
    return %arg1, %c0_i32, %c0_i32_0 : i32, i32, i32
  }
  func.func @transform_3(%arg0: i32, %arg1: i32) -> (i32, i32, i32) {
    %c0_i32 = arith.constant 0 : i32
    %c0_i32_0 = arith.constant 0 : i32
    %c0_i32_1 = arith.constant 0 : i32
    return %arg1, %c0_i32, %c0_i32_0 : i32, i32, i32
  }
  func.func @transform_4(%arg0: i32, %arg1: i32) -> (i32, i32, i32) {
    %c0_i32 = arith.constant 0 : i32
    %c0_i32_0 = arith.constant 0 : i32
    %c0_i32_1 = arith.constant 0 : i32
    return %arg1, %c0_i32, %c0_i32_0 : i32, i32, i32
  }
  func.func @transform_5(%arg0: i32, %arg1: i32) -> (i32, i32, i32) {
    %c0_i32 = arith.constant 0 : i32
    %c0_i32_0 = arith.constant 0 : i32
    %c0_i32_1 = arith.constant 0 : i32
    return %arg1, %c0_i32, %c0_i32_0 : i32, i32, i32
  }
  func.func @transform_6(%arg0: i32, %arg1: i32) -> (i32, i32, i32) {
    %c0_i32 = arith.constant 0 : i32
    %c0_i32_0 = arith.constant 0 : i32
    %c0_i32_1 = arith.constant 0 : i32
    return %arg1, %c0_i32, %c0_i32_0 : i32, i32, i32
  }
  func.func @transform_7(%arg0: i32, %arg1: i32) -> (i32, i32, i32) {
    %c0_i32 = arith.constant 0 : i32
    %c0_i32_0 = arith.constant 0 : i32
    %c0_i32_1 = arith.constant 0 : i32
    return %arg1, %c0_i32, %c0_i32_0 : i32, i32, i32
  }
  func.func @transform_8(%arg0: i32, %arg1: i32) -> (i32, i32, i32) {
    %c0_i32 = arith.constant 0 : i32
    %c0_i32_0 = arith.constant 0 : i32
    %c0_i32_1 = arith.constant 0 : i32
    return %arg1, %c0_i32, %c0_i32_0 : i32, i32, i32
  }
  func.func @transform_9(%arg0: i32, %arg1: i32) -> (i32, i32, i32) {
    %c0_i32 = arith.constant 0 : i32
    %c0_i32_0 = arith.constant 0 : i32
    %c0_i32_1 = arith.constant 0 : i32
    return %arg1, %c0_i32, %c0_i32_0 : i32, i32, i32
  }
  func.func @transform_10(%arg0: i32, %arg1: i32) -> (i32, i32, i32) {
    %c0_i32 = arith.constant 0 : i32
    %c0_i32_0 = arith.constant 0 : i32
    %c0_i32_1 = arith.constant 0 : i32
    return %arg1, %c0_i32, %c0_i32_0 : i32, i32, i32
  }
  func.func @transform_11(%arg0: i32, %arg1: i32) -> (i32, i32, i32) {
    %c0_i32 = arith.constant 0 : i32
    %c0_i32_0 = arith.constant 0 : i32
    %c0_i32_1 = arith.constant 0 : i32
    return %arg1, %c0_i32, %c0_i32_0 : i32, i32, i32
  }
  func.func @transform_12(%arg0: i32, %arg1: i32) -> (i32, i32, i32) {
    %c0_i32 = arith.constant 0 : i32
    %c0_i32_0 = arith.constant 0 : i32
    %c0_i32_1 = arith.constant 0 : i32
    return %arg1, %c0_i32, %c0_i32_0 : i32, i32, i32
  }
  func.func @transform_13(%arg0: i32, %arg1: i32) -> (i32, i32, i32) {
    %c0_i32 = arith.constant 0 : i32
    %c0_i32_0 = arith.constant 0 : i32
    %c0_i32_1 = arith.constant 0 : i32
    return %arg1, %c0_i32, %c0_i32_0 : i32, i32, i32
  }
  func.func @transform_14(%arg0: i32, %arg1: i32) -> (i32, i32, i32) {
    %c0_i32 = arith.constant 0 : i32
    %c0_i32_0 = arith.constant 0 : i32
    %c0_i32_1 = arith.constant 0 : i32
    return %arg0, %c0_i32, %c0_i32_0 : i32, i32, i32
  }
}

</mosaic_0001>

<bundles_post_ra>
// kernel: tpu_custom_call.1
= control target key start
LH: loop header
LB: loop body
LE: loop exit
PB: predicated region body
PF: predicated region fallthrough
CT: control target
= control target key end

     0   :  { %s7512_s0 = inlined_call_operand.vmem [shape: f32[2,64,128], index: 0, kind: input, shape index: {}]   ;;  %s7513_s1 = inlined_call_operand.vmem [shape: f32[2,1,128], index: 1, kind: input, shape index: {}]   ;;  %s7514_s2 = inlined_call_operand.vmem [shape: f32[2,1,128], index: 2, kind: input, shape index: {}]   ;;  %s7515_s3 = inlined_call_operand.hbm [shape: bf16[2,384,128], index: 3, kind: input, shape index: {}]   ;;  %s7516_s4 = inlined_call_operand.vmem [shape: bf16[2,64,16], index: 4, kind: input, shape index: {}]   ;;  %s7517_s5 = inlined_call_operand.vmem [shape: bf16[2,64,16], index: 5, kind: input, shape index: {}]   ;;  %s7518_s6 = inlined_call_operand.hbm [shape: bf16[2,128,128], index: 6, kind: input, shape index: {}]   ;;  %s7519_s7 = inlined_call_operand.vmem [shape: f32[2,1,128], index: 7, kind: input, shape index: {}]   ;;  %s7520_s8 = inlined_call_operand.vmem [shape: f32[2,1,128], index: 8, kind: input, shape index: {}]   ;;  %s7521_s9 = inlined_call_operand.vmem [shape: f32[2,1,128], index: 9, kind: input, shape index: {}]   ;;  %s7522_s10 = inlined_call_operand.hbm [shape: bf16[2,128,512], index: 10, kind: input, shape index: {}]   ;;  %s7523_s11 = inlined_call_operand.vmem [shape: f32[2,1,512], index: 11, kind: input, shape index: {}]   ;;  %s7524_s12 = inlined_call_operand.hbm [shape: bf16[2,512,128], index: 12, kind: input, shape index: {}]   ;;  %s7525_s13 = inlined_call_operand.vmem [shape: f32[2,1,128], index: 13, kind: input, shape index: {}]   ;;  %s7526_s14 = inlined_call_operand.hbm [shape: f32[2,64,128], index: 14, kind: output, shape index: {}]  }
   0x1   :  { %7568 = sst [smem:[#allocation49_spill]] %s7512_s0 }
   0x2   :  { %7569 = sst [smem:[#allocation50_spill]] %s7515_s3 }
   0x3   :  { %7570 = sst [smem:[#allocation51_spill]] %s7516_s4 }
   0x4   :  { %7571 = sst [smem:[#allocation52_spill]] %s7517_s5 }
   0x5   :  { %7572 = sst [smem:[#allocation53_spill]] %s7518_s6 }
   0x6   :  { %7573 = sst [smem:[#allocation54_spill]] %s7519_s7 }
   0x7   :  { %7574 = sst [smem:[#allocation55_spill]] %s7520_s8 }
   0x8   :  { %7575 = sst [smem:[#allocation56_spill]] %s7521_s9 }
   0x9   :  { %7576 = sst [smem:[#allocation57_spill]] %s7522_s10 }
   0xa   :  { %7577 = sst [smem:[#allocation58_spill]] %s7523_s11 }
   0xb   :  { %7578 = sst [smem:[#allocation59_spill]] %s7524_s12 }
   0xc   :  { %7579 = sst [smem:[#allocation60_spill]] %s7525_s13 }
   0xd   :  { %7580 = sst [smem:[#allocation61_spill]] %s7526_s14 }
   0xe   :  { %19 = vsyncpa [#allocation3], 0 }
   0xf   :  { %21 = vsyncpa [#allocation3 + $0x1], 0 }
  0x10   :  { %22 = vsyncpa [#allocation6], 0 }
  0x11   :  { %24 = vsyncpa [#allocation6 + $0x1], 0 }
  0x12   :  { %25 = vsyncpa [#allocation9], 0 }
  0x13   :  { %27 = vsyncpa [#allocation9 + $0x1], 0 }
  0x14   :  { %28 = vsyncpa [#allocation4], 0 }
  0x15   :  { %30 = vsyncpa [#allocation4 + $0x1], 0  ;;  %s5955_s29 = smov 0   ;;  %s5957_s30 = smov 0  }
  0x16   :  { %s5959_s15 = smov 0   ;;  %s5961_s16 = smov 0  }
  0x17   :  { %s5963_s17 = smov 0   ;;  %s5965_s18 = smov 0  }
  0x18   :  { %s5967_s19 = smov 0   ;;  %s5969_s20 = smov 0  }
  0x19   :  { %s5971_s21 = smov 0   ;;  %s5973_s22 = smov 0  }
  0x1a   :  { %s5975_s23 = smov 0  }
  0x1b LB: > { %7581 = sst [smem:[#allocation15_spill]] %s5826_s29  ;;  %s6009_s24 = sadd.s32 4294967295, %s5866_s23   ;;  %s5866_s23 = sphi %s5975_s23, %s36_s23   ;;  %s5862_s22 = sphi %s5973_s22, %s7687_s22   ;;  %s5858_s21 = sphi %s5971_s21, %s7686_s21   ;;  %s5854_s20 = sphi %s5969_s20, %s7685_s20   ;;  %s5850_s19 = sphi %s5967_s19, %s7684_s19   ;;  %s5846_s18 = sphi %s5965_s18, %s7683_s18   ;;  %s5842_s17 = sphi %s5963_s17, %s7682_s17   ;;  %s5838_s16 = sphi %s5961_s16, %s7681_s16   ;;  %s5834_s15 = sphi %s5959_s15, %s7680_s15   ;;  %s5830_s30 = sphi %s5957_s30, %s7679_s30   ;;  %s5826_s29 = sphi %s5955_s29, %s7678_s29  }
  0x1c   : > { %7582 = sst [smem:[#allocation16_spill]] %s5830_s30  ;;  %s4448_s25 = sadd.s32 4294967294, %s5866_s23  }
  0x1d   : > { %7583 = sst [smem:[#allocation17_spill]] %s5834_s15  ;;  %s45_s26 = sadd.s32 1, %s5858_s21 }
  0x1e   : > { %7584 = sst [smem:[#allocation18_spill]] %s5842_s17  ;;  %s48_s27 = sadd.s32 1, %s5862_s22 }
  0x1f   : > { %7585 = sst [smem:[#allocation19_spill]] %s5846_s18  ;;  %p46_p0 = scmp.ge.s32.totalorder %s45_s26, 2 }
  0x20   : > { %7586 = sst [smem:[#allocation20_spill]] %s5854_s20  ;;  %s133_s28 = sadd.s32 1, %s5846_s18 }
  0x21   : > { %7587 = sst [smem:[#allocation21_spill]] %s5858_s21  ;;  %p140_p1 = scmp.ne.s32.totalorder %s5846_s18, %s5842_s17 }
  0x22   : > { %7588 = sst [smem:[#allocation22_spill]] %s5862_s22  ;;  %p141_p2 = scmp.eq.s32.totalorder %s5866_s23, 0 }
  0x23   : > { %7589 = sst [smem:[#allocation23_spill]] %s5866_s23  ;;  %s7689_s26 = smov (%p46_p0, %s45_s26), 0 }
  0x24   : > { %7590 = sst [smem:[#allocation24_spill]] %s7689_s26  ;;  %s7691_s27 = smov (!%p46_p0, %s48_s27), %s5862_s22 }
  0x25   : > { %s130_s14 = ssub.s32 %s5858_s21, %s7689_s26  ;;  %p6023_p3 = por %p141_p2, %p140_p1 }
  0x26   : > { %p50_p4 = scmp.ge.s32.totalorder %s7691_s27, 2  ;;  %p131_p5 = scmp.eq.s32.totalorder %s130_s14, 0 }
  0x27   : > { %p146_p6 = scmp.ne.s32.totalorder %s5842_s17, %s5838_s16  ;;  %p147_p7 = scmp.eq.s32.totalorder %s6009_s24, 0 }
  0x28   : > { %s7693_s27 = smov (%p50_p4, %s7691_s27), 0  ;;  %s419_s8 = sadd.s32 1, %s5834_s15 }
  0x29   : > { %7592 = sst [smem:[#allocation25_spill]] %s7693_s27  ;;  %p6034_p8 = por %p147_p7, %p146_p6 }
  0x2a   : > { %s6032_s11 = scalar_select %p131_p5, %s5846_s18, %s133_s28  }
  0x2b   : > { %s7594_s26 = scalar_select %p6034_p8, 1, 0 }
  0x2c   : > { %7593 = sst [smem:[#allocation26_spill]] %s6032_s11  ;;  %s416_s9 = ssub.s32 %s5862_s22, %s7693_s27 }
  0x2d   : > { %p417_p9 = scmp.eq.s32.totalorder %s416_s9, 0  ;;  %p429_p10 = scmp.ne.s32.totalorder %s5834_s15, %s5830_s30 }
  0x2e   : > { %p430_p11 = scmp.eq.s32.totalorder %s6009_s24, 3  ;;  %p435_p13 = scmp.ne.s32.totalorder %s5830_s30, %s5826_s29 }
  0x2f   : > { %s6045_s14 = scalar_select %p417_p9, %s5834_s15, %s419_s8  }
  0x30   : > { %p6047_p12 = por %p430_p11, %p429_p10  ;;  %p436_p0 = scmp.eq.s32.totalorder %s4448_s25, 3 }
  0x31   : > { %7595 = sst [smem:[#allocation27_spill]] %s6045_s14  ;;  %p5118_p1 = scmp.lt.s32.totalorder %s5866_s23, 4 }
  0x32   : > { %s7596_s16 = scalar_select %p6047_p12, 1, 0 }
  0x33   : > { %s6055_s28 = sand.u32 1, %s5846_s18   ;;  %p6057_p2 = por %p436_p0, %p435_p13 }
  0x34   : > { %7597 = sst [smem:[#allocation28_spill]] %s7596_s16  ;;  %p6063_p4 = pnand %p5118_p1, %p6023_p3 }
  0x35   : > { %s7598_s11 = scalar_select %p6057_p2, 1, 0 }
  0x36   : > { %s513_s8 = sand.u32 1, %s5866_s23   ;;  %s4452_s27 = sshll.u32 %s6055_s28, 6 }
  0x37   : > { %7599 = sst [smem:[#allocation29_spill]] %s7598_s11  ;;  %s4629_s22 = sshll.u32 %s5858_s21, 10 }
  0x38   : > { %s7601_s6 = sld [smem:[#allocation53_spill]]  ;;  %s517_s18 = scalar_lea.vmem [#allocation5], %s4452_s27 }
  0x39   : > { %s524_s11 = sshll.u32 %s517_s18, 4  ;;  %s6078_s13 = scalar_lea.sflag [#allocation6], %s513_s8  ;;  %s6075_s11 = int_to_ptr.vmem [resolvable:$true] %s524_s11 }
  0x3a   : > { %p6084_p6 = pneg %p6063_p4 }
  0x3e   : > { %s6073_s25 = scalar_lea.hbm %s7601_s6, %s4629_s22  ;;  %s5621_s18 = scalar_lea.hbm %s7601_s6, 2048 }
  0x3f   : > { %s5616_s29 = scalar_lea.hbm %s6073_s25, 1024  ;;  %p5622_p10 = scmp.lt.u32.totalorder %s6073_s25, %s7601_s6 }
  0x40   : > { %p5617_p5 = scmp.ne.s32.totalorder %s6073_s25, %s5616_s29  ;;  %p5623_p11 = scmp.lt.u32.totalorder %s5621_s18, %s5616_s29 }
  0x41   : > { %p5625_p0 = scmp.lt.u32.totalorder %s5616_s29, %s6073_s25 }
  0x42   : > { %p5619_p7 = pnand %p6084_p6, %p5617_p5  ;;  %p5624_p13 = por %p5623_p11, %p5622_p10 }
  0x44   : > { %p5620_p9 = pneg %p5619_p7  ;;  %p5626_p1 = por %p5625_p0, %p5624_p13 }
  0x46   : > { %p5627_p3 = pnand %p5626_p1, %p5620_p9 }
  0x48   : > { %5630 = shalt.err (!%p5627_p3)
}
  0x49   : > { %s5631_s8 = scalar_lea.vmem %s6075_s11, 1024  ;;  %s5868_s15 = smov [#allocation5]  }
  0x4a   : > { %p5632_p5 = scmp.ne.s32.totalorder %s6075_s11, %s5631_s8  ;;  %s5636_s22 = sshll.u32 %s5868_s15, 4  ;;  %s5637_s22 = int_to_ptr.vmem [resolvable:$false] %s5636_s22 }
  0x4b   : > { %s5638_s27 = scalar_lea.vmem %s5637_s22, 2048  ;;  %p5639_p12 = scmp.lt.s32.totalorder %s6075_s11, %s5637_s22 }
  0x4c   : > { %p5634_p7 = pnand %p5632_p5, %p6084_p6  ;;  %p5640_p8 = scmp.lt.s32.totalorder %s5638_s27, %s5631_s8 }
  0x4e   : > { %p5635_p2 = pneg %p5634_p7  ;;  %p5641_p10 = por %p5640_p8, %p5639_p12 }
  0x50   : > { %p5642_p11 = pnand %p5641_p10, %p5635_p2 }
  0x52   : > { %5645 = shalt.err (!%p5642_p11)
}
  0x53   : > { %s7539_s29 = smov 64   ;;  %s7541_s18 = smov 4  }
  0x54   : > { %5107 = dma.hbm_to_vmem [thread:$0]  (!%p6063_p4), %s6073_s25, 1024, %s6075_s11, %s6078_s13, %s7539_s29, %s7539_s29, %s7541_s18  }
  0x55   : > { %p605_p8 = scmp.lt.s32.totalorder %s5866_s23, 5  ;;  %p7603_p12 = scmp.ge.s32.totalorder %s5866_s23, 1 }
  0x56   : > { %s5088_s8 = smul.u32 192, %s6055_s28  ;;  %s7605_s3 = sld [smem:[#allocation50_spill]] }
  0x57   : > { %p6114_p2 = pnand %p7603_p12, %p605_p8  ;;  %s5089_s15 = smul.u32 3072, %s5858_s21 }
  0x58   : > { %s480_s5 = scalar_lea.vmem [#allocation2], %s5088_s8  ;;  %s4630_s25 = sshll.u32 %s5858_s21, 12 }
  0x59   : > { %s7604_s14 = scalar_select %p6114_p2, 1, 0 }
  0x5a   : > { %s487_s11 = sshll.u32 %s480_s5, 4  ;;  %s477_s29 = scalar_lea.sflag [#allocation3], %s6055_s28  ;;  %s6126_s11 = int_to_ptr.vmem [resolvable:$true] %s487_s11 }
  0x5c   : > { %s6124_s7 = scalar_lea.hbm %s7605_s3, %s5089_s15  ;;  %s5651_s6 = scalar_lea.hbm %s7605_s3, 6144 }
  0x5d   : > { %s5646_s18 = scalar_lea.hbm %s6124_s7, 3072  ;;  %p5652_p0 = scmp.lt.u32.totalorder %s6124_s7, %s7605_s3 }
  0x5e   : > { %p5647_p3 = scmp.ne.s32.totalorder %s6124_s7, %s5646_s18  ;;  %p5653_p1 = scmp.lt.u32.totalorder %s5651_s6, %s5646_s18 }
  0x5f   : > { %p5655_p7 = scmp.lt.u32.totalorder %s5646_s18, %s6124_s7 }
  0x60   : > { %p5649_p9 = pnand %p5647_p3, %p6084_p6  ;;  %p5654_p5 = por %p5653_p1, %p5652_p0 }
  0x62   : > { %p5650_p13 = pneg %p5649_p9  ;;  %p5656_p10 = por %p5655_p7, %p5654_p5 }
  0x64   : > { %p5657_p11 = pnand %p5656_p10, %p5650_p13 }
  0x66   : > { %5660 = shalt.err (!%p5657_p11)
}
  0x67   : > { %s5661_s5 = scalar_lea.vmem %s6126_s11, 3072  ;;  %s5871_s23 = smov [#allocation2]  }
  0x68   : > { %p5662_p8 = scmp.ne.s32.totalorder %s6126_s11, %s5661_s5  ;;  %s5666_s8 = sshll.u32 %s5871_s23, 4  ;;  %s5667_s8 = int_to_ptr.vmem [resolvable:$false] %s5666_s8 }
  0x69   : > { %s5668_s22 = scalar_lea.vmem %s5667_s8, 6144  ;;  %p5669_p9 = scmp.lt.s32.totalorder %s6126_s11, %s5667_s8 }
  0x6a   : > { %p5664_p12 = pnand %p5662_p8, %p6084_p6  ;;  %p5670_p2 = scmp.lt.s32.totalorder %s5668_s22, %s5661_s5 }
  0x6c   : > { %p5665_p3 = pneg %p5664_p12  ;;  %p5671_p0 = por %p5670_p2, %p5669_p9 }
  0x6e   : > { %p5672_p1 = pnand %p5671_p0, %p5665_p3 }
  0x70   : > { %5675 = shalt.err (!%p5672_p1)
}
  0x71   : > { %s7606_s18 = smov 4   ;;  %s7607_s6 = smov 64  }
  0x72   : > { %5104 = dma.hbm_to_vmem [thread:$0]  (!%p6063_p4), %s6124_s7, 3072, %s6126_s11, %s477_s29, %s7607_s6, %s7607_s6, %s7606_s18  }
  0x73   : > { %s7608_s10 = sld [smem:[#allocation57_spill]]  ;;  %s7609_s23 = sshll.u32 %s6055_s28, 8 }
  0x74   : > { %s556_s8 = scalar_lea.vmem [#allocation7], %s7609_s23 }
  0x75   : > { %s563_s22 = sshll.u32 %s556_s8, 4  ;;  %s6165_s22 = int_to_ptr.vmem [resolvable:$true] %s563_s22 }
  0x79   : > { %s6161_s5 = scalar_lea.hbm %s7608_s10, %s4630_s25  ;;  %s5681_s11 = scalar_lea.hbm %s7608_s10, 8192 }
  0x7a   : > { %s5676_s3 = scalar_lea.hbm %s6161_s5, 4096  ;;  %p5682_p7 = scmp.lt.u32.totalorder %s6161_s5, %s7608_s10 }
  0x7b   : > { %p5677_p2 = scmp.ne.s32.totalorder %s6161_s5, %s5676_s3  ;;  %p5683_p10 = scmp.lt.u32.totalorder %s5681_s11, %s5676_s3 }
  0x7c   : > { %p5685_p8 = scmp.lt.u32.totalorder %s5676_s3, %s6161_s5 }
  0x7d   : > { %p5679_p13 = pnand %p5677_p2, %p6084_p6  ;;  %p5684_p11 = por %p5683_p10, %p5682_p7 }
  0x7f   : > { %p5680_p5 = pneg %p5679_p13  ;;  %p5686_p12 = por %p5685_p8, %p5684_p11 }
  0x81   : > { %p5687_p3 = pnand %p5686_p12, %p5680_p5 }
  0x83   : > { %5690 = shalt.err (!%p5687_p3)
}
  0x84   : > { %s5691_s23 = scalar_lea.vmem %s6165_s22, 4096  ;;  %s5872_s8 = smov [#allocation7]  }
  0x85   : > { %p5692_p9 = scmp.ne.s32.totalorder %s6165_s22, %s5691_s23  ;;  %s5696_s7 = sshll.u32 %s5872_s8, 4  ;;  %s5697_s7 = int_to_ptr.vmem [resolvable:$false] %s5696_s7 }
  0x86   : > { %s5698_s29 = scalar_lea.vmem %s5697_s7, 8192  ;;  %p5699_p2 = scmp.lt.s32.totalorder %s6165_s22, %s5697_s7 }
  0x87   : > { %p5694_p0 = pnand %p5692_p9, %p6084_p6  ;;  %p5700_p13 = scmp.lt.s32.totalorder %s5698_s29, %s5691_s23 }
  0x89   : > { %p5695_p1 = pneg %p5694_p0  ;;  %p5701_p7 = por %p5700_p13, %p5699_p2 }
  0x8b   : > { %p5702_p10 = pnand %p5701_p7, %p5695_p1 }
  0x8d   : > { %5705 = shalt.err (!%p5702_p10)
}
  0x8e   : > { %s5873_s3 = smov 256   ;;  %s5874_s11 = smov 16  }
  0x8f   : > { %5110 = dma.hbm_to_vmem [thread:$0]  (!%p6063_p4), %s6161_s5, 4096, %s6165_s22, %s6078_s13, %s5873_s3, %s5873_s3, %s5874_s11  }
  0x90   : > { %s7610_s12 = sld [smem:[#allocation59_spill]]  ;;  %s7611_s8 = sshll.u32 %s6055_s28, 8 }
  0x91   : > { %s584_s7 = scalar_lea.vmem [#allocation8], %s7611_s8  ;;  %s581_s10 = scalar_lea.sflag [#allocation9], %s6055_s28 }
  0x92   : > { %s591_s29 = sshll.u32 %s584_s7, 4  ;;  %s6198_s29 = int_to_ptr.vmem [resolvable:$true] %s591_s29 }
  0x96   : > { %s6194_s23 = scalar_lea.hbm %s7610_s12, %s4630_s25  ;;  %s5711_s25 = scalar_lea.hbm %s7610_s12, 8192 }
  0x97   : > { %s5706_s4 = scalar_lea.hbm %s6194_s23, 4096  ;;  %p5712_p12 = scmp.lt.u32.totalorder %s6194_s23, %s7610_s12 }
  0x98   : > { %p5707_p5 = scmp.ne.s32.totalorder %s6194_s23, %s5706_s4  ;;  %p5713_p3 = scmp.lt.u32.totalorder %s5711_s25, %s5706_s4 }
  0x99   : > { %p5715_p0 = scmp.lt.u32.totalorder %s5706_s4, %s6194_s23 }
  0x9a   : > { %p5709_p11 = pnand %p5707_p5, %p6084_p6  ;;  %p5714_p9 = por %p5713_p3, %p5712_p12 }
  0x9c   : > { %p5710_p8 = pneg %p5709_p11  ;;  %p5716_p1 = por %p5715_p0, %p5714_p9 }
  0x9e   : > { %p5717_p2 = pnand %p5716_p1, %p5710_p8 }
  0xa0   : > { %5720 = shalt.err (!%p5717_p2)
}
  0xa1   : > { %s5721_s11 = scalar_lea.vmem %s6198_s29, 4096  ;;  %s5875_s15 = smov [#allocation8]  }
  0xa2   : > { %p5722_p13 = scmp.ne.s32.totalorder %s6198_s29, %s5721_s11  ;;  %s5726_s27 = sshll.u32 %s5875_s15, 4  ;;  %s5727_s27 = int_to_ptr.vmem [resolvable:$false] %s5726_s27 }
  0xa3   : > { %s5728_s8 = scalar_lea.vmem %s5727_s27, 8192  ;;  %p5729_p5 = scmp.lt.s32.totalorder %s6198_s29, %s5727_s27 }
  0xa4   : > { %p5724_p7 = pnand %p5722_p13, %p6084_p6  ;;  %p5730_p11 = scmp.lt.s32.totalorder %s5728_s8, %s5721_s11 }
  0xa6   : > { %p5725_p10 = pneg %p5724_p7  ;;  %p5731_p12 = por %p5730_p11, %p5729_p5 }
  0xa8   : > { %p5732_p3 = pnand %p5731_p12, %p5725_p10 }
  0xaa   : > { %5735 = shalt.err (!%p5732_p3)
}
  0xab   : > { %5113 = dma.hbm_to_vmem [thread:$0]  (!%p6063_p4), %s6194_s23, 4096, %s6198_s29, %s581_s10, %s7607_s6, %s7607_s6, %s7606_s18  }
  0xac   : > { %p7612_p6 = scmp.ne.s32.totalorder %s7604_s14, 0 }
  0xae   : > { %609 = sbr.rel (%p7612_p6) target bundleno = 3195 (0xc7b), region = 76 }
  0xb5   : > { %s611_s4 = sand.u32 1, %s5842_s17   ;;  %p7613_p8 = scmp.ne.s32.totalorder %s7594_s26, 0 }
  0xb6   : > { %s5090_s16 = smul.u32 192, %s611_s4  ;;  %s612_s7 = scalar_lea.sflag [#allocation3], %s611_s4 }
  0xb8   : > { %s6230_s13 = scalar_lea.vmem [#allocation2], %s5090_s16 }
  0xb9   : > { %5809 = dma.done.wait (%p7613_p8), %s612_s7, 3072  }
  0xba   : > { %5811 = vsyncadd (%p7613_p8), %s612_s7, 4294964224  ;;  %s620_s28 = sand.u32 1, %s6009_s24   ;;  %s4462_s9 = sshll.u32 %s611_s4, 6 }
  0xbb   : > { %s621_s10 = scalar_lea.sflag [#allocation6], %s620_s28  ;;  %s6237_s18 = scalar_lea.vmem [#allocation5], %s4462_s9 }
  0xbc   : > { %5813 = dma.done.wait (%p7613_p8), %s621_s10, 5120  }
  0xbd   : > { %5815 = vsyncadd (%p7613_p8), %s621_s10, 4294962176  ;;  %s4463_s14 = sshll.u32 %s611_s4, 8  ;;  %s639_s23 = scalar_lea.sflag [#allocation9], %s611_s4 }
  0xbe   : > { %s6243_s6 = scalar_lea.vmem [#allocation7], %s4463_s14  ;;  %s6245_s29 = scalar_lea.vmem [#allocation8], %s4463_s14 }
  0xbf   : > { %7614 = sst [smem:[#allocation30_spill]] %s6243_s6 }
  0xc0   : > { %7615 = sst [smem:[#allocation31_spill]] %s6245_s29 }
  0xc1   : > { %5817 = dma.done.wait (%p7613_p8), %s639_s23, 4096  }
  0xc2   : > { %5819 = vsyncadd (%p7613_p8), %s639_s23, 4294963200  ;;  %s7545_s24 = sand.u32 1, %s5830_s30   ;;  %p739_p4 = scmp.lt.s32.totalorder %s5854_s20, 1 }
  0xc3   : > { %s4465_s5 = sshll.u32 %s7545_s24, 6  ;;  %p744_p9 = scmp.lt.s32.totalorder %s5850_s19, 1 }
  0xc4   : > { %s740_s25 = scalar_select %p739_p4, %s5854_s20, 1 }
  0xc5   : > { %s6258_s22 = scalar_select %p744_p9, %s5850_s19, 1 }
  0xc6   : > { %s4632_s26 = sshll.u32 %s740_s25, 6  ;;  %s7616_s0 = sld [smem:[#allocation49_spill]] }
  0xc7   : > { %s4633_s9 = sshll.u32 %s6258_s22, 5  ;;  %s7617_s23 = sld [smem:[#allocation51_spill]] }
  0xc8   : > { %s7618_s21 = sld [smem:[#allocation52_spill]]  ;;  %s7619_s11 = sld [smem:[#allocation54_spill]] }
  0xc9   : > { %s7621_s30 = sld [smem:[#allocation56_spill]]  ;;  %s4472_s10 = sshll.u32 %s6258_s22, 2 }
  0xca   : > { %s7622_s29 = sld [smem:[#allocation58_spill]]  ;;  %p4473_p0 = scmp.ne.s32.totalorder %s5850_s19, 0 }
  0xcc   : > { %s743_s15 = scalar_lea.vmem %s7616_s0, %s4632_s26  ;;  %s7620_s0 = sld [smem:[#allocation55_spill]] }
  0xcd   : > { %s6275_s24 = scalar_lea.vmem %s7617_s23, %s4633_s9  ;;  %s6304_s26 = scalar_lea.vmem [#allocation10], %s4465_s5  ;;  %v781_v0 = vld [vmem:[%s743_s15] sm:$0xff] (!%p4473_p0)  ;;  %v782_v1 = vld [vmem:[%s743_s15 + $0x8] sm:$0xff] (!%p4473_p0)  ;;  %v783_v2 = vld [vmem:[%s743_s15 + $0x10] sm:$0xff] (!%p4473_p0) }
  0xce   : > { %s6280_s17 = scalar_lea.vmem %s7618_s21, %s4633_s9  ;;  %s762_s27 = scalar_lea.vmem %s7619_s11, %s6258_s22  ;;  %789 = vst [vmem:[%s6304_s26] sm:$0xff] (!%p4473_p0), %v781_v0  ;;  %790 = vst [vmem:[%s6304_s26 + $0x8] sm:$0xff] (!%p4473_p0), %v782_v1  ;;  %v784_v3 = vld [vmem:[%s743_s15 + $0x18] sm:$0xff] (!%p4473_p0)  ;;  %v785_v4 = vld [vmem:[%s743_s15 + $0x20] sm:$0xff] (!%p4473_p0) }
  0xcf   : > { %s768_s20 = scalar_lea.vmem %s7621_s30, %s6258_s22  ;;  %s7623_s9 = sld [smem:[#allocation60_spill]]  ;;  %791 = vst [vmem:[%s6304_s26 + $0x10] sm:$0xff] (!%p4473_p0), %v783_v2  ;;  %v786_v5 = vld [vmem:[%s743_s15 + $0x28] sm:$0xff] (!%p4473_p0)  ;;  %792 = vst [vmem:[%s6304_s26 + $0x18] sm:$0xff] (!%p4473_p0), %v784_v3  ;;  %v787_v6 = vld [vmem:[%s743_s15 + $0x30] sm:$0xff] (!%p4473_p0) }
  0xd0   : > { %s6298_s6 = scalar_lea.vmem %s7622_s29, %s4472_s10  ;;  %780 = sbr.rel (%p4473_p0) target bundleno = 215 (0xd7), region = 96  ;;  %793 = vst [vmem:[%s6304_s26 + $0x20] sm:$0xff] (!%p4473_p0), %v785_v4  ;;  %794 = vst [vmem:[%s6304_s26 + $0x28] sm:$0xff] (!%p4473_p0), %v786_v5  ;;  %v788_v7 = vld [vmem:[%s743_s15 + $0x38] sm:$0xff] (!%p4473_p0) }
  0xd1   : > { %795 = vst [vmem:[%s6304_s26 + $0x30] sm:$0xff] (!%p4473_p0), %v787_v6  ;;  %796 = vst [vmem:[%s6304_s26 + $0x38] sm:$0xff] (!%p4473_p0), %v788_v7 }
  0xd2   : > { %s765_s16 = scalar_lea.vmem %s7620_s0, %s6258_s22 }
  0xd5   : > { %s775_s25 = scalar_lea.vmem %s7623_s9, %s6258_s22 }
  0xd7 PF: > { %v797_v8 = vld [vmem:[%s6304_s26] sm:$0xff]  ;;  %v799_v9 = vld [vmem:[%s6304_s26 + $0x10] sm:$0xff]  ;;  %v798_v10 = vld [vmem:[%s6304_s26 + $0x8] sm:$0xff]  ;;  %s7624_s19 = scalar_lea.vmem %s7513_s1, %s6258_s22  ;;  %s7625_s15 = scalar_lea.vmem %s7514_s2, %s6258_s22  ;;  %vm1421_vm0 = vcmask 523264   ;;  %vm1856_vm1 = vcmask 261120   ;;  %vm2165_vm2 = vcmask 130048  }
  0xd8   : > { %807 = vadd.xlane.f32.xlu0 %v797_v8  ;;  %811 = vadd.xlane.f32.xlu1 %v799_v9  ;;  %v800_v11 = vld [vmem:[%s6304_s26 + $0x18] sm:$0xff]  ;;  %v801_v12 = vld [vmem:[%s6304_s26 + $0x20] sm:$0xff]  ;;  %v802_v13 = vld [vmem:[%s6304_s26 + $0x28] sm:$0xff]  ;;  %s7666_s22 = sld [smem:[#allocation20_spill]]  ;;  %s7667_s10 = sld [smem:[#allocation16_spill]] }
  0xd9   : > { %v803_v14 = vld [vmem:[%s6304_s26 + $0x30] sm:$0xff]  ;;  %v804_v15 = vld [vmem:[%s6304_s26 + $0x38] sm:$0xff]  ;;  %v4474_v5 = vld [vmem:[%s7624_s19] ss:$0 sm:$0xff]  ;;  %s7668_s14 = sld [smem:[#allocation28_spill]]  ;;  %s4195_s12 = sshll.u32 %s6304_s26, 4  ;;  %s7444_s12 = int_to_ptr.vmem [resolvable:$true] %s4195_s12 }
  0xda   : > { %s5736_s29 = scalar_lea.vmem %s7444_s12, 1024  ;;  %s5877_s5 = smov [#allocation10]  }
  0xdb   : > { %p5737_p1 = scmp.ne.s32.totalorder %s7444_s12, %s5736_s29 }
  0xdc   : > { %809 = vadd.xlane.f32.xlu0 %v798_v10  ;;  %813 = vadd.xlane.f32.xlu1 %v800_v11 }
  0xde   : > { %s4635_s23 = sshll.u32 %s7666_s22, 10  ;;  %s7672_s30 = sand.u32 1, %s7667_s10  }
  0xdf   : > { %s7451_s19 = scalar_lea.sflag [#allocation4], %s7672_s30  ;;  %p7673_p2 = scmp.ne.s32.totalorder %s7668_s14, 0 }
  0xe0   : > { %815 = vadd.xlane.f32.xlu0 %v801_v12  ;;  %817 = vadd.xlane.f32.xlu1 %v802_v13 }
  0xe1   : > { %p5738_p13 = pnand %p5737_p1, %p7673_p2 }
  0xe3   : > { %p5739_p7 = pneg %p5738_p13 }
  0xe4   : > { %819 = vadd.xlane.f32.xlu0 %v803_v14  ;;  %821 = vadd.xlane.f32.xlu1 %v804_v15 }
 0x165   : > { %v808_v16 = vpop.xlane.xlu0 %807  ;;  %v812_v17 = vpop.xlane.xlu1 %811 }
 0x166   : > { %v824_v18 = vmul.f32 0.0078125, %v808_v16  ;;  %v826_v19 = vmul.f32 0.0078125, %v812_v17 }
 0x168   : > { %v6323_v20 = vsub.f32 %v797_v8, %v824_v18  ;;  %v6325_v21 = vsub.f32 %v799_v9, %v826_v19  ;;  %v4475_v8 = vld [vmem:[%s7625_s15] ss:$0 sm:$0xff]  ;;  %s5740_s15 = sshll.u32 %s5877_s5, 4  ;;  %s5741_s15 = int_to_ptr.vmem [resolvable:$false] %s5740_s15 }
 0x169   : > { %v810_v22 = vpop.xlane.xlu0 %809  ;;  %v814_v23 = vpop.xlane.xlu1 %813  ;;  %p5743_p10 = scmp.lt.s32.totalorder %s7444_s12, %s5741_s15 }
 0x16a   : > { %v825_v24 = vmul.f32 0.0078125, %v810_v22  ;;  %v840_v25 = vmul.f32 %v6323_v20, %v6323_v20  ;;  %v827_v26 = vmul.f32 0.0078125, %v814_v23  ;;  %v842_v27 = vmul.f32 %v6325_v21, %v6325_v21 }
 0x16c   : > { %848 = vadd.xlane.f32.xlu0 %v840_v25  ;;  %v6331_v28 = vsub.f32 %v798_v10, %v825_v24  ;;  %v6333_v29 = vsub.f32 %v800_v11, %v827_v26 }
 0x16d   : > { %v816_v30 = vpop.xlane.xlu0 %815  ;;  %v818_v31 = vpop.xlane.xlu1 %817 }
 0x16e   : > { %v828_v32 = vmul.f32 0.0078125, %v816_v30  ;;  %v841_v33 = vmul.f32 %v6331_v28, %v6331_v28  ;;  %v829_v34 = vmul.f32 0.0078125, %v818_v31  ;;  %v843_v35 = vmul.f32 %v6333_v29, %v6333_v29 }
 0x170   : > { %852 = vadd.xlane.f32.xlu0 %v842_v27  ;;  %850 = vadd.xlane.f32.xlu1 %v841_v33  ;;  %v6339_v36 = vsub.f32 %v801_v12, %v828_v32  ;;  %v6341_v37 = vsub.f32 %v802_v13, %v829_v34 }
 0x171   : > { %v820_v38 = vpop.xlane.xlu0 %819  ;;  %v822_v39 = vpop.xlane.xlu1 %821 }
 0x172   : > { %v830_v40 = vmul.f32 0.0078125, %v820_v38  ;;  %v844_v41 = vmul.f32 %v6339_v36, %v6339_v36  ;;  %v831_v42 = vmul.f32 0.0078125, %v822_v39  ;;  %v845_v43 = vmul.f32 %v6341_v37, %v6341_v37 }
 0x174   : > { %854 = vadd.xlane.f32.xlu1 %v843_v35  ;;  %856 = vadd.xlane.f32.xlu0 %v844_v41  ;;  %v6347_v44 = vsub.f32 %v803_v14, %v830_v40  ;;  %v6349_v45 = vsub.f32 %v804_v15, %v831_v42  ;;  %v5264_v42 = vld [vmem:[%s6230_s13] sm:$0xff]  }
 0x175   : > { %4848 = vmatprep.mubr.bf16.mxu0 %v5264_v42 }
 0x176   : > { %v846_v46 = vmul.f32 %v6347_v44, %v6347_v44  ;;  %v847_v47 = vmul.f32 %v6349_v45, %v6349_v45 }
 0x178   : > { %858 = vadd.xlane.f32.xlu1 %v845_v43  ;;  %860 = vadd.xlane.f32.xlu0 %v846_v46  ;;  %v5280_v43 = vld [vmem:[%s6275_s24] sm:$0xff]   ;;  %v5281_v46 = vld [vmem:[%s6275_s24 + $0x8] sm:$0xff]  }
 0x179   : > { %5064 = vmatprep.subr.bf16.mxu1 %v5280_v43 }
 0x17a   : > { %5068 = vmatpush3.bf16.msra.mxu1 %v5280_v43 }
 0x17b   : > { %5065 = vmatprep.subr.bf16.mxu1 %v5281_v46 }
 0x17c   : > { %862 = vadd.xlane.f32.xlu1 %v847_v47 }
 0x17e   : > { %5069 = vmatpush3.bf16.msra.mxu1 %v5281_v46 }
 0x1f9   : > { %v849_v48 = vpop.xlane.xlu0 %848 }
 0x1fa   : > { %v864_v49 = vmul.f32 0.0078125, %v849_v48 }
 0x1fc   : > { %v872_v50 = vadd.f32 1e-05, %v864_v49 }
 0x1fd   : > { %v851_v51 = vpop.xlane.xlu1 %850  ;;  %v853_v52 = vpop.xlane.xlu0 %852 }
 0x1fe   : > { %5384 = vrsqrt.f32 %v872_v50  ;;  %v865_v53 = vmul.f32 0.0078125, %v851_v51  ;;  %v866_v54 = vmul.f32 0.0078125, %v853_v52 }
 0x200   : > { %v873_v55 = vadd.f32 1e-05, %v865_v53  ;;  %v874_v56 = vadd.f32 1e-05, %v866_v54 }
 0x201   : > { %v855_v57 = vpop.xlane.xlu1 %854  ;;  %v857_v58 = vpop.xlane.xlu0 %856 }
 0x202   : > { %5386 = vrsqrt.f32 %v873_v55  ;;  %v867_v59 = vmul.f32 0.0078125, %v855_v57  ;;  %v868_v60 = vmul.f32 0.0078125, %v857_v58 }
 0x203   : > { %5388 = vrsqrt.f32 %v874_v56 }
 0x204   : > { %v875_v61 = vadd.f32 1e-05, %v867_v59  ;;  %v876_v62 = vadd.f32 1e-05, %v868_v60 }
 0x205   : > { %v859_v63 = vpop.xlane.xlu1 %858  ;;  %v861_v0 = vpop.xlane.xlu0 %860 }
 0x206   : > { %5390 = vrsqrt.f32 %v875_v61  ;;  %v869_v1 = vmul.f32 0.0078125, %v859_v63  ;;  %v870_v4 = vmul.f32 0.0078125, %v861_v0 }
 0x207   : > { %5392 = vrsqrt.f32 %v876_v62 }
 0x208   : > { %v5385_v2 = vpop.eup %5384  ;;  %v877_v3 = vadd.f32 1e-05, %v869_v1  ;;  %v878_v11 = vadd.f32 1e-05, %v870_v4 }
 0x209   : > { %v863_v6 = vpop.xlane.xlu1 %862  ;;  %v888_v7 = vmul.f32 %v5385_v2, %v6323_v20 }
 0x20a   : > { %5394 = vrsqrt.f32 %v877_v3  ;;  %v871_v12 = vmul.f32 0.0078125, %v863_v6  ;;  %v5266_v6 = vld [vmem:[%s6230_s13 + $0x10] sm:$0xff]  }
 0x20b   : > { %v902_v9 = vmul.f32 %v4474_v5, %v888_v7  ;;  %5396 = vrsqrt.f32 %v878_v11  ;;  %v5267_v7 = vld [vmem:[%s6230_s13 + $0x18] sm:$0xff]  }
 0x20c   : > { %v5387_v10 = vpop.eup %5386  ;;  %v879_v19 = vadd.f32 1e-05, %v871_v12  ;;  %v5271_v11 = vld [vmem:[%s6230_s13 + $0x38] sm:$0xff]   ;;  %v5272_v12 = vld [vmem:[%s6230_s13 + $0x40] sm:$0xff]  }
 0x20d   : > { %v5389_v13 = vpop.eup %5388  ;;  %v916_v14 = vadd.f32 %v4475_v8, %v902_v9  ;;  %v889_v15 = vmul.f32 %v5387_v10, %v6331_v28  ;;  %v5269_v9 = vld [vmem:[%s6230_s13 + $0x28] sm:$0xff]   ;;  %v5270_v10 = vld [vmem:[%s6230_s13 + $0x30] sm:$0xff]  }
 0x20e   : > { %v890_v16 = vmul.f32 %v5389_v13, %v6325_v21  ;;  %5398 = vrsqrt.f32 %v879_v19  ;;  %v5273_v13 = vld [vmem:[%s6230_s13 + $0x48] sm:$0xff]   ;;  %v5279_v19 = vld [vmem:[%s6230_s13 + $0x78] sm:$0xff]  }
 0x20f   : > { %924 = vxpose.xlu0.b32.start [1/8] (short) %v916_v14, 128  ;;  %v903_v17 = vmul.f32 %v4474_v5, %v889_v15  ;;  %v5274_v14 = vld [vmem:[%s6230_s13 + $0x50] sm:$0xff]   ;;  %v5275_v15 = vld [vmem:[%s6230_s13 + $0x58] sm:$0xff]  }
 0x210   : > { %v5391_v18 = vpop.eup %5390  ;;  %v904_v22 = vmul.f32 %v4474_v5, %v890_v16  ;;  %v5276_v16 = vld [vmem:[%s6230_s13 + $0x60] sm:$0xff]  }
 0x211   : > { %v917_v20 = vadd.f32 %v4475_v8, %v903_v17  ;;  %v891_v23 = vmul.f32 %v5391_v18, %v6333_v29  ;;  %v5393_v24 = vpop.eup %5392  ;;  %v5277_v17 = vld [vmem:[%s6230_s13 + $0x68] sm:$0xff]   ;;  %v5278_v18 = vld [vmem:[%s6230_s13 + $0x70] sm:$0xff]  }
 0x212   : > { %v918_v25 = vadd.f32 %v4475_v8, %v904_v22  ;;  %v892_v27 = vmul.f32 %v5393_v24, %v6339_v36  ;;  %v5283_v22 = vld [vmem:[%s6230_s13 + $0x88] sm:$0xff]   ;;  %v5285_v24 = vld [vmem:[%s6230_s13 + $0x98] sm:$0xff]  }
 0x213   : > { %925 = vxpose.xlu0.b32.cont [2/8] (short) %v917_v20, 128  ;;  %v905_v26 = vmul.f32 %v4474_v5, %v891_v23  ;;  %v5282_v20 = vld [vmem:[%s6230_s13 + $0x80] sm:$0xff]   ;;  %v5284_v23 = vld [vmem:[%s6230_s13 + $0x90] sm:$0xff]  }
 0x214   : > { %v5395_v30 = vpop.eup %5394  ;;  %v906_v21 = vmul.f32 %v4474_v5, %v892_v27  ;;  %v5287_v27 = vld [vmem:[%s6275_s24 + $0x10] sm:$0xff]  }
 0x215   : > { %v919_v28 = vadd.f32 %v4475_v8, %v905_v26  ;;  %v893_v31 = vmul.f32 %v5395_v30, %v6341_v37  ;;  %v5397_v32 = vpop.eup %5396  ;;  %v5288_v26 = vld [vmem:[%s6230_s13 + $0xa8] sm:$0xff]   ;;  %v5289_v30 = vld [vmem:[%s6230_s13 + $0xb0] sm:$0xff]   ;;  %5066 = vmatprep.subr.bf16.mxu1 %v5287_v27 }
 0x216   : > { %v920_v33 = vadd.f32 %v4475_v8, %v906_v21  ;;  %v894_v29 = vmul.f32 %v5397_v32, %v6347_v44  ;;  %5070 = vmatpush3.bf16.msra.mxu1 %v5287_v27  ;;  %v5291_v21 = vld [vmem:[%s6275_s24 + $0x18] sm:$0xff]   ;;  %s7633_s24 = sld [smem:[#allocation30_spill]] }
 0x217   : > { %926 = vxpose.xlu0.b32.cont [3/8] (short) %v918_v25, 128  ;;  %v907_v34 = vmul.f32 %v4474_v5, %v893_v31  ;;  %v5286_v25 = vld [vmem:[%s6230_s13 + $0xa0] sm:$0xff]   ;;  %5067 = vmatprep.subr.bf16.mxu1 %v5291_v21 }
 0x218   : > { %v5399_v35 = vpop.eup %5398  ;;  %v908_v39 = vmul.f32 %v4474_v5, %v894_v29  ;;  %v5292_v31 = vld [vmem:[%s6280_s17] sm:$0xff]  }
 0x219   : > { %v921_v38 = vadd.f32 %v4475_v8, %v907_v34  ;;  %v895_v36 = vmul.f32 %v5399_v35, %v6349_v45 }
 0x21a   : > { %v922_v40 = vadd.f32 %v4475_v8, %v908_v39  ;;  %5071 = vmatpush3.bf16.msra.mxu1 %v5291_v21 }
 0x21b   : > { %927 = vxpose.xlu0.b32.cont [4/8] (short) %v919_v28, 128  ;;  %v909_v41 = vmul.f32 %v4474_v5, %v895_v36  ;;  %v5265_v5 = vld [vmem:[%s6230_s13 + $0x8] sm:$0xff]   ;;  %v5290_v28 = vld [vmem:[%s6230_s13 + $0xb8] sm:$0xff]   ;;  %4920 = vmatprep.subr.bf16.mxu1 %v5292_v31 }
 0x21d   : > { %v923_v37 = vadd.f32 %v4475_v8, %v909_v41  ;;  %v5268_v8 = vld [vmem:[%s6230_s13 + $0x20] sm:$0xff]  }
 0x21f   : > { %928 = vxpose.xlu0.b32.cont [5/8] (short) %v920_v33, 128 }
 0x223   : > { %929 = vxpose.xlu0.b32.cont [6/8] (short) %v921_v38, 128 }
 0x227   : > { %930 = vxpose.xlu0.b32.cont [7/8] (short) %v922_v40, 128 }
 0x22b   : > { %931 = vxpose.xlu0.b32.end [8/8] (short) %v923_v37, 128 }
 0x28f   : > { %v940_v44 = vpop.trf.xlu0 }
 0x293   : > { %v941_v47 = vpop.trf.xlu0 }
 0x294   : > { %v956_v48 = vpack.c.bf16 %v941_v47, %v940_v44 }
 0x296   : > { %4832 = vmatprep.subr.bf16.mxu0 %v956_v48 }
 0x297   : > { %4833 = vmatpush3.bf16.msra.mxu0 %v956_v48  ;;  %v942_v45 = vpop.trf.xlu0 }
 0x29b   : > { %v943_v49 = vpop.trf.xlu0 }
 0x29c   : > { %v957_v50 = vpack.c.bf16 %v943_v49, %v942_v45 }
 0x29e   : > { %4834 = vmatprep.subr.bf16.mxu0 %v957_v50 }
 0x29f   : > { %4835 = vmatpush3.bf16.msra.mxu0 %v957_v50  ;;  %v944_v51 = vpop.trf.xlu0 }
 0x2a3   : > { %v945_v52 = vpop.trf.xlu0 }
 0x2a4   : > { %v958_v53 = vpack.c.bf16 %v945_v52, %v944_v51 }
 0x2a6   : > { %4836 = vmatprep.subr.bf16.mxu0 %v958_v53 }
 0x2a7   : > { %4837 = vmatpush3.bf16.msra.mxu0 %v958_v53  ;;  %v946_v54 = vpop.trf.xlu0 }
 0x2ab   : > { %v947_v55 = vpop.trf.xlu0 }
 0x2ac   : > { %v959_v56 = vpack.c.bf16 %v947_v55, %v946_v54 }
 0x2ae   : > { %4838 = vmatprep.subr.bf16.mxu0 %v959_v56 }
 0x2af   : > { %4839 = vmatpush3.bf16.msra.mxu0 %v959_v56  ;;  %v948_v57 = vpop.trf.xlu0 }
 0x2b3   : > { %v949_v58 = vpop.trf.xlu0 }
 0x2b4   : > { %v960_v59 = vpack.c.bf16 %v949_v58, %v948_v57 }
 0x2b6   : > { %4840 = vmatprep.subr.bf16.mxu0 %v960_v59 }
 0x2b7   : > { %4841 = vmatpush3.bf16.msra.mxu0 %v960_v59  ;;  %v950_v60 = vpop.trf.xlu0 }
 0x2bb   : > { %v951_v61 = vpop.trf.xlu0 }
 0x2bc   : > { %v961_v62 = vpack.c.bf16 %v951_v61, %v950_v60 }
 0x2be   : > { %4842 = vmatprep.subr.bf16.mxu0 %v961_v62 }
 0x2bf   : > { %4843 = vmatpush3.bf16.msra.mxu0 %v961_v62  ;;  %v952_v63 = vpop.trf.xlu0 }
 0x2c3   : > { %v953_v0 = vpop.trf.xlu0 }
 0x2c4   : > { %v962_v1 = vpack.c.bf16 %v953_v0, %v952_v63  ;;  %v5293_v63 = vld [vmem:[%s6280_s17 + $0x8] sm:$0xff]  }
 0x2c6   : > { %4844 = vmatprep.subr.bf16.mxu0 %v962_v1 }
 0x2c7   : > { %4845 = vmatpush3.bf16.msra.mxu0 %v962_v1  ;;  %v954_v2 = vpop.trf.xlu0 }
 0x2cb   : > { %v955_v3 = vpop.trf.xlu0 }
 0x2cc   : > { %v963_v4 = vpack.c.bf16 %v955_v3, %v954_v2  ;;  %v5294_v2 = vld [vmem:[%s6280_s17 + $0x10] sm:$0xff]  }
 0x2ce   : > { %4846 = vmatprep.subr.bf16.mxu0 %v963_v4 }
 0x2cf   : > { %4847 = vmatpush3.bf16.msra.mxu0 %v963_v4 }
 0x2d0   : > { %4896 = vmatprep.subr.bf16.mxu0 %v5280_v43 }
 0x2d2   : > { %4849 = vmatmul.mubr.bf16.vlgmr.msra.gmra.mrb[0].mxu0 %v5265_v5 }
 0x2d3   : > { %4852 = vmatprep.mubr.bf16.mxu0 %v5266_v6  ;;  %4897 = vmatpush3.bf16.msra.mxu0 %v5280_v43 }
 0x2d4   : > { %4898 = vmatprep.subr.bf16.mxu0 %v5281_v46 }
 0x2d7   : > { %4899 = vmatpush3.bf16.msra.mxu0 %v5281_v46 }
 0x2d8   : > { %4900 = vmatprep.subr.bf16.mxu0 %v5287_v27 }
 0x2da   : > { %4853 = vmatmul.mubr.bf16.gmra.mrb[4].mxu0 %v5267_v7  ;;  %v5295_v7 = vld [vmem:[%s6280_s17 + $0x18] sm:$0xff]   ;;  %s5742_s17 = scalar_lea.vmem %s5741_s15, 2048 }
 0x2db   : > { %4856 = vmatprep.mubr.bf16.mxu0 %v5268_v8  ;;  %4901 = vmatpush3.bf16.msra.mxu0 %v5287_v27  ;;  %p5744_p5 = scmp.lt.s32.totalorder %s5742_s17, %s5736_s29 }
 0x2dc   : > { %4902 = vmatprep.subr.bf16.mxu0 %v5291_v21 }
 0x2dd   : > { %p5745_p11 = por %p5744_p5, %p5743_p10 }
 0x2df   : > { %4903 = vmatpush3.bf16.msra.mxu0 %v5291_v21  ;;  %p5746_p12 = pnand %p5745_p11, %p5739_p7 }
 0x2e2   : > { %4857 = vmatmul.mubr.bf16.gmra.mrb[8].mxu0 %v5269_v9 }
 0x2e3   : > { %4860 = vmatprep.mubr.bf16.mxu0 %v5270_v10 }
 0x2ea   : > { %4861 = vmatmul.mubr.bf16.gmra.mrb[12].mxu0 %v5271_v11 }
 0x2eb   : > { %4864 = vmatprep.mubr.bf16.mxu0 %v5272_v12 }
 0x2f2   : > { %4865 = vmatmul.mubr.bf16.gmra.mrb[16].mxu0 %v5273_v13 }
 0x2f3   : > { %4868 = vmatprep.mubr.bf16.mxu0 %v5274_v14 }
 0x2fa   : > { %4869 = vmatmul.mubr.bf16.gmra.mrb[20].mxu0 %v5275_v15 }
 0x2fb   : > { %4872 = vmatprep.mubr.bf16.mxu0 %v5276_v16 }
 0x302   : > { %4873 = vmatmul.mubr.bf16.gmra.mrb[24].mxu0 %v5277_v17 }
 0x303   : > { %4876 = vmatprep.mubr.bf16.mxu0 %v5278_v18 }
 0x30a   : > { %4877 = vmatmul.mubr.bf16.gmra.mrb[28].mxu0 %v5279_v19 }
 0x30b   : > { %4880 = vmatprep.mubr.bf16.mxu0 %v5282_v20 }
 0x312   : > { %4881 = vmatmul.mubr.bf16.gmra.mrb[32].mxu0 %v5283_v22 }
 0x313   : > { %4884 = vmatprep.mubr.bf16.mxu0 %v5284_v23 }
 0x31a   : > { %4885 = vmatmul.mubr.bf16.gmra.mrb[36].mxu0 %v5285_v24 }
 0x31b   : > { %4888 = vmatprep.mubr.bf16.mxu0 %v5286_v25 }
 0x322   : > { %4889 = vmatmul.mubr.bf16.gmra.mrb[40].mxu0 %v5288_v26 }
 0x323   : > { %4892 = vmatprep.mubr.bf16.mxu0 %v5289_v30 }
 0x32a   : > { %4893 = vmatmul.mubr.bf16.gmra.mrb[44].mxu0 %v5290_v28 }
 0x3a5   : > { %v4850_v32 = vpop.f32.mrb[0].mxu0 }
 0x3a6   : > { %v1190_v33 = vpop.f32.mrb[1].mxu0 }
 0x3a7   : > { %1704 = vxpose.xlu1.b32.start [1/4] (short) (narrow) %v1190_v33, 64  ;;  %v4851_v34 = vpop.f32.mrb[2].mxu0 }
 0x3a8   : > { %v1193_v29 = vpop.f32.mrb[3].mxu0 }
 0x3ab   : > { %1705 = vxpose.xlu1.b32.cont [2/4] (short) (narrow) %v1193_v29, 64 }
 0x3ad   : > { %v4854_v35 = vpop.f32.mrb[4].mxu0 }
 0x3ae   : > { %v1206_v38 = vpop.f32.mrb[5].mxu0 }
 0x3af   : > { %1706 = vxpose.xlu1.b32.cont [3/4] (short) (narrow) %v4850_v32, 64  ;;  %v4855_v39 = vpop.f32.mrb[6].mxu0 }
 0x3b0   : > { %v1209_v36 = vpop.f32.mrb[7].mxu0 }
 0x3b3   : > { %1707 = vxpose.xlu1.b32.end [4/4] (short) (narrow) %v4851_v34, 64 }
 0x3b5   : > { %v4858_v40 = vpop.f32.mrb[8].mxu0 }
 0x3b6   : > { %v1222_v41 = vpop.f32.mrb[9].mxu0 }
 0x3b7   : > { %v4859_v37 = vpop.f32.mrb[10].mxu0 }
 0x3b8   : > { %v1225_v42 = vpop.f32.mrb[11].mxu0 }
 0x3bd   : > { %v4862_v43 = vpop.f32.mrb[12].mxu0 }
 0x3be   : > { %v5220_v46 = vpack.i.bf16 %v4862_v43, %v4858_v40  ;;  %v1238_v44 = vpop.f32.mrb[13].mxu0 }
 0x3bf   : > { %v5216_v47 = vpack.i.bf16 %v1238_v44, %v1222_v41  ;;  %v4863_v48 = vpop.f32.mrb[14].mxu0 }
 0x3c0   : > { %v5222_v45 = vpack.i.bf16 %v4863_v48, %v4859_v37  ;;  %v1241_v49 = vpop.f32.mrb[15].mxu0 }
 0x3c1   : > { %v5218_v50 = vpack.i.bf16 %v1241_v49, %v1225_v42  ;;  %5217 = vxpose.xlu0.b32.start [1/4] (short) (narrow) %v5216_v47, 64 }
 0x3c4   : > { %1736 = vxpose.xlu1.b32.start [1/4] (short) (narrow) %v1206_v38, 64 }
 0x3c5   : > { %5219 = vxpose.xlu0.b32.cont [2/4] (short) (narrow) %v5218_v50, 64  ;;  %v4866_v51 = vpop.f32.mrb[16].mxu0 }
 0x3c6   : > { %v1254_v52 = vpop.f32.mrb[17].mxu0 }
 0x3c7   : > { %v4867_v53 = vpop.f32.mrb[18].mxu0 }
 0x3c8   : > { %v1382_v54 = vpack.c.bf16 %v4867_v53, %v4866_v51  ;;  %1737 = vxpose.xlu1.b32.cont [2/4] (short) (narrow) %v1209_v36, 64  ;;  %v1257_v55 = vpop.f32.mrb[19].mxu0 }
 0x3c9   : > { %v1381_v56 = vpack.c.bf16 %v1257_v55, %v1254_v52  ;;  %5221 = vxpose.xlu0.b32.cont [3/4] (short) (narrow) %v5220_v46, 64 }
 0x3cb   : > { %4904 = vmatprep.mubr.msk.bf16.mxu0 %vm1421_vm0, %v1381_v56 }
 0x3cc   : > { %1738 = vxpose.xlu1.b32.cont [3/4] (short) (narrow) %v4854_v35, 64  ;;  %4905 = vmatmul.mubr.msk.bf16.vlgmr.msra.gmra.mrb[48].mxu0 %vm1421_vm0, %v1382_v54 }
 0x3cd   : > { %5223 = vxpose.xlu0.b32.end [4/4] (short) (narrow) %v5222_v45, 64  ;;  %v4870_v57 = vpop.f32.mrb[20].mxu0 }
 0x3ce   : > { %v1270_v58 = vpop.f32.mrb[21].mxu0 }
 0x3cf   : > { %v4871_v59 = vpop.f32.mrb[22].mxu0 }
 0x3d0   : > { %1739 = vxpose.xlu1.b32.end [4/4] (short) (narrow) %v4855_v39, 64  ;;  %v1384_v60 = vpack.c.bf16 %v4871_v59, %v4870_v57  ;;  %v1273_v61 = vpop.f32.mrb[23].mxu0 }
 0x3d1   : > { %v1383_v62 = vpack.c.bf16 %v1273_v61, %v1270_v58 }
 0x3d3   : > { %4908 = vmatprep.mubr.msk.bf16.mxu1 %vm1421_vm0, %v1383_v62 }
 0x3d4   : > { %4909 = vmatmul.mubr.msk.bf16.vlgmr.msra.gmra.mrb[0].mxu1 %vm1421_vm0, %v1384_v60 }
 0x3d5   : > { %v4874_v0 = vpop.f32.mrb[24].mxu0  ;;  %4921 = vmatpush3.bf16.msra.mxu1 %v5292_v31 }
 0x3d6   : > { %v1286_v1 = vpop.f32.mrb[25].mxu0  ;;  %4922 = vmatprep.subr.bf16.mxu1 %v5293_v63 }
 0x3d7   : > { %v4875_v3 = vpop.f32.mrb[26].mxu0 }
 0x3d8   : > { %v1386_v4 = vpack.c.bf16 %v4875_v3, %v4874_v0  ;;  %v1289_v5 = vpop.f32.mrb[27].mxu0 }
 0x3d9   : > { %v1385_v6 = vpack.c.bf16 %v1289_v5, %v1286_v1  ;;  %4923 = vmatpush3.bf16.msra.mxu1 %v5293_v63 }
 0x3da   : > { %4924 = vmatprep.subr.bf16.mxu1 %v5294_v2 }
 0x3db   : > { %4912 = vmatprep.mubr.msk.bf16.mxu1 %vm1421_vm0, %v1385_v6 }
 0x3dc   : > { %4913 = vmatmul.mubr.msk.bf16.gmra.mrb[4].mxu1 %vm1421_vm0, %v1386_v4 }
 0x3dd   : > { %v4878_v8 = vpop.f32.mrb[28].mxu0  ;;  %4925 = vmatpush3.bf16.msra.mxu1 %v5294_v2 }
 0x3de   : > { %v1302_v9 = vpop.f32.mrb[29].mxu0  ;;  %4926 = vmatprep.subr.bf16.mxu1 %v5295_v7 }
 0x3df   : > { %v4879_v10 = vpop.f32.mrb[30].mxu0 }
 0x3e0   : > { %v1388_v11 = vpack.c.bf16 %v4879_v10, %v4878_v8  ;;  %v1305_v12 = vpop.f32.mrb[31].mxu0 }
 0x3e1   : > { %v1387_v13 = vpack.c.bf16 %v1305_v12, %v1302_v9  ;;  %4927 = vmatpush3.bf16.msra.mxu1 %v5295_v7 }
 0x3e3   : > { %4916 = vmatprep.mubr.msk.bf16.mxu1 %vm1421_vm0, %v1387_v13 }
 0x3e4   : > { %4917 = vmatmul.mubr.msk.bf16.gmra.mrb[8].mxu1 %vm1421_vm0, %v1388_v11 }
 0x3e5   : > { %v4882_v14 = vpop.f32.mrb[32].mxu0 }
 0x3e6   : > { %v1318_v15 = vpop.f32.mrb[33].mxu0 }
 0x3e7   : > { %v4883_v16 = vpop.f32.mrb[34].mxu0 }
 0x3e8   : > { %v1544_v17 = vpack.c.bf16 %v4883_v16, %v4882_v14  ;;  %v1321_v18 = vpop.f32.mrb[35].mxu0 }
 0x3e9   : > { %v1543_v19 = vpack.c.bf16 %v1321_v18, %v1318_v15 }
 0x3eb   : > { %4928 = vmatprep.mubr.msk.bf16.mxu1 %vm1421_vm0, %v1543_v19 }
 0x3ec   : > { %4929 = vmatmul.mubr.msk.bf16.vlgmr.msra.gmra.mrb[12].mxu1 %vm1421_vm0, %v1544_v17 }
 0x3ed   : > { %v4886_v20 = vpop.f32.mrb[36].mxu0 }
 0x3ee   : > { %v1334_v22 = vpop.f32.mrb[37].mxu0 }
 0x3ef   : > { %v4887_v23 = vpop.f32.mrb[38].mxu0 }
 0x3f0   : > { %v1546_v24 = vpack.c.bf16 %v4887_v23, %v4886_v20  ;;  %v1337_v25 = vpop.f32.mrb[39].mxu0 }
 0x3f1   : > { %v1545_v26 = vpack.c.bf16 %v1337_v25, %v1334_v22 }
 0x3f3   : > { %4932 = vmatprep.mubr.msk.bf16.mxu1 %vm1421_vm0, %v1545_v26 }
 0x3f4   : > { %4933 = vmatmul.mubr.msk.bf16.gmra.mrb[16].mxu1 %vm1421_vm0, %v1546_v24 }
 0x3f5   : > { %v4890_v27 = vpop.f32.mrb[40].mxu0 }
 0x3f6   : > { %v1350_v30 = vpop.f32.mrb[41].mxu0 }
 0x3f7   : > { %v4891_v28 = vpop.f32.mrb[42].mxu0 }
 0x3f8   : > { %v1548_v21 = vpack.c.bf16 %v4891_v28, %v4890_v27  ;;  %v1353_v31 = vpop.f32.mrb[43].mxu0 }
 0x3f9   : > { %v1547_v32 = vpack.c.bf16 %v1353_v31, %v1350_v30 }
 0x3fb   : > { %4936 = vmatprep.mubr.msk.bf16.mxu1 %vm1421_vm0, %v1547_v32 }
 0x3fc   : > { %4937 = vmatmul.mubr.msk.bf16.gmra.mrb[20].mxu1 %vm1421_vm0, %v1548_v21 }
 0x3fd   : > { %v4894_v33 = vpop.f32.mrb[44].mxu0 }
 0x3fe   : > { %v1366_v34 = vpop.f32.mrb[45].mxu0 }
 0x3ff   : > { %v4895_v29 = vpop.f32.mrb[46].mxu0 }
 0x400   : > { %v1550_v35 = vpack.c.bf16 %v4895_v29, %v4894_v33  ;;  %v1369_v38 = vpop.f32.mrb[47].mxu0 }
 0x401   : > { %v1549_v39 = vpack.c.bf16 %v1369_v38, %v1366_v34 }
 0x403   : > { %4940 = vmatprep.mubr.msk.bf16.mxu1 %vm1421_vm0, %v1549_v39 }
 0x404   : > { %4941 = vmatmul.mubr.msk.bf16.gmra.mrb[24].mxu1 %vm1421_vm0, %v1550_v35 }
 0x427   : > { %v1720_v36 = vpop.trf.xlu1 }
 0x42b   : > { %v1721_v40 = vpop.trf.xlu1 }
 0x42c   : > { %v1832_v41 = vpack.c.bf16 %v1721_v40, %v1720_v36 }
 0x42e   : > { %4948 = vmatprep.mubr.msk.bf16.mxu1 %vm1856_vm1, %v1832_v41 }
 0x42f   : > { %v1722_v3 = vpop.trf.xlu1 }
 0x433   : > { %v1723_v4 = vpop.trf.xlu1 }
 0x434   : > { %v1833_v25 = vpack.c.bf16 %v1723_v4, %v1722_v3 }
 0x437   : > { %v1724_v5 = vpop.trf.xlu1 }
 0x43b   : > { %v1725_v6 = vpop.trf.xlu1 }
 0x43c   : > { %v1834_v27 = vpack.c.bf16 %v1725_v6, %v1724_v5 }
 0x43f   : > { %v1726_v7 = vpop.trf.xlu1 }
 0x441   : > { %v5224_v37 = vpop.trf.xlu0 }
 0x442   : > { %v5225_v42 = vunpack.i.l.bf16 %v5224_v37  ;;  %v5228_v47 = vunpack.i.h.bf16 %v5224_v37 }
 0x443   : > { %v1727_v8 = vpop.trf.xlu1 }
 0x444   : > { %v1835_v29 = vpack.c.bf16 %v1727_v8, %v1726_v7 }
 0x445   : > { %v5229_v43 = vpop.trf.xlu0 }
 0x446   : > { %v5230_v46 = vunpack.i.l.bf16 %v5229_v43  ;;  %v5233_v48 = vunpack.i.h.bf16 %v5229_v43 }
 0x447   : > { %v1752_v9 = vpop.trf.xlu1 }
 0x448   : > { %v6422_v44 = vpack.c.bf16 %v5230_v46, %v5225_v42  ;;  %v1844_v52 = vpack.c.bf16 %v5233_v48, %v5228_v47 }
 0x449   : > { %v5234_v45 = vpop.trf.xlu0 }
 0x44a   : > { %v5238_v49 = vunpack.i.h.bf16 %v5234_v45  ;;  %v5235_v50 = vunpack.i.l.bf16 %v5234_v45  ;;  %4984 = vmatprep.mubr.msk.bf16.mxu0 %vm1856_vm1, %v1844_v52 }
 0x44b   : > { %v1753_v10 = vpop.trf.xlu1 }
 0x44c   : > { %v1836_v38 = vpack.c.bf16 %v1753_v10, %v1752_v9 }
 0x44d   : > { %v5239_v51 = vpop.trf.xlu0 }
 0x44e   : > { %v5243_v53 = vunpack.i.h.bf16 %v5239_v51  ;;  %v5240_v54 = vunpack.i.l.bf16 %v5239_v51 }
 0x44f   : > { %v1754_v13 = vpop.trf.xlu1 }
 0x450   : > { %v6425_v55 = vpack.c.bf16 %v5240_v54, %v5235_v50  ;;  %v6427_v56 = vpack.c.bf16 %v5243_v53, %v5238_v49 }
 0x451   : > { %v5244_v57 = vpop.trf.xlu0 }
 0x452   : > { %v5248_v58 = vunpack.i.h.bf16 %v5244_v57  ;;  %v5245_v59 = vunpack.i.l.bf16 %v5244_v57 }
 0x453   : > { %v1755_v18 = vpop.trf.xlu1 }
 0x454   : > { %v1837_v46 = vpack.c.bf16 %v1755_v18, %v1754_v13 }
 0x455   : > { %v5249_v60 = vpop.trf.xlu0 }
 0x456   : > { %v5253_v61 = vunpack.i.h.bf16 %v5249_v60  ;;  %v5250_v62 = vunpack.i.l.bf16 %v5249_v60 }
 0x457   : > { %v1756_v30 = vpop.trf.xlu1 }
 0x458   : > { %v6429_v63 = vpack.c.bf16 %v5250_v62, %v5245_v59  ;;  %v6431_v0 = vpack.c.bf16 %v5253_v61, %v5248_v58 }
 0x459   : > { %v6433_v1 = vpop.trf.xlu0 }
 0x45a   : > { %v5258_v49 = vunpack.i.h.bf16 %v6433_v1  ;;  %v5255_v53 = vunpack.i.l.bf16 %v6433_v1 }
 0x45b   : > { %v1757_v32 = vpop.trf.xlu1 }
 0x45c   : > { %v1838_v37 = vpack.c.bf16 %v1757_v32, %v1756_v30 }
 0x45d   : > { %v6435_v2 = vpop.trf.xlu0 }
 0x45e   : > { %v5263_v50 = vunpack.i.h.bf16 %v6435_v2 }
 0x45f   : > { %v1758_v36 = vpop.trf.xlu1 }
 0x460   : > { %v1847_v51 = vpack.c.bf16 %v5263_v50, %v5258_v49 }
 0x463   : > { %v1759_v48 = vpop.trf.xlu1 }
 0x464   : > { %v1839_v45 = vpack.c.bf16 %v1759_v48, %v1758_v36 }
 0x49f   : > { %v4906_v11 = vpop.f32.mrb[48].mxu0 }
 0x4a0   : > { %v1480_v12 = vpop.f32.mrb[49].mxu0 }
 0x4a1   : > { %v4907_v14 = vpop.f32.mrb[50].mxu0 }
 0x4a2   : > { %v1849_v15 = vpack.c.bf16 %v4907_v14, %v4906_v11  ;;  %v1483_v16 = vpop.f32.mrb[51].mxu0 }
 0x4a3   : > { %v1848_v17 = vpack.c.bf16 %v1483_v16, %v1480_v12 }
 0x4a5   : > { %4944 = vmatprep.subr.bf16.mxu1 %v1848_v17 }
 0x4a6   : > { %4945 = vmatpush3.bf16.msra.mxu1 %v1848_v17 }
 0x4a7   : > { %4946 = vmatprep.subr.bf16.mxu1 %v1849_v15  ;;  %v4910_v19 = vpop.f32.mrb[0].mxu1 }
 0x4a8   : > { %v1496_v20 = vpop.f32.mrb[1].mxu1 }
 0x4a9   : > { %v4911_v22 = vpop.f32.mrb[2].mxu1 }
 0x4aa   : > { %4947 = vmatpush3.bf16.msra.mxu1 %v1849_v15  ;;  %v1851_v23 = vpack.c.bf16 %v4911_v22, %v4910_v19  ;;  %v1499_v24 = vpop.f32.mrb[3].mxu1 }
 0x4ab   : > { %v1850_v26 = vpack.c.bf16 %v1499_v24, %v1496_v20 }
 0x4ad   : > { %4949 = vmatmul.mubr.msk.bf16.vlgmr.msra.gmra.mrb[28].mxu1 %vm1856_vm1, %v1833_v25  ;;  %4956 = vmatprep.subr.bf16.mxu1 %v1850_v26 }
 0x4ae   : > { %4952 = vmatprep.mubr.msk.bf16.mxu1 %vm1856_vm1, %v1834_v27  ;;  %4957 = vmatpush3.bf16.msra.mxu1 %v1850_v26 }
 0x4af   : > { %4958 = vmatprep.subr.bf16.mxu1 %v1851_v23  ;;  %v4914_v28 = vpop.f32.mrb[4].mxu1 }
 0x4b0   : > { %v1512_v21 = vpop.f32.mrb[5].mxu1 }
 0x4b1   : > { %v4915_v31 = vpop.f32.mrb[6].mxu1 }
 0x4b2   : > { %4959 = vmatpush3.bf16.msra.mxu1 %v1851_v23  ;;  %v1853_v33 = vpack.c.bf16 %v4915_v31, %v4914_v28  ;;  %v1515_v34 = vpop.f32.mrb[7].mxu1 }
 0x4b3   : > { %v1852_v35 = vpack.c.bf16 %v1515_v34, %v1512_v21 }
 0x4b5   : > { %4953 = vmatmul.mubr.msk.bf16.gmra.mrb[32].mxu1 %vm1856_vm1, %v1835_v29  ;;  %4968 = vmatprep.subr.bf16.mxu1 %v1852_v35 }
 0x4b6   : > { %4960 = vmatprep.mubr.msk.bf16.mxu1 %vm1856_vm1, %v1836_v38 }
 0x4b7   : > { %v4918_v39 = vpop.f32.mrb[8].mxu1 }
 0x4b8   : > { %v1528_v40 = vpop.f32.mrb[9].mxu1 }
 0x4b9   : > { %v4919_v41 = vpop.f32.mrb[10].mxu1 }
 0x4ba   : > { %v1855_v42 = vpack.c.bf16 %v4919_v41, %v4918_v39  ;;  %v1531_v43 = vpop.f32.mrb[11].mxu1 }
 0x4bb   : > { %v1854_v47 = vpack.c.bf16 %v1531_v43, %v1528_v40 }
 0x4bd   : > { %4961 = vmatmul.mubr.msk.bf16.vlgmr.msra.gmra.mrb[36].mxu1 %vm1856_vm1, %v1837_v46  ;;  %4980 = vmatprep.subr.bf16.mxu0 %v1854_v47 }
 0x4be   : > { %4964 = vmatprep.mubr.msk.bf16.mxu1 %vm1856_vm1, %v1838_v37  ;;  %4969 = vmatpush3.bf16.msra.mxu1 %v1852_v35 }
 0x4bf   : > { %4970 = vmatprep.subr.bf16.mxu1 %v1853_v33  ;;  %4981 = vmatpush3.bf16.msra.mxu0 %v1854_v47  ;;  %v6452_v52 = vpop.f32.mrb[12].mxu1 }
 0x4c0   : > { %4982 = vmatprep.subr.bf16.mxu0 %v1855_v42  ;;  %v1641_v54 = vpop.f32.mrb[13].mxu1 }
 0x4c2   : > { %4971 = vmatpush3.bf16.msra.mxu1 %v1853_v33 }
 0x4c3   : > { %4983 = vmatpush3.bf16.msra.mxu0 %v1855_v42 }
 0x4c5   : > { %4965 = vmatmul.mubr.msk.bf16.gmra.mrb[40].mxu1 %vm1856_vm1, %v1839_v45 }
 0x4c6   : > { %4972 = vmatprep.mubr.msk.bf16.mxu1 %vm1856_vm1, %v6422_v44  ;;  %4985 = vmatmul.mubr.msk.bf16.vlgmr.msra.gmra.mrb[52].mxu0 %vm1856_vm1, %v6427_v56  ;;  %v5260_v44 = vunpack.i.l.bf16 %v6435_v2  ;;  %v6461_v56 = vpop.f32.mrb[14].mxu1 }
 0x4c7   : > { %4988 = vmatprep.mubr.msk.bf16.mxu0 %vm1856_vm1, %v6431_v0  ;;  %v2519_v57 = vpack.c.bf16 %v6461_v56, %v6452_v52  ;;  %v1644_v58 = vpop.f32.mrb[15].mxu1 }
 0x4c8   : > { %v2518_v59 = vpack.c.bf16 %v1644_v58, %v1641_v54  ;;  %v1843_v60 = vpack.c.bf16 %v5260_v44, %v5255_v53 }
 0x4cd   : > { %4973 = vmatmul.mubr.msk.bf16.vlgmr.msra.gmra.mrb[44].mxu1 %vm1856_vm1, %v6425_v55  ;;  %v6465_v55 = vpop.f32.mrb[16].mxu1 }
 0x4ce   : > { %4976 = vmatprep.mubr.msk.bf16.mxu1 %vm1856_vm1, %v6429_v63  ;;  %4989 = vmatmul.mubr.msk.bf16.gmra.mrb[56].mxu0 %vm1856_vm1, %v1847_v51  ;;  %v1657_v61 = vpop.f32.mrb[17].mxu1 }
 0x4cf   : > { %v6469_v62 = vpop.f32.mrb[18].mxu1 }
 0x4d0   : > { %v2521_v63 = vpack.c.bf16 %v6469_v62, %v6465_v55  ;;  %v1660_v0 = vpop.f32.mrb[19].mxu1 }
 0x4d1   : > { %v2520_v1 = vpack.c.bf16 %v1660_v0, %v1657_v61  ;;  %v6474_v2 = vpop.f32.mrb[20].mxu1 }
 0x4d2   : > { %v6476_v3 = vpop.f32.mrb[21].mxu1 }
 0x4d3   : > { %5012 = vmatprep.mubr.msk.bf16.mxu0 %vm2165_vm2, %v2520_v1  ;;  %v6478_v4 = vpop.f32.mrb[22].mxu1 }
 0x4d4   : > { %v6482_v6 = vpop.f32.mrb[23].mxu1 }
 0x4d5   : > { %4977 = vmatmul.mubr.msk.bf16.gmra.mrb[48].mxu1 %vm1856_vm1, %v1843_v60  ;;  %v2522_v7 = vpack.c.bf16 %v6482_v6, %v6476_v3 }
 0x4d6   : > { %5000 = vmatprep.mubr.msk.bf16.mxu1 %vm2165_vm2, %v2518_v59 }
 0x4d7   : > { %v6486_v8 = vpop.f32.mrb[24].mxu1 }
 0x4d8   : > { %v6488_v9 = vpop.f32.mrb[25].mxu1 }
 0x4d9   : > { %v6490_v10 = vpop.f32.mrb[26].mxu1 }
 0x4da   : > { %v6494_v12 = vpop.f32.mrb[27].mxu1 }
 0x4db   : > { %v2524_v13 = vpack.c.bf16 %v6494_v12, %v6488_v9 }
 0x580   : > { %v6498_v14 = vpop.f32.mrb[28].mxu1 }
 0x581   : > { %v6500_v15 = vpop.f32.mrb[29].mxu1  ;;  %v2172_v20 = vsel %vm2165_vm2, %v6498_v14, -inf }
 0x582   : > { %v6502_v16 = vpop.f32.mrb[30].mxu1  ;;  %v2166_v17 = vsel %vm2165_vm2, %v6500_v15, -inf }
 0x583   : > { %2167 = vmax.xlane.f32.xlu1 %v2166_v17  ;;  %v6506_v18 = vpop.f32.mrb[31].mxu1  ;;  %v2175_v24 = vsel %vm2165_vm2, %v6502_v16, -inf }
 0x584   : > { %v2169_v19 = vsel %vm2165_vm2, %v6506_v18, -inf }
 0x585   : > { %2170 = vmax.xlane.f32.xlu0 %v2169_v19 }
 0x587   : > { %2173 = vmax.xlane.f32.xlu1 %v2172_v20 }
 0x588   : > { %v6512_v22 = vpop.f32.mrb[32].mxu1 }
 0x589   : > { %v6514_v23 = vpop.f32.mrb[33].mxu1  ;;  %v2184_v43 = vsel %vm2165_vm2, %v6512_v22, -inf }
 0x58a   : > { %v6518_v25 = vpop.f32.mrb[34].mxu1  ;;  %v2178_v48 = vsel %vm2165_vm2, %v6514_v23, -inf }
 0x58b   : > { %2176 = vmax.xlane.f32.xlu1 %v2175_v24  ;;  %v6520_v26 = vpop.f32.mrb[35].mxu1  ;;  %v2187_v24 = vsel %vm2165_vm2, %v6518_v25, -inf }
 0x58c   : > { %v2181_v59 = vsel %vm2165_vm2, %v6520_v26, -inf }
 0x590   : > { %v6522_v27 = vpop.f32.mrb[36].mxu1 }
 0x591   : > { %v2196_v30 = vsel %vm2165_vm2, %v6522_v27, -inf  ;;  %v6526_v28 = vpop.f32.mrb[37].mxu1 }
 0x592   : > { %2197 = vmax.xlane.f32.xlu1 %v2196_v30  ;;  %v6528_v21 = vpop.f32.mrb[38].mxu1  ;;  %v2190_v32 = vsel %vm2165_vm2, %v6526_v28, -inf }
 0x593   : > { %v6530_v31 = vpop.f32.mrb[39].mxu1  ;;  %v2199_v42 = vsel %vm2165_vm2, %v6528_v21, -inf }
 0x594   : > { %v2193_v29 = vsel %vm2165_vm2, %v6530_v31, -inf }
 0x596   : > { %2191 = vmax.xlane.f32.xlu1 %v2190_v32 }
 0x598   : > { %v6534_v33 = vpop.f32.mrb[40].mxu1 }
 0x599   : > { %v6536_v34 = vpop.f32.mrb[41].mxu1  ;;  %v6540_v35 = vpop.f32.mrb[52].mxu0  ;;  %v2208_v46 = vsel %vm2165_vm2, %v6534_v33, -inf }
 0x59a   : > { %2194 = vmax.xlane.f32.xlu1 %v2193_v29  ;;  %v2202_v38 = vsel %vm2165_vm2, %v6536_v34, -inf  ;;  %v6544_v39 = vpop.f32.mrb[42].mxu1  ;;  %v6546_v36 = vpop.f32.mrb[53].mxu0  ;;  %v2244_v32 = vsel %vm2165_vm2, %v6540_v35, -inf }
 0x59b   : > { %2203 = vmax.xlane.f32.xlu0 %v2202_v38  ;;  %v6548_v40 = vpop.f32.mrb[43].mxu1  ;;  %v6550_v41 = vpop.f32.mrb[54].mxu0  ;;  %v2238_v60 = vsel %vm2165_vm2, %v6546_v36, -inf  ;;  %v2211_v30 = vsel %vm2165_vm2, %v6544_v39, -inf }
 0x59c   : > { %v6552_v37 = vpop.f32.mrb[55].mxu0  ;;  %v2205_v0 = vsel %vm2165_vm2, %v6548_v40, -inf }
 0x59e   : > { %2200 = vmax.xlane.f32.xlu1 %v2199_v42 }
 0x59f   : > { %2185 = vmax.xlane.f32.xlu0 %v2184_v43  ;;  %v2241_v43 = vsel %vm2165_vm2, %v6552_v37, -inf }
 0x5a0   : > { %v6560_v47 = vpop.f32.mrb[44].mxu1 }
 0x5a1   : > { %v6564_v45 = vpop.f32.mrb[45].mxu1  ;;  %v6566_v49 = vpop.f32.mrb[56].mxu0  ;;  %v2220_v20 = vsel %vm2165_vm2, %v6560_v47, -inf }
 0x5a2   : > { %2179 = vmax.xlane.f32.xlu1 %v2178_v48  ;;  %v6568_v50 = vpop.f32.mrb[46].mxu1  ;;  %v6570_v51 = vpop.f32.mrb[57].mxu0  ;;  %v2214_v54 = vsel %vm2165_vm2, %v6564_v45, -inf }
 0x5a3   : > { %2209 = vmax.xlane.f32.xlu0 %v2208_v46  ;;  %v6572_v53 = vpop.f32.mrb[47].mxu1  ;;  %v6574_v44 = vpop.f32.mrb[58].mxu0  ;;  %v2250_v42 = vsel %vm2165_vm2, %v6570_v51, -inf  ;;  %v2223_v48 = vsel %vm2165_vm2, %v6568_v50, -inf }
 0x5a4   : > { %v6578_v58 = vpop.f32.mrb[59].mxu0  ;;  %v2217_v38 = vsel %vm2165_vm2, %v6572_v53, -inf }
 0x5a6   : > { %2182 = vmax.xlane.f32.xlu1 %v2181_v59  ;;  %v2256_v59 = vsel %vm2165_vm2, %v6566_v49, -inf }
 0x5a7   : > { %2215 = vmax.xlane.f32.xlu0 %v2214_v54  ;;  %v2247_v54 = vsel %vm2165_vm2, %v6550_v41, -inf }
 0x5a8   : > { %v6584_v61 = vpop.f32.mrb[48].mxu1 }
 0x5a9   : > { %v6588_v1 = vpop.f32.mrb[49].mxu1  ;;  %v2232_v46 = vsel %vm2165_vm2, %v6584_v61, -inf }
 0x5aa   : > { %2206 = vmax.xlane.f32.xlu1 %v2205_v0  ;;  %v6590_v17 = vpop.f32.mrb[50].mxu1  ;;  %v2226_v29 = vsel %vm2165_vm2, %v6588_v1, -inf  ;;  %v2253_v0 = vsel %vm2165_vm2, %v6578_v58, -inf }
 0x5ab   : > { %2239 = vmax.xlane.f32.xlu0 %v2238_v60  ;;  %v6592_v19 = vpop.f32.mrb[51].mxu1 }
 0x5ac   : > { %v2229_v60 = vsel %vm2165_vm2, %v6592_v19, -inf }
 0x5ae   : > { %2188 = vmax.xlane.f32.xlu1 %v2187_v24  ;;  %v2259_v24 = vsel %vm2165_vm2, %v6574_v44, -inf }
 0x5af   : > { %2221 = vmax.xlane.f32.xlu0 %v2220_v20  ;;  %v2235_v20 = vsel %vm2165_vm2, %v6590_v17, -inf }
 0x5b2   : > { %2212 = vmax.xlane.f32.xlu1 %v2211_v30 }
 0x5b3   : > { %2245 = vmax.xlane.f32.xlu0 %v2244_v32 }
 0x5b6   : > { %2218 = vmax.xlane.f32.xlu1 %v2217_v38 }
 0x5b7   : > { %2227 = vmax.xlane.f32.xlu0 %v2226_v29 }
 0x5ba   : > { %2242 = vmax.xlane.f32.xlu1 %v2241_v43 }
 0x5bb   : > { %2251 = vmax.xlane.f32.xlu0 %v2250_v42 }
 0x5be   : > { %2224 = vmax.xlane.f32.xlu1 %v2223_v48 }
 0x5bf   : > { %2233 = vmax.xlane.f32.xlu0 %v2232_v46 }
 0x5c2   : > { %2248 = vmax.xlane.f32.xlu1 %v2247_v54 }
 0x5c3   : > { %2257 = vmax.xlane.f32.xlu0 %v2256_v59 }
 0x5c6   : > { %2230 = vmax.xlane.f32.xlu1 %v2229_v60 }
 0x5ca   : > { %2254 = vmax.xlane.f32.xlu1 %v2253_v0 }
 0x5ce   : > { %2236 = vmax.xlane.f32.xlu1 %v2235_v20 }
 0x5d2   : > { %2260 = vmax.xlane.f32.xlu1 %v2259_v24 }
 0x610   : > { %v2168_v30 = vpop.xlane.xlu1 %2167 }
 0x611   : > { %v2262_v32 = vsub.f32 %v6500_v15, %v2168_v30 }
 0x612   : > { %v2171_v29 = vpop.xlane.xlu0 %2170 }
 0x613   : > { %v2294_v38 = vmul.f32 1.442695, %v2262_v32  ;;  %v2263_v42 = vsub.f32 %v6506_v18, %v2171_v29 }
 0x614   : > { %v2174_v46 = vpop.xlane.xlu1 %2173 }
 0x615   : > { %5400 = vpow2.f32 %v2294_v38  ;;  %v2296_v43 = vmul.f32 1.442695, %v2263_v42  ;;  %v2264_v15 = vsub.f32 %v6498_v14, %v2174_v46 }
 0x617   : > { %5402 = vpow2.f32 %v2296_v43  ;;  %v2298_v32 = vmul.f32 1.442695, %v2264_v15 }
 0x618   : > { %v2177_v48 = vpop.xlane.xlu1 %2176 }
 0x619   : > { %v2265_v30 = vsub.f32 %v6502_v16, %v2177_v48 }
 0x61b   : > { %v2300_v11 = vmul.f32 1.442695, %v2265_v30 }
 0x61f   : > { %v6628_v54 = vpop.eup %5400  ;;  %v2198_v59 = vpop.xlane.xlu1 %2197 }
 0x620   : > { %v2358_v60 = vsel %vm2165_vm2, %v6628_v54, 0.0  ;;  %v2272_v29 = vsub.f32 %v6522_v27, %v2198_v59 }
 0x621   : > { %v6632_v0 = vpop.eup %5402  ;;  %2359 = vadd.xlane.f32.xlu0 %v2358_v60 }
 0x622   : > { %v2361_v20 = vsel %vm2165_vm2, %v6632_v0, 0.0  ;;  %v2314_v14 = vmul.f32 1.442695, %v2272_v29 }
 0x623   : > { %v2192_v18 = vpop.xlane.xlu1 %2191  ;;  %2362 = vadd.xlane.f32.xlu1 %v2361_v20 }
 0x624   : > { %v2270_v24 = vsub.f32 %v6526_v28, %v2192_v18 }
 0x626   : > { %v2310_v38 = vmul.f32 1.442695, %v2270_v24 }
 0x627   : > { %v2195_v42 = vpop.xlane.xlu1 %2194 }
 0x628   : > { %5404 = vpow2.f32 %v2310_v38  ;;  %v2271_v43 = vsub.f32 %v6530_v31, %v2195_v42  ;;  %v2204_v60 = vpop.xlane.xlu0 %2203 }
 0x629   : > { %5406 = vpow2.f32 %v2298_v32  ;;  %v2274_v16 = vsub.f32 %v6536_v34, %v2204_v60 }
 0x62a   : > { %v2312_v46 = vmul.f32 1.442695, %v2271_v43 }
 0x62b   : > { %v2201_v5 = vpop.xlane.xlu1 %2200  ;;  %v2318_v18 = vmul.f32 1.442695, %v2274_v16 }
 0x62c   : > { %5408 = vpow2.f32 %v2312_v46  ;;  %v2273_v20 = vsub.f32 %v6528_v21, %v2201_v5  ;;  %v2186_v28 = vpop.xlane.xlu0 %2185 }
 0x62d   : > { %5410 = vpow2.f32 %v2300_v11  ;;  %v2268_v24 = vsub.f32 %v6512_v22, %v2186_v28 }
 0x62e   : > { %5412 = vpow2.f32 %v2314_v14  ;;  %v2316_v27 = vmul.f32 1.442695, %v2273_v20 }
 0x62f   : > { %v2180_v48 = vpop.xlane.xlu1 %2179  ;;  %v2306_v29 = vmul.f32 1.442695, %v2268_v24 }
 0x630   : > { %v2266_v59 = vsub.f32 %v6514_v23, %v2180_v48  ;;  %v2210_v15 = vpop.xlane.xlu0 %2209  ;;  %5414 = vpow2.f32 %v2316_v27 }
 0x631   : > { %v2276_v38 = vsub.f32 %v6534_v33, %v2210_v15 }
 0x632   : > { %v6644_v31 = vpop.eup %5404  ;;  %v2302_v30 = vmul.f32 1.442695, %v2266_v59 }
 0x633   : > { %v2183_v32 = vpop.xlane.xlu1 %2182  ;;  %v2382_v5 = vsel %vm2165_vm2, %v6644_v31, 0.0  ;;  %v6649_v11 = vpop.eup %5406  ;;  %v2322_v33 = vmul.f32 1.442695, %v2276_v38 }
 0x634   : > { %5416 = vpow2.f32 %v2302_v30  ;;  %v2267_v21 = vsub.f32 %v6520_v26, %v2183_v32  ;;  %v2216_v34 = vpop.xlane.xlu0 %2215  ;;  %2383 = vadd.xlane.f32.xlu0 %v2382_v5  ;;  %v2364_v60 = vsel %vm2165_vm2, %v6649_v11, 0.0 }
 0x635   : > { %5418 = vpow2.f32 %v2318_v18  ;;  %v2278_v28 = vsub.f32 %v6564_v45, %v2216_v34 }
 0x636   : > { %v6652_v23 = vpop.eup %5408  ;;  %v2304_v42 = vmul.f32 1.442695, %v2267_v21 }
 0x637   : > { %v6655_v22 = vpop.eup %5410  ;;  %v2207_v43 = vpop.xlane.xlu1 %2206  ;;  %v2385_v14 = vsel %vm2165_vm2, %v6652_v23, 0.0  ;;  %v2326_v45 = vmul.f32 1.442695, %v2278_v28 }
 0x638   : > { %v6661_v46 = vpop.eup %5412  ;;  %5420 = vpow2.f32 %v2304_v42  ;;  %v2275_v26 = vsub.f32 %v6548_v40, %v2207_v43  ;;  %v2240_v20 = vpop.xlane.xlu0 %2239  ;;  %2365 = vadd.xlane.f32.xlu0 %v2364_v60  ;;  %2386 = vadd.xlane.f32.xlu1 %v2385_v14  ;;  %v2367_v59 = vsel %vm2165_vm2, %v6655_v22, 0.0 }
 0x639   : > { %5422 = vpow2.f32 %v2306_v29  ;;  %v2388_v48 = vsel %vm2165_vm2, %v6661_v46, 0.0  ;;  %v2286_v30 = vsub.f32 %v6546_v36, %v2240_v20 }
 0x63a   : > { %v2320_v16 = vmul.f32 1.442695, %v2275_v26  ;;  %v6669_v15 = vpop.eup %5414 }
 0x63b   : > { %v2189_v27 = vpop.xlane.xlu1 %2188  ;;  %v2391_v34 = vsel %vm2165_vm2, %v6669_v15, 0.0  ;;  %v2342_v36 = vmul.f32 1.442695, %v2286_v30 }
 0x63c   : > { %5424 = vpow2.f32 %v2320_v16  ;;  %v2269_v40 = vsub.f32 %v6518_v25, %v2189_v27  ;;  %v2222_v18 = vpop.xlane.xlu0 %2221  ;;  %2389 = vadd.xlane.f32.xlu0 %v2388_v48  ;;  %2368 = vadd.xlane.f32.xlu1 %v2367_v59 }
 0x63d   : > { %5426 = vpow2.f32 %v2322_v33  ;;  %v2280_v43 = vsub.f32 %v6560_v47, %v2222_v18 }
 0x63e   : > { %v6672_v24 = vpop.eup %5416  ;;  %v2308_v32 = vmul.f32 1.442695, %v2269_v40 }
 0x63f   : > { %v2213_v5 = vpop.xlane.xlu1 %2212  ;;  %v2370_v21 = vsel %vm2165_vm2, %v6672_v24, 0.0  ;;  %v6679_v29 = vpop.eup %5418  ;;  %v2330_v47 = vmul.f32 1.442695, %v2280_v43 }
 0x640   : > { %5428 = vpow2.f32 %v2308_v32  ;;  %v2277_v25 = vsub.f32 %v6544_v39, %v2213_v5  ;;  %v2246_v38 = vpop.xlane.xlu0 %2245  ;;  %2371 = vadd.xlane.f32.xlu0 %v2370_v21  ;;  %2392 = vadd.xlane.f32.xlu1 %v2391_v34  ;;  %v2394_v26 = vsel %vm2165_vm2, %v6679_v29, 0.0 }
 0x641   : > { %5430 = vpow2.f32 %v2326_v45  ;;  %v2288_v27 = vsub.f32 %v6540_v35, %v2246_v38 }
 0x642   : > { %v6682_v42 = vpop.eup %5420  ;;  %v2324_v60 = vmul.f32 1.442695, %v2277_v25 }
 0x643   : > { %v2219_v14 = vpop.xlane.xlu1 %2218  ;;  %v2373_v20 = vsel %vm2165_vm2, %v6682_v42, 0.0  ;;  %v6689_v33 = vpop.eup %5422  ;;  %v2346_v35 = vmul.f32 1.442695, %v2288_v27 }
 0x644   : > { %5432 = vpow2.f32 %v2324_v60  ;;  %v2279_v39 = vsub.f32 %v6572_v53, %v2219_v14  ;;  %2395 = vadd.xlane.f32.xlu0 %v2394_v26  ;;  %v2228_v28 = vpop.xlane.xlu0 %2227  ;;  %2374 = vadd.xlane.f32.xlu1 %v2373_v20  ;;  %v2376_v40 = vsel %vm2165_vm2, %v6689_v33, 0.0 }
 0x645   : > { %5434 = vpow2.f32 %v2342_v36  ;;  %v2282_v5 = vsub.f32 %v6588_v1, %v2228_v28 }
 0x646   : > { %v6692_v16 = vpop.eup %5424  ;;  %v2328_v48 = vmul.f32 1.442695, %v2279_v39 }
 0x647   : > { %v2243_v59 = vpop.xlane.xlu1 %2242  ;;  %v2397_v18 = vsel %vm2165_vm2, %v6692_v16, 0.0  ;;  %v6699_v45 = vpop.eup %5426  ;;  %v2334_v1 = vmul.f32 1.442695, %v2282_v5 }
 0x648   : > { %5436 = vpow2.f32 %v2328_v48  ;;  %v2287_v53 = vsub.f32 %v6552_v37, %v2243_v59  ;;  %2377 = vadd.xlane.f32.xlu0 %v2376_v40  ;;  %v2252_v30 = vpop.xlane.xlu0 %2251  ;;  %2398 = vadd.xlane.f32.xlu1 %v2397_v18  ;;  %v2400_v25 = vsel %vm2165_vm2, %v6699_v45, 0.0 }
 0x649   : > { %5438 = vpow2.f32 %v2330_v47  ;;  %v2290_v14 = vsub.f32 %v6570_v51, %v2252_v30 }
 0x64a   : > { %v6702_v32 = vpop.eup %5428  ;;  %v2344_v21 = vmul.f32 1.442695, %v2287_v53 }
 0x64b   : > { %v2225_v34 = vpop.xlane.xlu1 %2224  ;;  %v2379_v38 = vsel %vm2165_vm2, %v6702_v32, 0.0  ;;  %v6709_v36 = vpop.eup %5430  ;;  %v2350_v48 = vmul.f32 1.442695, %v2290_v14 }
 0x64c   : > { %5440 = vpow2.f32 %v2344_v21  ;;  %v2281_v37 = vsub.f32 %v6568_v50, %v2225_v34  ;;  %2401 = vadd.xlane.f32.xlu0 %v2400_v25  ;;  %2380 = vadd.xlane.f32.xlu1 %v2379_v38  ;;  %v2234_v43 = vpop.xlane.xlu0 %2233  ;;  %v2406_v39 = vsel %vm2165_vm2, %v6709_v36, 0.0 }
 0x64d   : > { %5442 = vpow2.f32 %v2346_v35  ;;  %v2284_v51 = vsub.f32 %v6584_v61, %v2234_v43 }
 0x64e   : > { %v6712_v60 = vpop.eup %5432  ;;  %v2332_v26 = vmul.f32 1.442695, %v2281_v37 }
 0x64f   : > { %v2249_v20 = vpop.xlane.xlu1 %2248  ;;  %v2403_v28 = vsel %vm2165_vm2, %v6712_v60, 0.0  ;;  %v6719_v47 = vpop.eup %5434  ;;  %v2338_v61 = vmul.f32 1.442695, %v2284_v51 }
 0x650   : > { %5444 = vpow2.f32 %v2332_v26  ;;  %v2289_v50 = vsub.f32 %v6550_v41, %v2249_v20  ;;  %2407 = vadd.xlane.f32.xlu0 %v2406_v39  ;;  %2404 = vadd.xlane.f32.xlu1 %v2403_v28  ;;  %v2258_v40 = vpop.xlane.xlu0 %2257  ;;  %v2430_v53 = vsel %vm2165_vm2, %v6719_v47, 0.0 }
 0x651   : > { %5446 = vpow2.f32 %v2334_v1  ;;  %v2292_v21 = vsub.f32 %v6566_v49, %v2258_v40 }
 0x652   : > { %v6722_v27 = vpop.eup %5436  ;;  %v2348_v59 = vmul.f32 1.442695, %v2289_v50 }
 0x653   : > { %v2231_v18 = vpop.xlane.xlu1 %2230  ;;  %v2409_v30 = vsel %vm2165_vm2, %v6722_v27, 0.0  ;;  %v6729_v35 = vpop.eup %5438  ;;  %v2354_v14 = vmul.f32 1.442695, %v2292_v21 }
 0x654   : > { %5448 = vpow2.f32 %v2348_v59  ;;  %v2283_v41 = vsub.f32 %v6592_v19, %v2231_v18  ;;  %2431 = vadd.xlane.f32.xlu0 %v2430_v53  ;;  %2410 = vadd.xlane.f32.xlu1 %v2409_v30  ;;  %v2412_v38 = vsel %vm2165_vm2, %v6729_v35, 0.0 }
 0x655   : > { %5450 = vpow2.f32 %v2350_v48 }
 0x656   : > { %v6732_v5 = vpop.eup %5440  ;;  %v2336_v34 = vmul.f32 1.442695, %v2283_v41 }
 0x657   : > { %v2255_v25 = vpop.xlane.xlu1 %2254  ;;  %v2433_v37 = vsel %vm2165_vm2, %v6732_v5, 0.0  ;;  %v6739_v43 = vpop.eup %5442 }
 0x658   : > { %5452 = vpow2.f32 %v2336_v34  ;;  %v2291_v19 = vsub.f32 %v6578_v58, %v2255_v25  ;;  %2413 = vadd.xlane.f32.xlu0 %v2412_v38  ;;  %2434 = vadd.xlane.f32.xlu1 %v2433_v37  ;;  %v2436_v20 = vsel %vm2165_vm2, %v6739_v43, 0.0 }
 0x659   : > { %5454 = vpow2.f32 %v2338_v61 }
 0x65a   : > { %v6742_v1 = vpop.eup %5444  ;;  %v2352_v49 = vmul.f32 1.442695, %v2291_v19 }
 0x65b   : > { %v2237_v26 = vpop.xlane.xlu1 %2236  ;;  %v2415_v39 = vsel %vm2165_vm2, %v6742_v1, 0.0  ;;  %v6748_v28 = vpop.eup %5446 }
 0x65c   : > { %5456 = vpow2.f32 %v2352_v49  ;;  %v2285_v50 = vsub.f32 %v6590_v17, %v2237_v26  ;;  %2437 = vadd.xlane.f32.xlu0 %v2436_v20  ;;  %2416 = vadd.xlane.f32.xlu1 %v2415_v39  ;;  %v2418_v59 = vsel %vm2165_vm2, %v6748_v28, 0.0 }
 0x65d   : > { %5458 = vpow2.f32 %v2354_v14 }
 0x65e   : > { %v6751_v58 = vpop.eup %5448  ;;  %v2340_v48 = vmul.f32 1.442695, %v2285_v50 }
 0x65f   : > { %v2261_v51 = vpop.xlane.xlu1 %2260  ;;  %v2439_v40 = vsel %vm2165_vm2, %v6751_v58, 0.0  ;;  %v6757_v18 = vpop.eup %5450 }
 0x660   : > { %5460 = vpow2.f32 %v2340_v48  ;;  %v2293_v53 = vsub.f32 %v6574_v44, %v2261_v51  ;;  %2419 = vadd.xlane.f32.xlu0 %v2418_v59  ;;  %2440 = vadd.xlane.f32.xlu1 %v2439_v40  ;;  %v2442_v41 = vsel %vm2165_vm2, %v6757_v18, 0.0 }
 0x662   : > { %v6760_v17 = vpop.eup %5452  ;;  %v2356_v30 = vmul.f32 1.442695, %v2293_v53 }
 0x663   : > { %v2421_v61 = vsel %vm2165_vm2, %v6760_v17, 0.0  ;;  %v6766_v21 = vpop.eup %5454 }
 0x664   : > { %5462 = vpow2.f32 %v2356_v30  ;;  %2443 = vadd.xlane.f32.xlu0 %v2442_v41  ;;  %2422 = vadd.xlane.f32.xlu1 %v2421_v61  ;;  %v2424_v44 = vsel %vm2165_vm2, %v6766_v21, 0.0 }
 0x666   : > { %v6768_v34 = vpop.eup %5456 }
 0x667   : > { %v2445_v25 = vsel %vm2165_vm2, %v6768_v34, 0.0  ;;  %v6774_v38 = vpop.eup %5458 }
 0x668   : > { %2425 = vadd.xlane.f32.xlu0 %v2424_v44  ;;  %2446 = vadd.xlane.f32.xlu1 %v2445_v25  ;;  %v2448_v19 = vsel %vm2165_vm2, %v6774_v38, 0.0 }
 0x66a   : > { %v6776_v37 = vpop.eup %5460 }
 0x66b   : > { %v2427_v14 = vsel %vm2165_vm2, %v6776_v37, 0.0 }
 0x66c   : > { %2449 = vadd.xlane.f32.xlu0 %v2448_v19  ;;  %2428 = vadd.xlane.f32.xlu1 %v2427_v14 }
 0x66e   : > { %v6782_v49 = vpop.eup %5462 }
 0x66f   : > { %v2451_v26 = vsel %vm2165_vm2, %v6782_v49, 0.0 }
 0x670   : > { %2452 = vadd.xlane.f32.xlu1 %v2451_v26 }
 0x6ae   : > { %v2360_v20 = vpop.xlane.xlu0 %2359 }
 0x6af   : > { %5464 = vrcp.f32 %v2360_v20 }
 0x6b0   : > { %v2363_v39 = vpop.xlane.xlu1 %2362 }
 0x6b1   : > { %5466 = vrcp.f32 %v2363_v39 }
 0x6b9   : > { %v5465_v50 = vpop.eup %5464 }
 0x6ba   : > { %v2486_v51 = vmul.f32 %v5465_v50, %v6628_v54 }
 0x6bb   : > { %v5467_v48 = vpop.eup %5466 }
 0x6bc   : > { %v2487_v59 = vmul.f32 %v5467_v48, %v6632_v0 }
 0x6be   : > { %v2526_v40 = vpack.c.bf16 %v2487_v59, %v2486_v51 }
 0x6c0   : > { %5072 = vmatprep.subr.msk.bf16.mxu1 %vm2165_vm2, %v2526_v40  ;;  %v2549_v53 = vsel %vm2165_vm2, %v2526_v40, 0 }
 0x6c1   : > { %v2384_v30 = vpop.xlane.xlu0 %2383  ;;  %4993 = vmatpush3.bf16.xpose.msra.mxu1 %v2549_v53 }
 0x6c2   : > { %5468 = vrcp.f32 %v2384_v30 }
 0x6c5   : > { %v2366_v41 = vpop.xlane.xlu0 %2365  ;;  %v2387_v61 = vpop.xlane.xlu1 %2386 }
 0x6c6   : > { %5470 = vrcp.f32 %v2387_v61 }
 0x6c7   : > { %5472 = vrcp.f32 %v2366_v41 }
 0x6c9   : > { %v2390_v44 = vpop.xlane.xlu0 %2389  ;;  %v2369_v25 = vpop.xlane.xlu1 %2368 }
 0x6ca   : > { %5474 = vrcp.f32 %v2369_v25 }
 0x6cb   : > { %5476 = vrcp.f32 %v2390_v44 }
 0x6cc   : > { %v5469_v14 = vpop.eup %5468 }
 0x6cd   : > { %v2372_v19 = vpop.xlane.xlu0 %2371  ;;  %v2393_v54 = vpop.xlane.xlu1 %2392  ;;  %v2494_v39 = vmul.f32 %v5469_v14, %v6644_v31 }
 0x6ce   : > { %5478 = vrcp.f32 %v2393_v54 }
 0x6cf   : > { %5480 = vrcp.f32 %v2372_v19 }
 0x6d0   : > { %v5471_v0 = vpop.eup %5470 }
 0x6d1   : > { %v2396_v26 = vpop.xlane.xlu0 %2395  ;;  %v2375_v20 = vpop.xlane.xlu1 %2374  ;;  %v2495_v50 = vmul.f32 %v5471_v0, %v6652_v23 }
 0x6d2   : > { %v5473_v48 = vpop.eup %5472  ;;  %5482 = vrcp.f32 %v2375_v20 }
 0x6d3   : > { %v2530_v51 = vpack.c.bf16 %v2495_v50, %v2494_v39  ;;  %5484 = vrcp.f32 %v2396_v26  ;;  %v2488_v41 = vmul.f32 %v5473_v48, %v6649_v11 }
 0x6d4   : > { %v5475_v59 = vpop.eup %5474 }
 0x6d5   : > { %v2378_v40 = vpop.xlane.xlu0 %2377  ;;  %v2399_v53 = vpop.xlane.xlu1 %2398  ;;  %5076 = vmatprep.subr.msk.bf16.mxu0 %vm2165_vm2, %v2530_v51  ;;  %v2616_v30 = vsel %vm2165_vm2, %v2530_v51, 0  ;;  %v2489_v61 = vmul.f32 %v5475_v59, %v6655_v22 }
 0x6d6   : > { %v5477_v44 = vpop.eup %5476  ;;  %5486 = vrcp.f32 %v2399_v53  ;;  %5005 = vmatpush3.bf16.xpose.msra.mxu0 %v2616_v30 }
 0x6d7   : > { %v2527_v31 = vpack.c.bf16 %v2489_v61, %v2488_v41  ;;  %5488 = vrcp.f32 %v2378_v40  ;;  %v2496_v14 = vmul.f32 %v5477_v44, %v6661_v46 }
 0x6d8   : > { %v5479_v23 = vpop.eup %5478 }
 0x6d9   : > { %v2402_v25 = vpop.xlane.xlu0 %2401  ;;  %v2381_v19 = vpop.xlane.xlu1 %2380  ;;  %5073 = vmatprep.subr.msk.bf16.mxu1 %vm2165_vm2, %v2527_v31  ;;  %v2552_v54 = vsel %vm2165_vm2, %v2527_v31, 0  ;;  %v2497_v0 = vmul.f32 %v5479_v23, %v6669_v15 }
 0x6da   : > { %v5481_v26 = vpop.eup %5480  ;;  %5490 = vrcp.f32 %v2381_v19  ;;  %4995 = vmatpush3.bf16.xpose.msra.mxu1 %v2552_v54 }
 0x6db   : > { %v2531_v11 = vpack.c.bf16 %v2497_v0, %v2496_v14  ;;  %5492 = vrcp.f32 %v2402_v25  ;;  %v2490_v48 = vmul.f32 %v5481_v26, %v6672_v24 }
 0x6dc   : > { %v5483_v22 = vpop.eup %5482 }
 0x6dd   : > { %v2408_v20 = vpop.xlane.xlu0 %2407  ;;  %v2405_v39 = vpop.xlane.xlu1 %2404  ;;  %5077 = vmatprep.subr.msk.bf16.mxu0 %vm2165_vm2, %v2531_v11  ;;  %v2619_v50 = vsel %vm2165_vm2, %v2531_v11, 0  ;;  %v2491_v51 = vmul.f32 %v5483_v22, %v6682_v42 }
 0x6de   : > { %v5485_v59 = vpop.eup %5484  ;;  %5494 = vrcp.f32 %v2405_v39  ;;  %5007 = vmatpush3.bf16.xpose.msra.mxu0 %v2619_v50 }
 0x6df   : > { %v2528_v46 = vpack.c.bf16 %v2491_v51, %v2490_v48  ;;  %5496 = vrcp.f32 %v2408_v20  ;;  %v2498_v41 = vmul.f32 %v5485_v59, %v6679_v29 }
 0x6e0   : > { %v5487_v15 = vpop.eup %5486 }
 0x6e1   : > { %v2432_v40 = vpop.xlane.xlu0 %2431  ;;  %v2411_v53 = vpop.xlane.xlu1 %2410  ;;  %5074 = vmatprep.subr.msk.bf16.mxu1 %vm2165_vm2, %v2528_v46  ;;  %v2555_v30 = vsel %vm2165_vm2, %v2528_v46, 0  ;;  %v2499_v61 = vmul.f32 %v5487_v15, %v6692_v16 }
 0x6e2   : > { %v5489_v44 = vpop.eup %5488  ;;  %5498 = vrcp.f32 %v2411_v53  ;;  %4997 = vmatpush3.bf16.xpose.msra.mxu1 %v2555_v30 }
 0x6e3   : > { %v2532_v24 = vpack.c.bf16 %v2499_v61, %v2498_v41  ;;  %5500 = vrcp.f32 %v2432_v40  ;;  %v2492_v19 = vmul.f32 %v5489_v44, %v6689_v33 }
 0x6e4   : > { %v5491_v42 = vpop.eup %5490 }
 0x6e5   : > { %v2414_v31 = vpop.xlane.xlu0 %2413  ;;  %v2435_v23 = vpop.xlane.xlu1 %2434  ;;  %5078 = vmatprep.subr.msk.bf16.mxu0 %vm2165_vm2, %v2532_v24  ;;  %v2622_v25 = vsel %vm2165_vm2, %v2532_v24, 0  ;;  %v2493_v54 = vmul.f32 %v5491_v42, %v6702_v32 }
 0x6e6   : > { %v5493_v14 = vpop.eup %5492  ;;  %5502 = vrcp.f32 %v2435_v23  ;;  %5009 = vmatpush3.bf16.xpose.msra.mxu0 %v2622_v25 }
 0x6e7   : > { %v2529_v29 = vpack.c.bf16 %v2493_v54, %v2492_v19  ;;  %5504 = vrcp.f32 %v2414_v31  ;;  %v2500_v22 = vmul.f32 %v5493_v14, %v6699_v45 }
 0x6e8   : > { %v5495_v16 = vpop.eup %5494 }
 0x6e9   : > { %v2438_v0 = vpop.xlane.xlu0 %2437  ;;  %v2417_v26 = vpop.xlane.xlu1 %2416  ;;  %5075 = vmatprep.subr.msk.bf16.mxu1 %vm2165_vm2, %v2529_v29  ;;  %v2558_v11 = vsel %vm2165_vm2, %v2529_v29, 0  ;;  %v2501_v20 = vmul.f32 %v5495_v16, %v6712_v60 }
 0x6ea   : > { %v5497_v39 = vpop.eup %5496  ;;  %5506 = vrcp.f32 %v2417_v26  ;;  %4999 = vmatpush3.bf16.xpose.msra.mxu1 %v2558_v11 }
 0x6eb   : > { %v2533_v33 = vpack.c.bf16 %v2501_v20, %v2500_v22  ;;  %5508 = vrcp.f32 %v2438_v0  ;;  %v2502_v59 = vmul.f32 %v5497_v39, %v6709_v36 }
 0x6ec   : > { %v5499_v32 = vpop.eup %5498 }
 0x6ed   : > { %v2420_v50 = vpop.xlane.xlu0 %2419  ;;  %v2441_v48 = vpop.xlane.xlu1 %2440  ;;  %5079 = vmatprep.subr.msk.bf16.mxu0 %vm2165_vm2, %v2533_v33  ;;  %v2625_v51 = vsel %vm2165_vm2, %v2533_v33, 0  ;;  %v2503_v46 = vmul.f32 %v5499_v32, %v6722_v27  ;;  %v5297_v32 = vld [vmem:[%s6237_s18 + $0x8] sm:$0xff]  }
 0x6ee   : > { %v5501_v15 = vpop.eup %5500  ;;  %5510 = vrcp.f32 %v2441_v48  ;;  %5011 = vmatpush3.bf16.xpose.msra.mxu0 %v2625_v51  ;;  %v5299_v48 = vld [vmem:[%s6237_s18 + $0x18] sm:$0xff]  }
 0x6ef   : > { %v2534_v45 = vpack.c.bf16 %v2503_v46, %v2502_v59  ;;  %5512 = vrcp.f32 %v2420_v50  ;;  %v2510_v36 = vmul.f32 %v5501_v15, %v6719_v47  ;;  %v5298_v50 = vld [vmem:[%s6237_s18 + $0x10] sm:$0xff]  }
 0x6f0   : > { %v5503_v60 = vpop.eup %5502 }
 0x6f1   : > { %v2444_v40 = vpop.xlane.xlu0 %2443  ;;  %v2423_v53 = vpop.xlane.xlu1 %2422  ;;  %5001 = vmatmul.mubr.msk.bf16.vlgmr.msra.gmra.mrb[52].mxu1 %vm2165_vm2, %v2519_v57  ;;  %5080 = vmatprep.subr.msk.bf16.mxu1 %vm2165_vm2, %v2534_v45  ;;  %v2683_v30 = vsel %vm2165_vm2, %v2534_v45, 0  ;;  %v2511_v27 = vmul.f32 %v5503_v60, %v6732_v5 }
 0x6f2   : > { %v5505_v41 = vpop.eup %5504  ;;  %5514 = vrcp.f32 %v2423_v53  ;;  %5017 = vmatpush3.bf16.xpose.msra.mxu1 %v2683_v30  ;;  %5024 = vmatprep.mubr.msk.bf16.mxu1 %vm2165_vm2, %v2522_v7 }
 0x6f3   : > { %v2538_v61 = vpack.c.bf16 %v2511_v27, %v2510_v36  ;;  %5516 = vrcp.f32 %v2444_v40  ;;  %v2504_v5 = vmul.f32 %v5505_v41, %v6729_v35 }
 0x6f4   : > { %v5507_v52 = vpop.eup %5506 }
 0x6f5   : > { %v2426_v56 = vpop.xlane.xlu0 %2425  ;;  %v2447_v57 = vpop.xlane.xlu1 %2446  ;;  %5013 = vmatmul.mubr.msk.bf16.vlgmr.msra.gmra.mrb[60].mxu0 %vm2165_vm2, %v2521_v63  ;;  %5084 = vmatprep.subr.msk.bf16.mxu0 %vm2165_vm2, %v2538_v61  ;;  %v2750_v47 = vsel %vm2165_vm2, %v2538_v61, 0  ;;  %v2505_v3 = vmul.f32 %v5507_v52, %v6742_v1 }
 0x6f6   : > { %v5509_v6 = vpop.eup %5508  ;;  %5518 = vrcp.f32 %v2447_v57  ;;  %5029 = vmatpush3.bf16.xpose.msra.mxu0 %v2750_v47  ;;  %5036 = vmatprep.mubr.msk.bf16.mxu0 %vm2165_vm2, %v2524_v13 }
 0x6f7   : > { %v2535_v7 = vpack.c.bf16 %v2505_v3, %v2504_v5  ;;  %5520 = vrcp.f32 %v2426_v56  ;;  %v2512_v35 = vmul.f32 %v5509_v6, %v6739_v43 }
 0x6f8   : > { %v5511_v55 = vpop.eup %5510 }
 0x6f9   : > { %v2450_v62 = vpop.xlane.xlu0 %2449  ;;  %v2429_v63 = vpop.xlane.xlu1 %2428  ;;  %5081 = vmatprep.subr.msk.bf16.mxu1 %vm2165_vm2, %v2535_v7  ;;  %v2686_v44 = vsel %vm2165_vm2, %v2535_v7, 0  ;;  %v2513_v1 = vmul.f32 %v5511_v55, %v6751_v58 }
 0x6fa   : > { %v5513_v24 = vpop.eup %5512  ;;  %5522 = vrcp.f32 %v2429_v63  ;;  %5019 = vmatpush3.bf16.xpose.msra.mxu1 %v2686_v44 }
 0x6fb   : > { %5524 = vrcp.f32 %v2450_v62  ;;  %v2539_v9 = vpack.c.bf16 %v2513_v1, %v2512_v35  ;;  %v2506_v31 = vmul.f32 %v5513_v24, %v6748_v28 }
 0x6fc   : > { %v5515_v12 = vpop.eup %5514 }
 0x6fd   : > { %v2453_v13 = vpop.xlane.xlu1 %2452  ;;  %5085 = vmatprep.subr.msk.bf16.mxu0 %vm2165_vm2, %v2539_v9  ;;  %v2753_v42 = vsel %vm2165_vm2, %v2539_v9, 0  ;;  %v2507_v23 = vmul.f32 %v5515_v12, %v6760_v17  ;;  %v5517_v25 = vpop.eup %5516  ;;  %v4556_v12 = vld [vmem:[%s762_s27] ss:$0 sm:$0xff] }
 0x6fe   : > { %5526 = vrcp.f32 %v2453_v13  ;;  %5031 = vmatpush3.bf16.xpose.msra.mxu0 %v2753_v42  ;;  %v2514_v54 = vmul.f32 %v5517_v25, %v6757_v18  ;;  %v5608_v42 = vld [vmem:[%s6304_s26] sm:$0xff] }
 0x6ff   : > { %v2536_v43 = vpack.c.bf16 %v2507_v23, %v2506_v31 }
 0x700   : > { %v5519_v58 = vpop.eup %5518 }
 0x701   : > { %5082 = vmatprep.subr.msk.bf16.mxu1 %vm2165_vm2, %v2536_v43  ;;  %v2689_v19 = vsel %vm2165_vm2, %v2536_v43, 0  ;;  %v2515_v14 = vmul.f32 %v5519_v58, %v6768_v34  ;;  %v5521_v29 = vpop.eup %5520  ;;  %v5609_v58 = vld [vmem:[%s6304_s26 + $0x8] sm:$0xff] }
 0x702   : > { %5021 = vmatpush3.bf16.xpose.msra.mxu1 %v2689_v19  ;;  %v2508_v17 = vmul.f32 %v5521_v29, %v6766_v21 }
 0x703   : > { %v2540_v16 = vpack.c.bf16 %v2515_v14, %v2514_v54  ;;  %v5610_v54 = vld [vmem:[%s6304_s26 + $0x10] sm:$0xff] }
 0x704   : > { %v5523_v0 = vpop.eup %5522 }
 0x705   : > { %v5525_v26 = vpop.eup %5524  ;;  %5086 = vmatprep.subr.msk.bf16.mxu0 %vm2165_vm2, %v2540_v16  ;;  %v2756_v28 = vsel %vm2165_vm2, %v2540_v16, 0  ;;  %v2509_v11 = vmul.f32 %v5523_v0, %v6776_v37  ;;  %v7626_v37 = vpack.c.bf16 %v6478_v4, %v6474_v2  ;;  %v5300_v2 = vld [vmem:[%s6237_s18 + $0x20] sm:$0xff]   ;;  %v5301_v4 = vld [vmem:[%s6237_s18 + $0x28] sm:$0xff]  }
 0x706   : > { %5033 = vmatpush3.bf16.xpose.msra.mxu0 %v2756_v28  ;;  %v2516_v34 = vmul.f32 %v5525_v26, %v6774_v38  ;;  %v7627_v38 = vpack.c.bf16 %v6490_v10, %v6486_v8  ;;  %v5302_v8 = vld [vmem:[%s6237_s18 + $0x30] sm:$0xff]   ;;  %v5303_v10 = vld [vmem:[%s6237_s18 + $0x38] sm:$0xff]  }
 0x707   : > { %v2537_v18 = vpack.c.bf16 %v2509_v11, %v2508_v17  ;;  %v5611_v11 = vld [vmem:[%s6304_s26 + $0x18] sm:$0xff] }
 0x708   : > { %v5527_v22 = vpop.eup %5526 }
 0x709   : > { %v2517_v20 = vmul.f32 %v5527_v22, %v6782_v49  ;;  %5083 = vmatprep.subr.msk.bf16.mxu1 %vm2165_vm2, %v2537_v18  ;;  %v2692_v39 = vsel %vm2165_vm2, %v2537_v18, 0  ;;  %v5296_v49 = vld [vmem:[%s6237_s18] sm:$0xff]  }
 0x70a   : > { %5023 = vmatpush3.bf16.xpose.msra.mxu1 %v2692_v39  ;;  %v5612_v18 = vld [vmem:[%s6304_s26 + $0x20] sm:$0xff] }
 0x70b   : > { %v2541_v33 = vpack.c.bf16 %v2517_v20, %v2516_v34  ;;  %5040 = vmatprep.subr.bf16.mxu1 %v5296_v49 }
 0x70d   : > { %5087 = vmatprep.subr.msk.bf16.mxu0 %vm2165_vm2, %v2541_v33  ;;  %v2759_v21 = vsel %vm2165_vm2, %v2541_v33, 0  ;;  %v5613_v33 = vld [vmem:[%s6304_s26 + $0x28] sm:$0xff] }
 0x70e   : > { %5035 = vmatpush3.bf16.xpose.msra.mxu0 %v2759_v21 }
 0x711   : > { %5025 = vmatmul.mubr.msk.bf16.vlgmr.msra.gmra.mrb[56].mxu1 %vm2165_vm2, %v7626_v37  ;;  %v5614_v37 = vld [vmem:[%s6304_s26 + $0x30] sm:$0xff] }
 0x712   : > { %5041 = vmatpush3.bf16.msra.mxu1 %v5296_v49 }
 0x713   : > { %5042 = vmatprep.subr.bf16.mxu1 %v5297_v32 }
 0x715   : > { %5037 = vmatmul.mubr.msk.bf16.vlgmr.msra.gmra.mrb[64].mxu0 %vm2165_vm2, %v7627_v38 }
 0x716   : > { %5043 = vmatpush3.bf16.msra.mxu1 %v5297_v32 }
 0x717   : > { %5044 = vmatprep.subr.bf16.mxu1 %v5298_v50 }
 0x71a   : > { %5045 = vmatpush3.bf16.msra.mxu1 %v5298_v50  ;;  %v5615_v50 = vld [vmem:[%s6304_s26 + $0x38] sm:$0xff] }
 0x71b   : > { %5046 = vmatprep.subr.bf16.mxu1 %v5299_v48 }
 0x71e   : > { %5047 = vmatpush3.bf16.msra.mxu1 %v5299_v48 }
 0x71f   : > { %5048 = vmatprep.subr.bf16.mxu1 %v5300_v2 }
 0x722   : > { %5049 = vmatpush3.bf16.msra.mxu1 %v5300_v2 }
 0x723   : > { %5050 = vmatprep.subr.bf16.mxu1 %v5301_v4 }
 0x726   : > { %5051 = vmatpush3.bf16.msra.mxu1 %v5301_v4  ;;  %v5304_v4 = vld [vmem:[%s7633_s24] ss:$16 sps:$4 sm:$0xff]  }
 0x727   : > { %5052 = vmatprep.subr.bf16.mxu1 %v5302_v8 }
 0x72a   : > { %5053 = vmatpush3.bf16.msra.mxu1 %v5302_v8  ;;  %v5306_v8 = vld [vmem:[%s7633_s24 + $0x4] ss:$16 sps:$4 sm:$0xff]  }
 0x72b   : > { %5054 = vmatprep.subr.bf16.mxu1 %v5303_v10  ;;  %3322 = vmatprep.subr.bf16.mxu0 %v5306_v8  ;;  %v5345_v8 = vld [vmem:[%s7633_s24 + $0xcc] ss:$16 sps:$4 sm:$0xff]  }
 0x72c   : > { %3323 = vmatpush1.bf16.msra.mxu0 %v5304_v4  ;;  %v5342_v4 = vld [vmem:[%s7633_s24 + $0xc4] ss:$16 sps:$4 sm:$0xff]  }
 0x72e   : > { %5055 = vmatpush3.bf16.msra.mxu1 %v5303_v10  ;;  %v5307_v10 = vld [vmem:[%s7633_s24 + $0x8] ss:$16 sps:$4 sm:$0xff]  }
 0x7c4   : > { %v5002_v51 = vpop.f32.mrb[52].mxu1 }
 0x7c5   : > { %v2594_v59 = vpop.f32.mrb[53].mxu1 }
 0x7c6   : > { %v5003_v46 = vpop.f32.mrb[54].mxu1 }
 0x7c7   : > { %v2811_v15 = vpack.c.bf16 %v5003_v46, %v5002_v51  ;;  %v2597_v45 = vpop.f32.mrb[55].mxu1  ;;  %v5309_v51 = vld [vmem:[%s7633_s24 + $0xc] ss:$16 sps:$4 sm:$0xff]  }
 0x7c8   : > { %v2810_v60 = vpack.c.bf16 %v2597_v45, %v2594_v59  ;;  %v5014_v40 = vpop.f32.mrb[60].mxu0  ;;  %v5312_v59 = vld [vmem:[%s7633_s24 + $0x24] ss:$16 sps:$4 sm:$0xff]   ;;  %v5315_v46 = vld [vmem:[%s7633_s24 + $0x2c] ss:$16 sps:$4 sm:$0xff]   ;;  %3395 = vmatprep.subr.bf16.mxu1 %v5309_v51 }
 0x7c9   : > { %v2661_v53 = vpop.f32.mrb[61].mxu0  ;;  %3324 = vmatprep.subr.bf16.mxu0 %v5312_v59  ;;  %v5313_v45 = vld [vmem:[%s7633_s24 + $0x28] ss:$16 sps:$4 sm:$0xff]   ;;  %v5348_v59 = vld [vmem:[%s7633_s24 + $0xe4] ss:$16 sps:$4 sm:$0xff]  }
 0x7ca   : > { %2834 = vxpose.xlu0.c.b16.start [1/8] (narrow) %v2810_v60, 64  ;;  %v5015_v30 = vpop.f32.mrb[62].mxu0  ;;  %v5343_v51 = vld [vmem:[%s7633_s24 + $0xc8] ss:$16 sps:$4 sm:$0xff]  }
 0x7cb   : > { %v2813_v36 = vpack.c.bf16 %v5015_v30, %v5014_v40  ;;  %v2664_v27 = vpop.f32.mrb[63].mxu0 }
 0x7cc   : > { %v2812_v41 = vpack.c.bf16 %v2664_v27, %v2661_v53 }
 0x7ce   : > { %2835 = vxpose.xlu0.c.b16.cont [2/8] (narrow) %v2811_v15, 64  ;;  %v5310_v15 = vld [vmem:[%s7633_s24 + $0x20] ss:$16 sps:$4 sm:$0xff]  }
 0x7cf   : > { %3325 = vmatpush1.bf16.msra.mxu0 %v5310_v15  ;;  %v5346_v15 = vld [vmem:[%s7633_s24 + $0xe0] ss:$16 sps:$4 sm:$0xff]  }
 0x7d2   : > { %2836 = vxpose.xlu0.c.b16.cont [3/8] (narrow) %v2812_v41, 64 }
 0x7d6   : > { %2837 = vxpose.xlu0.c.b16.cont [4/8] (narrow) %v2813_v36, 64 }
 0x7e4   : > { %v5026_v61 = vpop.f32.mrb[56].mxu1 }
 0x7e5   : > { %v2728_v52 = vpop.f32.mrb[57].mxu1 }
 0x7e6   : > { %v5027_v56 = vpop.f32.mrb[58].mxu1 }
 0x7e7   : > { %v2815_v57 = vpack.c.bf16 %v5027_v56, %v5026_v61  ;;  %v2731_v47 = vpop.f32.mrb[59].mxu1 }
 0x7e8   : > { %v2814_v5 = vpack.c.bf16 %v2731_v47, %v2728_v52  ;;  %v5038_v3 = vpop.f32.mrb[64].mxu0 }
 0x7e9   : > { %v2795_v6 = vpop.f32.mrb[65].mxu0 }
 0x7ea   : > { %2838 = vxpose.xlu0.c.b16.cont [5/8] (narrow) %v2814_v5, 64  ;;  %v5039_v7 = vpop.f32.mrb[66].mxu0 }
 0x7eb   : > { %v2817_v55 = vpack.c.bf16 %v5039_v7, %v5038_v3  ;;  %v2798_v62 = vpop.f32.mrb[67].mxu0 }
 0x7ec   : > { %v2816_v63 = vpack.c.bf16 %v2798_v62, %v2795_v6 }
 0x7ee   : > { %2839 = vxpose.xlu0.c.b16.cont [6/8] (narrow) %v2815_v57, 64 }
 0x7f2   : > { %2840 = vxpose.xlu0.c.b16.cont [7/8] (narrow) %v2816_v63, 64 }
 0x7f6   : > { %2841 = vxpose.xlu0.c.b16.end [8/8] (narrow) %v2817_v55, 64 }
 0x840   : > { %v2842_v44 = vpop.trf.xlu0 }
 0x841   : > { %5056 = vmatprep.mubr.bf16.mxu1 %v2842_v44 }
 0x844   : > { %v2843_v35 = vpop.trf.xlu0 }
 0x845   : > { %5057 = vmatmul.mubr.bf16.vlgmr.msra.gmra.mrb[60].mxu1 %v2843_v35 }
 0x846   : > { %3396 = vmatpush1.bf16.msra.mxu1 %v5307_v10  ;;  %v5340_v10 = vld [vmem:[%s7633_s24 + $0xc0] ss:$16 sps:$4 sm:$0xff]  }
 0x847   : > { %3397 = vmatprep.subr.bf16.mxu1 %v5315_v46  ;;  %v5351_v46 = vld [vmem:[%s7633_s24 + $0xec] ss:$16 sps:$4 sm:$0xff]  }
 0x848   : > { %v2844_v1 = vpop.trf.xlu0 }
 0x849   : > { %5060 = vmatprep.mubr.bf16.mxu1 %v2844_v1 }
 0x84a   : > { %3398 = vmatpush1.bf16.msra.mxu1 %v5313_v45  ;;  %v5349_v45 = vld [vmem:[%s7633_s24 + $0xe8] ss:$16 sps:$4 sm:$0xff]  }
 0x84c   : > { %v2845_v24 = vpop.trf.xlu0 }
 0x84d   : > { %5061 = vmatmul.mubr.bf16.gmra.mrb[64].mxu1 %v2845_v24  ;;  %v5318_v24 = vld [vmem:[%s7633_s24 + $0x44] ss:$16 sps:$4 sm:$0xff]  }
 0x84e   : > { %3326 = vmatprep.subr.bf16.mxu0 %v5318_v24  ;;  %v4557_v24 = vld [vmem:[%s765_s16] ss:$0 sm:$0xff] }
 0x918   : > { %v5058_v9 = vpop.f32.mrb[60].mxu1 }
 0x919   : > { %v2932_v13 = vpop.f32.mrb[61].mxu1  ;;  %v2965_v14 = vadd.f32 %v5610_v54, %v5058_v9  ;;  %v5321_v9 = vld [vmem:[%s7633_s24 + $0x4c] ss:$16 sps:$4 sm:$0xff]  }
 0x91a   : > { %v2963_v31 = vadd.f32 %v5608_v42, %v2932_v13  ;;  %v5059_v23 = vpop.f32.mrb[62].mxu1  ;;  %v5316_v13 = vld [vmem:[%s7633_s24 + $0x40] ss:$16 sps:$4 sm:$0xff]   ;;  %v5319_v42 = vld [vmem:[%s7633_s24 + $0x48] ss:$16 sps:$4 sm:$0xff]   ;;  %3399 = vmatprep.subr.bf16.mxu1 %v5321_v9 }
 0x91b   : > { %v2935_v25 = vpop.f32.mrb[63].mxu1  ;;  %v6896_v17 = vadd.f32 %v4556_v12, %v2965_v14  ;;  %v2966_v22 = vadd.f32 %v5611_v11, %v5059_v23  ;;  %3327 = vmatpush1.bf16.msra.mxu0 %v5316_v13  ;;  %3400 = vmatpush1.bf16.msra.mxu1 %v5319_v42  ;;  %v5322_v14 = vld [vmem:[%s7633_s24 + $0x60] ss:$16 sps:$4 sm:$0xff]   ;;  %v5330_v11 = vld [vmem:[%s7633_s24 + $0x84] ss:$16 sps:$4 sm:$0xff]  }
 0x91c   : > { %v6888_v43 = vadd.f32 %v4556_v12, %v2963_v31  ;;  %v2964_v19 = vadd.f32 %v5609_v58, %v2935_v25  ;;  %v5324_v58 = vld [vmem:[%s7633_s24 + $0x64] ss:$16 sps:$4 sm:$0xff]  }
 0x91d   : > { %7631 = vst [vmem:[#allocation34_spill] sm:$0xff] %v6896_v17  ;;  %v6901_v20 = vadd.f32 %v4556_v12, %v2966_v22  ;;  %3328 = vmatprep.subr.bf16.mxu0 %v5324_v58  ;;  %v5333_v22 = vld [vmem:[%s7633_s24 + $0x8c] ss:$16 sps:$4 sm:$0xff]  }
 0x91e   : > { %7629 = vst [vmem:[#allocation32_spill] sm:$0xff] %v6888_v43  ;;  %2988 = vadd.xlane.f32.xlu1 %v6888_v43  ;;  %v6893_v29 = vadd.f32 %v4556_v12, %v2964_v19  ;;  %v5327_v19 = vld [vmem:[%s7633_s24 + $0x6c] ss:$16 sps:$4 sm:$0xff]  }
 0x91f   : > { %7632 = vst [vmem:[#allocation35_spill] sm:$0xff] %v6901_v20  ;;  %3401 = vmatprep.subr.bf16.mxu1 %v5327_v19  ;;  %3329 = vmatpush1.bf16.msra.mxu0 %v5322_v14 }
 0x920   : > { %7630 = vst [vmem:[#allocation33_spill] sm:$0xff] %v6893_v29  ;;  %v5062_v16 = vpop.f32.mrb[64].mxu1  ;;  %3330 = vmatprep.subr.bf16.mxu0 %v5330_v11 }
 0x921   : > { %v2948_v0 = vpop.f32.mrb[65].mxu1  ;;  %v2969_v38 = vadd.f32 %v5614_v37, %v5062_v16  ;;  %v5325_v16 = vld [vmem:[%s7633_s24 + $0x68] ss:$16 sps:$4 sm:$0xff]   ;;  %v5336_v37 = vld [vmem:[%s7633_s24 + $0xa4] ss:$16 sps:$4 sm:$0xff]  }
 0x922   : > { %2990 = vadd.xlane.f32.xlu1 %v6893_v29  ;;  %v5063_v26 = vpop.f32.mrb[66].mxu1  ;;  %v2967_v34 = vadd.f32 %v5612_v18, %v2948_v0  ;;  %3402 = vmatpush1.bf16.msra.mxu1 %v5325_v16 }
 0x923   : > { %v2951_v28 = vpop.f32.mrb[67].mxu1  ;;  %v6912_v32 = vadd.f32 %v4556_v12, %v2969_v38  ;;  %v2970_v48 = vadd.f32 %v5615_v50, %v5063_v26  ;;  %3403 = vmatprep.subr.bf16.mxu1 %v5333_v22  ;;  %v5339_v38 = vld [vmem:[%s7633_s24 + $0xac] ss:$16 sps:$4 sm:$0xff]   ;;  %v5334_v50 = vld [vmem:[%s7633_s24 + $0xa0] ss:$16 sps:$4 sm:$0xff]  }
 0x924   : > { %v6903_v39 = vadd.f32 %v4556_v12, %v2967_v34  ;;  %v2968_v21 = vadd.f32 %v5613_v33, %v2951_v28  ;;  %v5328_v34 = vld [vmem:[%s7633_s24 + $0x80] ss:$16 sps:$4 sm:$0xff]   ;;  %v5331_v33 = vld [vmem:[%s7633_s24 + $0x88] ss:$16 sps:$4 sm:$0xff]  }
 0x925   : > { %7636 = vst [vmem:[#allocation38_spill] sm:$0xff] %v6912_v32  ;;  %v6916_v2 = vadd.f32 %v4556_v12, %v2970_v48  ;;  %3331 = vmatpush1.bf16.msra.mxu0 %v5328_v34  ;;  %v5337_v48 = vld [vmem:[%s7633_s24 + $0xa8] ss:$16 sps:$4 sm:$0xff]  }
 0x926   : > { %2992 = vadd.xlane.f32.xlu1 %v6896_v17  ;;  %7634 = vst [vmem:[#allocation36_spill] sm:$0xff] %v6903_v39  ;;  %v6909_v49 = vadd.f32 %v4556_v12, %v2968_v21  ;;  %3404 = vmatpush1.bf16.msra.mxu1 %v5331_v33 }
 0x927   : > { %7637 = vst [vmem:[#allocation39_spill] sm:$0xff] %v6916_v2  ;;  %3332 = vmatprep.subr.bf16.mxu0 %v5336_v37  ;;  %3405 = vmatprep.subr.bf16.mxu1 %v5339_v38 }
 0x928   : > { %7635 = vst [vmem:[#allocation37_spill] sm:$0xff] %v6909_v49 }
 0x929   : > { %3333 = vmatpush1.bf16.msra.mxu0 %v5334_v50 }
 0x92a   : > { %2994 = vadd.xlane.f32.xlu1 %v6901_v20  ;;  %3406 = vmatpush1.bf16.msra.mxu1 %v5337_v48 }
 0x92b   : > { %3334 = vmatprep.subr.bf16.mxu0 %v5342_v4  ;;  %3407 = vmatprep.subr.bf16.mxu1 %v5345_v8 }
 0x92d   : > { %3335 = vmatpush1.bf16.msra.mxu0 %v5340_v10 }
 0x92e   : > { %2996 = vadd.xlane.f32.xlu1 %v6903_v39  ;;  %3408 = vmatpush1.bf16.msra.mxu1 %v5343_v51 }
 0x92f   : > { %3336 = vmatprep.subr.bf16.mxu0 %v5348_v59  ;;  %3409 = vmatprep.subr.bf16.mxu1 %v5351_v46 }
 0x931   : > { %3337 = vmatpush1.bf16.msra.mxu0 %v5346_v15 }
 0x932   : > { %2998 = vadd.xlane.f32.xlu1 %v6909_v49  ;;  %3410 = vmatpush1.bf16.msra.mxu1 %v5349_v45 }
 0x936   : > { %3000 = vadd.xlane.f32.xlu1 %v6912_v32 }
 0x93a   : > { %3002 = vadd.xlane.f32.xlu1 %v6916_v2 }
 0x9ab   : > { %v2989_v60 = vpop.xlane.xlu1 %2988 }
 0x9ac   : > { %v3004_v40 = vmul.f32 0.0078125, %v2989_v60  ;;  %v5876_v60 = vmov 0  }
 0x9ad   : > { %3354 = vmatprep.mubr.bf16.mxu0 %v5876_v60  ;;  %3427 = vmatprep.mubr.bf16.mxu1 %v5876_v60 }
 0x9ae   : > { %v6928_v53 = vsub.f32 %v6888_v43, %v3004_v40 }
 0x9af   : > { %v2991_v30 = vpop.xlane.xlu1 %2990 }
 0x9b0   : > { %v3005_v36 = vmul.f32 0.0078125, %v2991_v30  ;;  %v3020_v27 = vmul.f32 %v6928_v53, %v6928_v53 }
 0x9b2   : > { %v6933_v41 = vsub.f32 %v6893_v29, %v3005_v36  ;;  %3028 = vadd.xlane.f32.xlu1 %v3020_v27 }
 0x9b3   : > { %v2993_v61 = vpop.xlane.xlu1 %2992 }
 0x9b4   : > { %v3006_v52 = vmul.f32 0.0078125, %v2993_v61  ;;  %v3021_v56 = vmul.f32 %v6933_v41, %v6933_v41 }
 0x9b6   : > { %v6938_v57 = vsub.f32 %v6896_v17, %v3006_v52  ;;  %3030 = vadd.xlane.f32.xlu1 %v3021_v56 }
 0x9b7   : > { %v2995_v47 = vpop.xlane.xlu1 %2994 }
 0x9b8   : > { %v3007_v5 = vmul.f32 0.0078125, %v2995_v47  ;;  %v3022_v3 = vmul.f32 %v6938_v57, %v6938_v57 }
 0x9ba   : > { %v6943_v6 = vsub.f32 %v6901_v20, %v3007_v5  ;;  %3032 = vadd.xlane.f32.xlu1 %v3022_v3 }
 0x9bb   : > { %v2997_v7 = vpop.xlane.xlu1 %2996 }
 0x9bc   : > { %v3008_v55 = vmul.f32 0.0078125, %v2997_v7  ;;  %v3023_v62 = vmul.f32 %v6943_v6, %v6943_v6 }
 0x9be   : > { %v6948_v63 = vsub.f32 %v6903_v39, %v3008_v55  ;;  %3034 = vadd.xlane.f32.xlu1 %v3023_v62 }
 0x9bf   : > { %v2999_v44 = vpop.xlane.xlu1 %2998 }
 0x9c0   : > { %v3009_v35 = vmul.f32 0.0078125, %v2999_v44  ;;  %v3024_v1 = vmul.f32 %v6948_v63, %v6948_v63 }
 0x9c2   : > { %v6955_v12 = vsub.f32 %v6909_v49, %v3009_v35  ;;  %3036 = vadd.xlane.f32.xlu1 %v3024_v1 }
 0x9c3   : > { %v3001_v31 = vpop.xlane.xlu1 %3000 }
 0x9c4   : > { %v3010_v23 = vmul.f32 0.0078125, %v3001_v31  ;;  %v3025_v25 = vmul.f32 %v6955_v12, %v6955_v12 }
 0x9c6   : > { %v6964_v54 = vsub.f32 %v6912_v32, %v3010_v23  ;;  %3038 = vadd.xlane.f32.xlu1 %v3025_v25 }
 0x9c7   : > { %v3003_v0 = vpop.xlane.xlu1 %3002 }
 0x9c8   : > { %v3011_v26 = vmul.f32 0.0078125, %v3003_v0  ;;  %v3026_v28 = vmul.f32 %v6964_v54, %v6964_v54 }
 0x9ca   : > { %v6973_v18 = vsub.f32 %v6916_v2, %v3011_v26  ;;  %3040 = vadd.xlane.f32.xlu1 %v3026_v28 }
 0x9cc   : > { %v3027_v21 = vmul.f32 %v6973_v18, %v6973_v18 }
 0x9ce   : > { %3042 = vadd.xlane.f32.xlu1 %v3027_v21 }
 0xa3f   : > { %v3029_v40 = vpop.xlane.xlu1 %3028 }
 0xa40   : > { %v3044_v30 = vmul.f32 0.0078125, %v3029_v40 }
 0xa42   : > { %v3052_v36 = vadd.f32 1e-05, %v3044_v30 }
 0xa43   : > { %v3031_v27 = vpop.xlane.xlu1 %3030 }
 0xa44   : > { %5528 = vrsqrt.f32 %v3052_v36  ;;  %v3045_v61 = vmul.f32 0.0078125, %v3031_v27 }
 0xa46   : > { %v3053_v52 = vadd.f32 1e-05, %v3045_v61 }
 0xa47   : > { %v3033_v56 = vpop.xlane.xlu1 %3032 }
 0xa48   : > { %5530 = vrsqrt.f32 %v3053_v52  ;;  %v3046_v47 = vmul.f32 0.0078125, %v3033_v56 }
 0xa4a   : > { %v3054_v5 = vadd.f32 1e-05, %v3046_v47 }
 0xa4b   : > { %v3035_v3 = vpop.xlane.xlu1 %3034 }
 0xa4c   : > { %5532 = vrsqrt.f32 %v3054_v5  ;;  %v3047_v7 = vmul.f32 0.0078125, %v3035_v3 }
 0xa4e   : > { %v5529_v55 = vpop.eup %5528  ;;  %v3055_v62 = vadd.f32 1e-05, %v3047_v7 }
 0xa4f   : > { %v3068_v44 = vmul.f32 %v5529_v55, %v6928_v53  ;;  %v3037_v35 = vpop.xlane.xlu1 %3036  ;;  %v4558_v53 = vld [vmem:[%s768_s20] ss:$0 sm:$0xff]  ;;  %s7640_s20 = sld [smem:[#allocation31_spill]] }
 0xa50   : > { %5534 = vrsqrt.f32 %v3055_v62  ;;  %v3048_v1 = vmul.f32 0.0078125, %v3037_v35 }
 0xa51   : > { %v3082_v23 = vmul.f32 %v4557_v24, %v3068_v44 }
 0xa52   : > { %v5531_v9 = vpop.eup %5530  ;;  %v3056_v13 = vadd.f32 1e-05, %v3048_v1 }
 0xa53   : > { %v3069_v42 = vmul.f32 %v5531_v9, %v6933_v41  ;;  %v3039_v31 = vpop.xlane.xlu1 %3038  ;;  %v3096_v0 = vadd.f32 %v4558_v53, %v3082_v23 }
 0xa54   : > { %5536 = vrsqrt.f32 %v3056_v13  ;;  %v3049_v25 = vmul.f32 0.0078125, %v3039_v31 }
 0xa55   : > { %v3083_v58 = vmul.f32 %v4557_v24, %v3069_v42  ;;  %v5352_v5 = vld [vmem:[%s7640_s20 + $0x40] sm:$0xff]   ;;  %v5357_v55 = vld [vmem:[%s7640_s20 + $0xc8] sm:$0xff]   ;;  %v5360_v35 = vld [vmem:[%s7640_s20 + $0x50] sm:$0xff]  }
 0xa56   : > { %v5533_v19 = vpop.eup %5532  ;;  %v3057_v14 = vadd.f32 1e-05, %v3049_v25  ;;  %v5353_v3 = vld [vmem:[%s7640_s20 + $0xc0] sm:$0xff]   ;;  %4752 = vmatprep.subr.bf16.mxu0 %v5352_v5  ;;  %v5358_v62 = vld [vmem:[%s7640_s20 + $0x8] sm:$0xff]   ;;  %v5361_v1 = vld [vmem:[%s7640_s20 + $0xd0] sm:$0xff]  }
 0xa57   : > { %v3041_v16 = vpop.xlane.xlu1 %3040  ;;  %v3097_v26 = vadd.f32 %v4558_v53, %v3083_v58  ;;  %v3070_v28 = vmul.f32 %v5533_v19, %v6938_v57  ;;  %4792 = vmatprep.subr.bf16.mxu1 %v5353_v3  ;;  %v5355_v7 = vld [vmem:[%s7640_s20 + $0x80] sm:$0xff]   ;;  %v5359_v44 = vld [vmem:[%s7640_s20 + $0x88] sm:$0xff]   ;;  %v5363_v9 = vld [vmem:[%s7640_s20 + $0x90] sm:$0xff]  }
 0xa58   : > { %5538 = vrsqrt.f32 %v3057_v14  ;;  %v3050_v11 = vmul.f32 0.0078125, %v3041_v16  ;;  %v5364_v13 = vld [vmem:[%s7640_s20 + $0x58] sm:$0xff]   ;;  %v5368_v25 = vld [vmem:[%s7640_s20 + $0x60] sm:$0xff]   ;;  %v5372_v14 = vld [vmem:[%s7640_s20 + $0x68] sm:$0xff]  }
 0xa59   : > { %v3104_v41 = vpack.c.bf16 %v3097_v26, %v3096_v0  ;;  %v3084_v37 = vmul.f32 %v4557_v24, %v3070_v28  ;;  %v5365_v42 = vld [vmem:[%s7640_s20 + $0xd8] sm:$0xff]   ;;  %v5370_v58 = vld [vmem:[%s7640_s20 + $0x20] sm:$0xff]   ;;  %v5373_v16 = vld [vmem:[%s7640_s20 + $0xe8] sm:$0xff]  }
 0xa5a   : > { %v5535_v22 = vpop.eup %5534  ;;  %v3058_v34 = vadd.f32 1e-05, %v3050_v11  ;;  %v5366_v31 = vld [vmem:[%s7640_s20 + $0x18] sm:$0xff]   ;;  %v5371_v19 = vld [vmem:[%s7640_s20 + $0xa0] sm:$0xff]   ;;  %v5374_v0 = vld [vmem:[%s7640_s20 + $0x28] sm:$0xff]  }
 0xa5b   : > { %3355 = vmatmul.mubr.bf16.vlgmr.msra.gmra.mrb[68].mxu0 %v3104_v41  ;;  %3428 = vmatmul.mubr.bf16.vlgmr.msra.gmra.mrb[68].mxu1 %v3104_v41  ;;  %v3043_v33 = vpop.xlane.xlu1 %3042  ;;  %v3071_v21 = vmul.f32 %v5535_v22, %v6943_v6  ;;  %v3098_v4 = vadd.f32 %v4558_v53, %v3084_v37  ;;  %v5367_v23 = vld [vmem:[%s7640_s20 + $0x98] sm:$0xff]   ;;  %v5375_v26 = vld [vmem:[%s7640_s20 + $0xa8] sm:$0xff]   ;;  %v5376_v28 = vld [vmem:[%s7640_s20 + $0x70] sm:$0xff]  }
 0xa5c   : > { %5540 = vrsqrt.f32 %v3058_v34  ;;  %v3051_v38 = vmul.f32 0.0078125, %v3043_v33  ;;  %3364 = vmatprep.mubr.bf16.mxu0 %v5876_v60  ;;  %3437 = vmatprep.mubr.bf16.mxu1 %v5876_v60  ;;  %v5377_v11 = vld [vmem:[%s7640_s20 + $0xf0] sm:$0xff]   ;;  %v5380_v34 = vld [vmem:[%s7640_s20 + $0x78] sm:$0xff]  }
 0xa5d   : > { %v3085_v50 = vmul.f32 %v4557_v24, %v3071_v21  ;;  %4793 = vmatpush3.bf16.msra.mxu1 %v5355_v7  ;;  %v5378_v41 = vld [vmem:[%s7640_s20 + $0x30] sm:$0xff]   ;;  %v5381_v33 = vld [vmem:[%s7640_s20 + $0xf8] sm:$0xff]  }
 0xa5e   : > { %v5537_v48 = vpop.eup %5536  ;;  %v3059_v57 = vadd.f32 1e-05, %v3051_v38  ;;  %4794 = vmatprep.subr.bf16.mxu1 %v5357_v55  ;;  %v5379_v22 = vld [vmem:[%s7640_s20 + $0xb0] sm:$0xff]   ;;  %v5382_v21 = vld [vmem:[%s7640_s20 + $0x38] sm:$0xff]   ;;  %v3142_v38 = vlaneseq }
 0xa5f   : > { %v3099_v8 = vadd.f32 %v4558_v53, %v3085_v50  ;;  %v3072_v10 = vmul.f32 %v5537_v48, %v6948_v63  ;;  %v5383_v37 = vld [vmem:[%s7640_s20 + $0xb8] sm:$0xff]  }
 0xa60   : > { %5542 = vrsqrt.f32 %v3059_v57  ;;  %v3143_v50 = vshrl.u32 %v3142_v38, 7 }
 0xa61   : > { %v3105_v51 = vpack.c.bf16 %v3099_v8, %v3098_v4  ;;  %v3086_v46 = vmul.f32 %v4557_v24, %v3072_v10  ;;  %4795 = vmatpush3.bf16.msra.mxu1 %v5359_v44  ;;  %v3140_v4 = vld [vmem:[%s6298_s6] sm:$0xf] }
 0xa62   : > { %v5539_v59 = vpop.eup %5538  ;;  %4796 = vmatprep.subr.bf16.mxu1 %v5361_v1  ;;  %v3144_v48 = vsub.s32 0, %v3143_v50  ;;  %v3152_v57 = vsub.s32 2, %v3143_v50  ;;  %v3148_v8 = vsub.s32 1, %v3143_v50  ;;  %v3156_v10 = vsub.s32 3, %v3143_v50 }
 0xa63   : > { %3365 = vmatmul.mubr.bf16.gmra.mrb[72].mxu0 %v3105_v51  ;;  %3438 = vmatmul.mubr.bf16.gmra.mrb[72].mxu1 %v3105_v51  ;;  %v3073_v6 = vmul.f32 %v5539_v59, %v6955_v12  ;;  %v3100_v40 = vadd.f32 %v4558_v53, %v3086_v46 }
 0xa64   : > { %3374 = vmatprep.mubr.bf16.mxu0 %v5876_v60  ;;  %3447 = vmatprep.mubr.bf16.mxu1 %v5876_v60  ;;  %v7050_v51 = vrot.slane %v3140_v4, %v3144_v48  ;;  %v7052_v59 = vrot.slane %v3140_v4, %v3152_v57  ;;  %v7056_v46 = vrot.slane %v3140_v4, %v3156_v10 }
 0xa65   : > { %v3087_v15 = vmul.f32 %v4557_v24, %v3073_v6  ;;  %4797 = vmatpush3.bf16.msra.mxu1 %v5363_v9  ;;  %v7054_v6 = vrot.slane %v3140_v4, %v3148_v8 }
 0xa66   : > { %v5541_v45 = vpop.eup %5540  ;;  %4798 = vmatprep.subr.bf16.mxu1 %v5365_v42 }
 0xa67   : > { %v3101_v30 = vadd.f32 %v4558_v53, %v3087_v15  ;;  %v3074_v36 = vmul.f32 %v5541_v45, %v6964_v54 }
 0xa69   : > { %v3106_v63 = vpack.c.bf16 %v3101_v30, %v3100_v40  ;;  %v3088_v61 = vmul.f32 %v4557_v24, %v3074_v36  ;;  %4799 = vmatpush3.bf16.msra.mxu1 %v5367_v23 }
 0xa6a   : > { %v5543_v27 = vpop.eup %5542 }
 0xa6b   : > { %3375 = vmatmul.mubr.bf16.gmra.mrb[76].mxu0 %v3106_v63  ;;  %3448 = vmatmul.mubr.bf16.gmra.mrb[76].mxu1 %v3106_v63  ;;  %v3075_v12 = vmul.f32 %v5543_v27, %v6973_v18  ;;  %v3102_v56 = vadd.f32 %v4558_v53, %v3088_v61  ;;  %v5354_v18 = vld [vmem:[%s7640_s20] sm:$0xff]  }
 0xa6c   : > { %3384 = vmatprep.mubr.bf16.mxu0 %v5876_v60  ;;  %3457 = vmatprep.mubr.bf16.mxu1 %v5876_v60  ;;  %v5356_v60 = vld [vmem:[%s7640_s20 + $0x48] sm:$0xff]  }
 0xa6d   : > { %v3089_v52 = vmul.f32 %v4557_v24, %v3075_v12  ;;  %4753 = vmatpush3.bf16.msra.mxu0 %v5354_v18  ;;  %v5362_v24 = vld [vmem:[%s7640_s20 + $0x10] sm:$0xff]  }
 0xa6e   : > { %4754 = vmatprep.subr.bf16.mxu0 %v5356_v60 }
 0xa6f   : > { %v3103_v54 = vadd.f32 %v4558_v53, %v3089_v52  ;;  %v5369_v53 = vld [vmem:[%s7640_s20 + $0xe0] sm:$0xff]  }
 0xa70   : > { %4800 = vmatprep.subr.bf16.mxu1 %v5369_v53 }
 0xa71   : > { %v3107_v47 = vpack.c.bf16 %v3103_v54, %v3102_v56  ;;  %4755 = vmatpush3.bf16.msra.mxu0 %v5358_v62  ;;  %4801 = vmatpush3.bf16.msra.mxu1 %v5371_v19 }
 0xa72   : > { %4756 = vmatprep.subr.bf16.mxu0 %v5360_v35  ;;  %4802 = vmatprep.subr.bf16.mxu1 %v5373_v16 }
 0xa73   : > { %3385 = vmatmul.mubr.bf16.gmra.mrb[80].mxu0 %v3107_v47  ;;  %3458 = vmatmul.mubr.bf16.gmra.mrb[80].mxu1 %v3107_v47 }
 0xa75   : > { %4757 = vmatpush3.bf16.msra.mxu0 %v5362_v24  ;;  %4803 = vmatpush3.bf16.msra.mxu1 %v5375_v26 }
 0xa76   : > { %4758 = vmatprep.subr.bf16.mxu0 %v5364_v13  ;;  %4804 = vmatprep.subr.bf16.mxu1 %v5377_v11 }
 0xa79   : > { %4759 = vmatpush3.bf16.msra.mxu0 %v5366_v31  ;;  %4805 = vmatpush3.bf16.msra.mxu1 %v5379_v22 }
 0xa7a   : > { %4760 = vmatprep.subr.bf16.mxu0 %v5368_v25  ;;  %4806 = vmatprep.subr.bf16.mxu1 %v5381_v33 }
 0xa7d   : > { %4761 = vmatpush3.bf16.msra.mxu0 %v5370_v58  ;;  %4807 = vmatpush3.bf16.msra.mxu1 %v5383_v37 }
 0xa7e   : > { %4762 = vmatprep.subr.bf16.mxu0 %v5372_v14 }
 0xa81   : > { %4763 = vmatpush3.bf16.msra.mxu0 %v5374_v0 }
 0xa82   : > { %4764 = vmatprep.subr.bf16.mxu0 %v5376_v28 }
 0xa85   : > { %4765 = vmatpush3.bf16.msra.mxu0 %v5378_v41 }
 0xa86   : > { %4766 = vmatprep.subr.bf16.mxu0 %v5380_v34 }
 0xa89   : > { %4767 = vmatpush3.bf16.msra.mxu0 %v5382_v21 }
 0xb2e   : > { %v3356_v15 = vpop.f32.mrb[68].mxu0  ;;  %v3429_v45 = vpop.f32.mrb[68].mxu1 }
 0xb2f   : > { %v3357_v40 = vadd.f32 %v3356_v15, %v7050_v51  ;;  %v3430_v30 = vadd.f32 %v3429_v45, %v7052_v59  ;;  %v3358_v36 = vpop.f32.mrb[69].mxu0  ;;  %v3431_v63 = vpop.f32.mrb[69].mxu1 }
 0xb30   : > { %v7061_v27 = vadd.f32 %v3358_v36, %v7054_v6  ;;  %v7064_v12 = vadd.f32 %v3431_v63, %v7056_v46  ;;  %v3360_v61 = vpop.f32.mrb[70].mxu0  ;;  %v3433_v52 = vpop.f32.mrb[70].mxu1 }
 0xb31   : > { %v3500_v56 = vmul.f32 0.044715, %v3357_v40  ;;  %v3502_v54 = vmul.f32 0.044715, %v3430_v30  ;;  %v3361_v5 = vadd.f32 %v3360_v61, %v7050_v51  ;;  %v3434_v3 = vadd.f32 %v3433_v52, %v7052_v59  ;;  %v3362_v18 = vpop.f32.mrb[71].mxu0  ;;  %v3435_v7 = vpop.f32.mrb[71].mxu1 }
 0xb32   : > { %v3501_v47 = vmul.f32 0.044715, %v7061_v27  ;;  %v3503_v62 = vmul.f32 0.044715, %v7064_v12  ;;  %v7071_v44 = vadd.f32 %v3362_v18, %v7054_v6  ;;  %v7074_v13 = vadd.f32 %v3435_v7, %v7056_v46 }
 0xb33   : > { %v3532_v60 = vmul.f32 %v3500_v56, %v3357_v40  ;;  %v3534_v55 = vmul.f32 %v3502_v54, %v3430_v30  ;;  %v3504_v35 = vmul.f32 0.044715, %v3361_v5  ;;  %v3506_v9 = vmul.f32 0.044715, %v3434_v3 }
 0xb34   : > { %v3533_v42 = vmul.f32 %v3501_v47, %v7061_v27  ;;  %v3535_v58 = vmul.f32 %v3503_v62, %v7064_v12  ;;  %v3505_v14 = vmul.f32 0.044715, %v7071_v44  ;;  %v7085_v33 = vmul.f32 0.5, %v3357_v40 }
 0xb35   : > { %v3564_v1 = vmul.f32 %v3532_v60, %v3357_v40  ;;  %v3566_v24 = vmul.f32 %v3534_v55, %v3430_v30  ;;  %v3536_v31 = vmul.f32 %v3504_v35, %v3361_v5  ;;  %v3538_v19 = vmul.f32 %v3506_v9, %v3434_v3 }
 0xb36   : > { %v3366_v23 = vpop.f32.mrb[72].mxu0  ;;  %v3439_v25 = vpop.f32.mrb[72].mxu1  ;;  %v7087_v21 = vmul.f32 0.5, %v3430_v30  ;;  %v3507_v38 = vmul.f32 0.044715, %v7074_v13  ;;  %v7090_v4 = vmul.f32 0.5, %v3361_v5  ;;  %v7100_v63 = vmul.f32 %v3533_v42, %v7061_v27 }
 0xb37   : > { %v3596_v53 = vadd.f32 %v3564_v1, %v3357_v40  ;;  %v3368_v16 = vpop.f32.mrb[73].mxu0  ;;  %v3441_v0 = vpop.f32.mrb[73].mxu1  ;;  %v3598_v26 = vadd.f32 %v3566_v24, %v3430_v30  ;;  %v3568_v28 = vmul.f32 %v3536_v31, %v3361_v5  ;;  %v7080_v11 = vadd.f32 %v3366_v23, %v7050_v51 }
 0xb38   : > { %v7083_v41 = vadd.f32 %v3439_v25, %v7052_v59  ;;  %v3370_v22 = vpop.f32.mrb[74].mxu0  ;;  %v3443_v34 = vpop.f32.mrb[74].mxu1  ;;  %v3570_v37 = vmul.f32 %v3538_v19, %v3434_v3  ;;  %v7092_v10 = vmul.f32 0.5, %v3434_v3  ;;  %v7097_v40 = vadd.f32 %v3368_v16, %v7054_v6 }
 0xb39   : > { %v3372_v50 = vpop.f32.mrb[75].mxu0  ;;  %v3445_v48 = vpop.f32.mrb[75].mxu1  ;;  %v3628_v57 = vmul.f32 0.7978846, %v3596_v53  ;;  %v3600_v8 = vadd.f32 %v3568_v28, %v3361_v5  ;;  %v3508_v45 = vmul.f32 0.044715, %v7080_v11  ;;  %v7103_v61 = vmul.f32 %v3535_v58, %v7064_v12 }
 0xb3a   : > { %7641 = vst [vmem:[#allocation40_spill] sm:$0xff] %v7083_v41  ;;  %v3602_v15 = vadd.f32 %v3570_v37, %v3434_v3  ;;  %v3510_v36 = vmul.f32 0.044715, %v7083_v41  ;;  %v3630_v30 = vmul.f32 0.7978846, %v3598_v26  ;;  %v3537_v52 = vmul.f32 %v3505_v14, %v7071_v44 }
 0xb3b   : > { %v3539_v56 = vmul.f32 %v3507_v38, %v7074_v13  ;;  %v3509_v54 = vmul.f32 0.044715, %v7097_v40  ;;  %v7109_v47 = vadd.f32 %v3441_v0, %v7056_v46  ;;  %v7112_v5 = vadd.f32 %v3370_v22, %v7050_v51 }
 0xb3c   : > { %5544 = vtanh.f32 %v3628_v57  ;;  %v3632_v3 = vmul.f32 0.7978846, %v3600_v8  ;;  %v3634_v18 = vmul.f32 0.7978846, %v3602_v15  ;;  %v7115_v7 = vadd.f32 %v3443_v34, %v7052_v59 }
 0xb3d   : > { %7642 = vst [vmem:[#allocation41_spill] sm:$0xff] %v7112_v5  ;;  %v3540_v62 = vmul.f32 %v3508_v45, %v7080_v11  ;;  %v3542_v35 = vmul.f32 %v3510_v36, %v7083_v41  ;;  %v3511_v1 = vmul.f32 0.044715, %v7109_v47  ;;  %v3512_v24 = vmul.f32 0.044715, %v7112_v5 }
 0xb3e   : > { %7643 = vst [vmem:[#allocation42_spill] sm:$0xff] %v7115_v7  ;;  %v3376_v60 = vpop.f32.mrb[76].mxu0  ;;  %v3449_v55 = vpop.f32.mrb[76].mxu1  ;;  %v3541_v31 = vmul.f32 %v3509_v54, %v7097_v40  ;;  %v3514_v23 = vmul.f32 0.044715, %v7115_v7  ;;  %v7124_v25 = vadd.f32 %v3372_v50, %v7054_v6  ;;  %v7127_v53 = vadd.f32 %v3445_v48, %v7056_v46 }
 0xb3f   : > { %v3378_v9 = vpop.f32.mrb[77].mxu0  ;;  %v3451_v42 = vpop.f32.mrb[77].mxu1  ;;  %5546 = vtanh.f32 %v3630_v30  ;;  %v7130_v14 = vmul.f32 %v3537_v52, %v7071_v44  ;;  %v7133_v16 = vadd.f32 %v3376_v60, %v7050_v51  ;;  %v7136_v0 = vadd.f32 %v3449_v55, %v7052_v59 }
 0xb40   : > { %v3380_v58 = vpop.f32.mrb[78].mxu0  ;;  %v3453_v19 = vpop.f32.mrb[78].mxu1  ;;  %5548 = vtanh.f32 %v3632_v3  ;;  %v7139_v22 = vmul.f32 %v3539_v56, %v7074_v13  ;;  %v3543_v34 = vmul.f32 %v3511_v1, %v7109_v47  ;;  %v3513_v37 = vmul.f32 0.044715, %v7124_v25 }
 0xb41   : > { %v3382_v26 = vpop.f32.mrb[79].mxu0  ;;  %v3455_v28 = vpop.f32.mrb[79].mxu1  ;;  %v7144_v38 = vmul.f32 %v3540_v62, %v7080_v11  ;;  %v3544_v50 = vmul.f32 %v3512_v24, %v7112_v5  ;;  %v3515_v48 = vmul.f32 0.044715, %v7127_v53  ;;  %v7149_v57 = vadd.f32 %v3378_v9, %v7054_v6 }
 0xb42   : > { %5550 = vtanh.f32 %v3634_v18  ;;  %v7152_v8 = vmul.f32 %v3542_v35, %v7083_v41  ;;  %v7155_v15 = vmul.f32 %v3541_v31, %v7097_v40  ;;  %v3546_v45 = vmul.f32 %v3514_v23, %v7115_v7 }
 0xb43   : > { %7644 = vst [vmem:[#allocation43_spill] sm:$0xff] %v7144_v38  ;;  %v3516_v36 = vmul.f32 0.044715, %v7133_v16  ;;  %v3518_v30 = vmul.f32 0.044715, %v7136_v0  ;;  %v7161_v52 = vadd.f32 %v3451_v42, %v7056_v46  ;;  %v7164_v56 = vadd.f32 %v3380_v58, %v7050_v51 }
 0xb44   : > { %7645 = vst [vmem:[#allocation44_spill] sm:$0xff] %v7152_v8  ;;  %v7167_v54 = vmul.f32 %v3543_v34, %v7109_v47  ;;  %v3545_v3 = vmul.f32 %v3513_v37, %v7124_v25  ;;  %v3517_v18 = vmul.f32 0.044715, %v7149_v57  ;;  %v7172_v60 = vadd.f32 %v3453_v19, %v7052_v59 }
 0xb45   : > { %v7175_v35 = vmul.f32 %v3544_v50, %v7112_v5  ;;  %v3547_v1 = vmul.f32 %v3515_v48, %v7127_v53  ;;  %v3519_v24 = vmul.f32 0.044715, %v7161_v52  ;;  %v3520_v9 = vmul.f32 0.044715, %v7164_v56 }
 0xb46   : > { %v3386_v55 = vpop.f32.mrb[80].mxu0  ;;  %v3459_v62 = vpop.f32.mrb[80].mxu1  ;;  %v3522_v58 = vmul.f32 0.044715, %v7172_v60  ;;  %v7184_v19 = vadd.f32 %v3382_v26, %v7054_v6  ;;  %v7187_v34 = vadd.f32 %v3455_v28, %v7056_v46  ;;  %v7193_v2 = vmul.f32 %v3546_v45, %v7115_v7 }
 0xb47   : > { %7646 = vst [vmem:[#allocation45_spill] sm:$0xff] %v7175_v35  ;;  %v3388_v42 = vpop.f32.mrb[81].mxu0  ;;  %v3461_v31 = vpop.f32.mrb[81].mxu1  ;;  %v7190_v37 = vadd.f32 %v3386_v55, %v7050_v51  ;;  %v3548_v32 = vmul.f32 %v3516_v36, %v7133_v16  ;;  %v3550_v49 = vmul.f32 %v3518_v30, %v7136_v0  ;;  %v7198_v39 = vadd.f32 %v3459_v62, %v7052_v59 }
 0xb48   : > { %v7180_v23 = vpop.eup %5544  ;;  %v3390_v50 = vpop.f32.mrb[82].mxu0  ;;  %7647 = vst [vmem:[#allocation46_spill] sm:$0xff] %v7193_v2  ;;  %v7201_v28 = vmul.f32 %v3545_v3, %v7124_v25  ;;  %v3521_v55 = vmul.f32 0.044715, %v7184_v19  ;;  %v3523_v17 = vmul.f32 0.044715, %v7187_v34  ;;  %v7207_v43 = vmul.f32 %v3547_v1, %v7127_v53 }
 0xb49   : > { %v3463_v48 = vpop.f32.mrb[82].mxu1  ;;  %7648 = vst [vmem:[#allocation47_spill] sm:$0xff] %v7198_v39  ;;  %v3392_v26 = vpop.f32.mrb[83].mxu0  ;;  %v3524_v29 = vmul.f32 0.044715, %v7190_v37  ;;  %v3549_v36 = vmul.f32 %v3517_v18, %v7149_v57  ;;  %v7212_v62 = vadd.f32 %v3388_v42, %v7054_v6  ;;  %v3551_v3 = vmul.f32 %v3519_v24, %v7161_v52 }
 0xb4a   : > { %v3465_v20 = vpop.f32.mrb[83].mxu1  ;;  %v5547_v45 = vpop.eup %5546  ;;  %v3526_v30 = vmul.f32 0.044715, %v7198_v39  ;;  %v3552_v7 = vmul.f32 %v3520_v9, %v7164_v56  ;;  %v3554_v8 = vmul.f32 %v3522_v58, %v7172_v60  ;;  %v3553_v41 = vmul.f32 %v3521_v55, %v7184_v19 }
 0xb4b   : > { %v5549_v2 = vpop.eup %5548  ;;  %v3555_v35 = vmul.f32 %v3523_v17, %v7187_v34  ;;  %v3525_v1 = vmul.f32 0.044715, %v7212_v62  ;;  %v7221_v18 = vadd.f32 %v3461_v31, %v7056_v46  ;;  %v7224_v5 = vadd.f32 %v3390_v50, %v7050_v51 }
 0xb4c   : > { %v5551_v42 = vpop.eup %5550  ;;  %v7227_v38 = vmul.f32 %v3548_v32, %v7133_v16  ;;  %v7230_v24 = vmul.f32 %v3550_v49, %v7136_v0  ;;  %v3556_v9 = vmul.f32 %v3524_v29, %v7190_v37  ;;  %v7234_v58 = vadd.f32 %v3463_v48, %v7052_v59 }
 0xb4d   : > { %v7237_v17 = vmul.f32 %v3549_v36, %v7149_v57  ;;  %v3558_v31 = vmul.f32 %v3526_v30, %v7198_v39  ;;  %v3557_v51 = vmul.f32 %v3525_v1, %v7212_v62  ;;  %v3527_v50 = vmul.f32 0.044715, %v7221_v18 }
 0xb4e   : > { %v7243_v32 = vmul.f32 %v3551_v3, %v7161_v52  ;;  %v7246_v49 = vmul.f32 %v3552_v7, %v7164_v56  ;;  %v3528_v29 = vmul.f32 0.044715, %v7224_v5  ;;  %v3530_v59 = vmul.f32 0.044715, %v7234_v58 }
 0xb4f   : > { %v7251_v48 = vmul.f32 %v3554_v8, %v7172_v60  ;;  %v7254_v55 = vmul.f32 %v3553_v41, %v7184_v19  ;;  %v7257_v36 = vmul.f32 %v3555_v35, %v7187_v34  ;;  %v7260_v30 = vadd.f32 %v3392_v26, %v7054_v6 }
 0xb50   : > { %v7263_v3 = vmul.f32 %v3556_v9, %v7190_v37  ;;  %v3559_v7 = vmul.f32 %v3527_v50, %v7221_v18  ;;  %v7267_v1 = vadd.f32 %v3465_v20, %v7056_v46  ;;  %v3597_v8 = vadd.f32 %v7100_v63, %v7061_v27 }
 0xb51   : > { %v7272_v41 = vmul.f32 %v3558_v31, %v7198_v39  ;;  %v7275_v35 = vmul.f32 %v3557_v51, %v7212_v62  ;;  %v7278_v6 = vmul.f32 0.5, %v7061_v27  ;;  %v3601_v26 = vadd.f32 %v7130_v14, %v7071_v44 }
 0xb52   : > { %v3560_v9 = vmul.f32 %v3528_v29, %v7224_v5  ;;  %v3562_v20 = vmul.f32 %v3530_v59, %v7234_v58  ;;  %v7285_v46 = vmul.f32 0.5, %v7071_v44  ;;  %v3629_v63 = vmul.f32 0.7978846, %v3597_v8 }
 0xb53   : > { %7649 = vst [vmem:[#allocation48_spill] sm:$0xff] %v7272_v41  ;;  %v3529_v31 = vmul.f32 0.044715, %v7260_v30  ;;  %v3633_v50 = vmul.f32 0.7978846, %v3601_v26  ;;  %v3599_v51 = vadd.f32 %v7103_v61, %v7064_v12  ;;  %v3603_v27 = vadd.f32 %v7139_v22, %v7074_v13 }
 0xb54   : > { %v7293_v41 = vmul.f32 %v3559_v7, %v7221_v18  ;;  %v3531_v14 = vmul.f32 0.044715, %v7267_v1  ;;  %5552 = vtanh.f32 %v3629_v63  ;;  %v3692_v29 = vadd.f32 1.0, %v7180_v23 }
 0xb55   : > { %5554 = vtanh.f32 %v3633_v50  ;;  %v3631_v44 = vmul.f32 0.7978846, %v3599_v51  ;;  %v3635_v59 = vmul.f32 0.7978846, %v3603_v27  ;;  %v3696_v8 = vadd.f32 1.0, %v5549_v2 }
 0xb56   : > { %v7298_v26 = vmul.f32 %v3560_v9, %v7224_v5  ;;  %v7301_v61 = vmul.f32 0.5, %v7064_v12  ;;  %v3694_v39 = vadd.f32 1.0, %v5547_v45  ;;  %v3698_v22 = vadd.f32 1.0, %v5551_v42 }
 0xb57   : > { %5556 = vtanh.f32 %v3631_v44  ;;  %v7304_v7 = vmul.f32 %v3692_v29, %v7085_v33  ;;  %v7307_v63 = vmul.f32 %v3696_v8, %v7090_v4  ;;  %v3605_v23 = vadd.f32 %v7155_v15, %v7097_v40  ;;  %v7651_v29 = vld [vmem:[#allocation41_spill] sm:$0xff]  ;;  %v7653_v8 = vld [vmem:[#allocation40_spill] sm:$0xff] }
 0xb58   : > { %5558 = vtanh.f32 %v3635_v59  ;;  %v7312_v2 = vmul.f32 %v3694_v39, %v7087_v21  ;;  %v7315_v9 = vmul.f32 %v3698_v22, %v7092_v10  ;;  %v3609_v12 = vadd.f32 %v7201_v28, %v7124_v25  ;;  %v7652_v44 = vld [vmem:[#allocation45_spill] sm:$0xff]  ;;  %v7654_v22 = vld [vmem:[#allocation44_spill] sm:$0xff] }
 0xb59   : > { %v3561_v45 = vmul.f32 %v3529_v31, %v7260_v30  ;;  %v3563_v33 = vmul.f32 %v3531_v14, %v7267_v1  ;;  %v3756_v4 = vpack.c.bf16 %v7307_v63, %v7304_v7  ;;  %v3637_v42 = vmul.f32 0.7978846, %v3605_v23  ;;  %v7650_v31 = vld [vmem:[#allocation43_spill] sm:$0xff] }
 0xb5a   : > { %v3758_v15 = vpack.c.bf16 %v7315_v9, %v7312_v2  ;;  %v3641_v50 = vmul.f32 0.7978846, %v3609_v12  ;;  %v3607_v39 = vadd.f32 %v7167_v54, %v7109_v47  ;;  %v3611_v21 = vadd.f32 %v7207_v43, %v7127_v53  ;;  %v7655_v12 = vld [vmem:[#allocation42_spill] sm:$0xff] }
 0xb5b   : > { %v7330_v10 = vmul.f32 %v3562_v20, %v7234_v58  ;;  %v3475_v28 = vmul.f32 0.5, %v7074_v13  ;;  %5560 = vtanh.f32 %v3637_v42  ;;  %v3604_v51 = vadd.f32 %v7650_v31, %v7080_v11  ;;  %v7656_v42 = vld [vmem:[#allocation46_spill] sm:$0xff] }
 0xb5c   : > { %5562 = vtanh.f32 %v3641_v50  ;;  %v3639_v27 = vmul.f32 0.7978846, %v3607_v39  ;;  %v3643_v14 = vmul.f32 0.7978846, %v3611_v21  ;;  %v3608_v59 = vadd.f32 %v7652_v44, %v7651_v29 }
 0xb5d   : > { %v7338_v54 = vmul.f32 %v3561_v45, %v7260_v30  ;;  %v7341_v43 = vmul.f32 %v3563_v33, %v7267_v1  ;;  %v3636_v20 = vmul.f32 0.7978846, %v3604_v51  ;;  %v3606_v13 = vadd.f32 %v7654_v22, %v7653_v8 }
 0xb5e   : > { %v5553_v7 = vpop.eup %5552  ;;  %v3477_v63 = vmul.f32 0.5, %v7097_v40  ;;  %5564 = vtanh.f32 %v3639_v27  ;;  %v3640_v23 = vmul.f32 0.7978846, %v3608_v59  ;;  %v3610_v50 = vadd.f32 %v7656_v42, %v7655_v12 }
 0xb5f   : > { %v5555_v39 = vpop.eup %5554  ;;  %v3693_v21 = vadd.f32 1.0, %v5553_v7  ;;  %v3481_v45 = vmul.f32 0.5, %v7124_v25  ;;  %5566 = vtanh.f32 %v3643_v14  ;;  %v3638_v31 = vmul.f32 0.7978846, %v3606_v13 }
 0xb60   : > { %v3697_v33 = vadd.f32 1.0, %v5555_v39  ;;  %5568 = vtanh.f32 %v3636_v20  ;;  %v3642_v51 = vmul.f32 0.7978846, %v3610_v50  ;;  %v3613_v44 = vadd.f32 %v7237_v17, %v7149_v57 }
 0xb61   : > { %v5557_v22 = vpop.eup %5556  ;;  %v3725_v40 = vmul.f32 %v3693_v21, %v7278_v6  ;;  %v3479_v27 = vmul.f32 0.5, %v7109_v47  ;;  %5570 = vtanh.f32 %v3640_v23  ;;  %v3617_v59 = vadd.f32 %v7254_v55, %v7184_v19 }
 0xb62   : > { %v5559_v7 = vpop.eup %5558  ;;  %v3729_v25 = vmul.f32 %v3697_v33, %v7285_v46  ;;  %v3695_v14 = vadd.f32 1.0, %v5557_v22  ;;  %5572 = vtanh.f32 %v3638_v31  ;;  %v3645_v13 = vmul.f32 0.7978846, %v3613_v44 }
 0xb63   : > { %v3699_v20 = vadd.f32 1.0, %v5559_v7  ;;  %v3483_v42 = vmul.f32 0.5, %v7127_v53  ;;  %5574 = vtanh.f32 %v3642_v51  ;;  %v3649_v17 = vmul.f32 0.7978846, %v3617_v59 }
 0xb64   : > { %v3757_v50 = vpack.c.bf16 %v3729_v25, %v3725_v40  ;;  %v3476_v6 = vmul.f32 0.5, %v7080_v11  ;;  %5576 = vtanh.f32 %v3645_v13  ;;  %v3615_v47 = vadd.f32 %v7243_v32, %v7161_v52 }
 0xb65   : > { %v5561_v23 = vpop.eup %5560  ;;  %v3727_v55 = vmul.f32 %v3695_v14, %v7301_v61  ;;  %v3731_v39 = vmul.f32 %v3699_v20, %v3475_v28  ;;  %5578 = vtanh.f32 %v3649_v17  ;;  %v3619_v46 = vadd.f32 %v7257_v36, %v7187_v34 }
 0xb66   : > { %v5563_v21 = vpop.eup %5562  ;;  %4067 = vmatprep.mubr.bf16.mxu0 %v3757_v50  ;;  %v3701_v53 = vadd.f32 1.0, %v5561_v23  ;;  %v3480_v31 = vmul.f32 0.5, %v7651_v29  ;;  %v3647_v33 = vmul.f32 0.7978846, %v3615_v47  ;;  %v3612_v11 = vadd.f32 %v7227_v38, %v7133_v16 }
 0xb67   : > { %v3759_v51 = vpack.c.bf16 %v3731_v39, %v3727_v55  ;;  %4068 = vmatmul.mubr.bf16.vlgmr.msra.gmra.mrb[84].mxu0 %v3756_v4  ;;  %v3705_v32 = vadd.f32 1.0, %v5563_v21  ;;  %v3651_v44 = vmul.f32 0.7978846, %v3619_v46  ;;  %v3616_v61 = vadd.f32 %v7246_v49, %v7164_v56 }
 0xb68   : > { %v5565_v28 = vpop.eup %5564  ;;  %v3733_v22 = vmul.f32 %v3701_v53, %v3477_v63  ;;  %v3478_v36 = vmul.f32 0.5, %v7653_v8  ;;  %5580 = vtanh.f32 %v3647_v33  ;;  %v3644_v40 = vmul.f32 0.7978846, %v3612_v11 }
 0xb69   : > { %v5567_v59 = vpop.eup %5566  ;;  %4132 = vmatprep.mubr.bf16.mxu1 %v3759_v51  ;;  %v3737_v29 = vmul.f32 %v3705_v32, %v3481_v45  ;;  %v3703_v7 = vadd.f32 1.0, %v5565_v28  ;;  %5582 = vtanh.f32 %v3651_v44  ;;  %v3648_v25 = vmul.f32 0.7978846, %v3616_v61 }
 0xb6a   : > { %v5569_v38 = vpop.eup %5568  ;;  %4133 = vmatmul.mubr.bf16.vlgmr.msra.gmra.mrb[84].mxu1 %v3758_v15  ;;  %v3707_v4 = vadd.f32 1.0, %v5567_v59  ;;  %v3482_v49 = vmul.f32 0.5, %v7655_v12  ;;  %5584 = vtanh.f32 %v3644_v40  ;;  %v3614_v8 = vadd.f32 %v7230_v24, %v7136_v0 }
 0xb6b   : > { %v5571_v63 = vpop.eup %5570  ;;  %v3761_v14 = vpack.c.bf16 %v3737_v29, %v3733_v22  ;;  %v3735_v13 = vmul.f32 %v3703_v7, %v3479_v27  ;;  %v3700_v20 = vadd.f32 1.0, %v5569_v38  ;;  %5586 = vtanh.f32 %v3648_v25 }
 0xb6c   : > { %v5573_v45 = vpop.eup %5572  ;;  %v3739_v17 = vmul.f32 %v3707_v4, %v3483_v42  ;;  %v3704_v50 = vadd.f32 1.0, %v5571_v63  ;;  %v3618_v47 = vadd.f32 %v7251_v48, %v7172_v60  ;;  %v3646_v2 = vmul.f32 0.7978846, %v3614_v8 }
 0xb6d   : > { %v5575_v9 = vpop.eup %5574  ;;  %4075 = vmatprep.mubr.bf16.mxu0 %v3761_v14  ;;  %v3732_v15 = vmul.f32 %v3700_v20, %v3476_v6  ;;  %v3702_v12 = vadd.f32 1.0, %v5573_v45  ;;  %v3485_v23 = vmul.f32 0.5, %v7149_v57  ;;  %v3489_v24 = vmul.f32 0.5, %v7184_v19 }
 0xb6e   : > { %v5577_v55 = vpop.eup %5576  ;;  %v3763_v39 = vpack.c.bf16 %v3739_v17, %v3735_v13  ;;  %v3736_v27 = vmul.f32 %v3704_v50, %v3480_v31  ;;  %v3706_v46 = vadd.f32 1.0, %v5575_v9  ;;  %v3650_v21 = vmul.f32 0.7978846, %v3618_v47  ;;  %v7657_v47 = vld [vmem:[#allocation47_spill] sm:$0xff] }
 0xb6f   : > { %v5579_v53 = vpop.eup %5578  ;;  %v3734_v42 = vmul.f32 %v3702_v12, %v3478_v36  ;;  %v3709_v33 = vadd.f32 1.0, %v5577_v55  ;;  %5588 = vtanh.f32 %v3646_v2  ;;  %v3621_v48 = vadd.f32 %v7275_v35, %v7212_v62  ;;  %v7658_v2 = vld [vmem:[#allocation48_spill] sm:$0xff] }
 0xb70   : > { %4140 = vmatprep.mubr.bf16.mxu1 %v3763_v39  ;;  %v3760_v11 = vpack.c.bf16 %v3736_v27, %v3732_v15  ;;  %v3738_v6 = vmul.f32 %v3706_v46, %v3482_v49  ;;  %v3713_v51 = vadd.f32 1.0, %v5579_v53  ;;  %5590 = vtanh.f32 %v3650_v21 }
 0xb71   : > { %v3487_v57 = vmul.f32 0.5, %v7161_v52  ;;  %v3491_v19 = vmul.f32 0.5, %v7187_v34  ;;  %v3625_v31 = vadd.f32 %v7338_v54, %v7260_v30  ;;  %v3653_v32 = vmul.f32 0.7978846, %v3621_v48 }
 0xb72   : > { %v5581_v44 = vpop.eup %5580  ;;  %4076 = vmatmul.mubr.bf16.gmra.mrb[88].mxu0 %v3760_v11  ;;  %v3762_v61 = vpack.c.bf16 %v3738_v6, %v3734_v42  ;;  %v3741_v28 = vmul.f32 %v3709_v33, %v3485_v23  ;;  %v3745_v22 = vmul.f32 %v3713_v51, %v3489_v24  ;;  %v3623_v35 = vadd.f32 %v7293_v41, %v7221_v18 }
 0xb73   : > { %v5583_v36 = vpop.eup %5582  ;;  %v3711_v40 = vadd.f32 1.0, %v5581_v44  ;;  %v3657_v59 = vmul.f32 0.7978846, %v3625_v31  ;;  %5592 = vtanh.f32 %v3653_v32  ;;  %v3627_v52 = vadd.f32 %v7341_v43, %v7267_v1 }
 0xb74   : > { %v5585_v34 = vpop.eup %5584  ;;  %4141 = vmatmul.mubr.bf16.gmra.mrb[88].mxu1 %v3762_v61  ;;  %v3765_v29 = vpack.c.bf16 %v3745_v22, %v3741_v28  ;;  %v3715_v54 = vadd.f32 1.0, %v5583_v36  ;;  %v3484_v7 = vmul.f32 0.5, %v7133_v16  ;;  %v3655_v25 = vmul.f32 0.7978846, %v3623_v35 }
 0xb75   : > { %v5587_v38 = vpop.eup %5586  ;;  %v3488_v4 = vmul.f32 0.5, %v7164_v56  ;;  %v3708_v49 = vadd.f32 1.0, %v5585_v34  ;;  %5594 = vtanh.f32 %v3657_v59  ;;  %v3659_v41 = vmul.f32 0.7978846, %v3627_v52 }
 0xb76   : > { %4083 = vmatprep.mubr.bf16.mxu0 %v3765_v29  ;;  %v3743_v8 = vmul.f32 %v3711_v40, %v3487_v57  ;;  %v3747_v63 = vmul.f32 %v3715_v54, %v3491_v19  ;;  %v3712_v14 = vadd.f32 1.0, %v5587_v38  ;;  %5596 = vtanh.f32 %v3655_v25 }
 0xb77   : > { %5598 = vtanh.f32 %v3659_v41  ;;  %v3620_v43 = vadd.f32 %v7263_v3, %v7190_v37  ;;  %v3624_v13 = vadd.f32 %v7298_v26, %v7224_v5  ;;  %v3740_v20 = vmul.f32 %v3708_v49, %v3484_v7 }
 0xb78   : > { %v3767_v16 = vpack.c.bf16 %v3747_v63, %v3743_v8  ;;  %v3744_v45 = vmul.f32 %v3712_v14, %v3488_v4  ;;  %v3622_v9 = vadd.f32 %v7658_v2, %v7657_v47  ;;  %v3626_v15 = vadd.f32 %v7330_v10, %v7234_v58 }
 0xb79   : > { %v5589_v17 = vpop.eup %5588  ;;  %v3652_v56 = vmul.f32 0.7978846, %v3620_v43  ;;  %v3656_v50 = vmul.f32 0.7978846, %v3624_v13  ;;  %v3486_v3 = vmul.f32 0.5, %v7136_v0  ;;  %v3490_v24 = vmul.f32 0.5, %v7172_v60 }
 0xb7a   : > { %v5591_v12 = vpop.eup %5590  ;;  %4148 = vmatprep.mubr.bf16.mxu1 %v3767_v16  ;;  %v3764_v23 = vpack.c.bf16 %v3744_v45, %v3740_v20  ;;  %v3710_v26 = vadd.f32 1.0, %v5589_v17  ;;  %v3654_v39 = vmul.f32 0.7978846, %v3622_v9  ;;  %v3658_v27 = vmul.f32 0.7978846, %v3626_v15  ;;  %v7660_v15 = vld [vmem:[#allocation32_spill] sm:$0xff] }
 0xb7b   : > { %v3714_v55 = vadd.f32 1.0, %v5591_v12  ;;  %5600 = vtanh.f32 %v3652_v56  ;;  %v3493_v0 = vmul.f32 0.5, %v7212_v62  ;;  %v3497_v60 = vmul.f32 0.5, %v7260_v30 }
 0xb7c   : > { %4084 = vmatmul.mubr.bf16.gmra.mrb[92].mxu0 %v3764_v23  ;;  %5602 = vtanh.f32 %v3656_v50  ;;  %v3742_v21 = vmul.f32 %v3710_v26, %v3486_v3  ;;  %v3495_v51 = vmul.f32 0.5, %v7221_v18  ;;  %v3499_v32 = vmul.f32 0.5, %v7267_v1  ;;  %v7661_v3 = vld [vmem:[#allocation33_spill] sm:$0xff] }
 0xb7d   : > { %v5593_v46 = vpop.eup %5592  ;;  %v3746_v53 = vmul.f32 %v3714_v55, %v3490_v24  ;;  %5604 = vtanh.f32 %v3654_v39  ;;  %v3492_v59 = vmul.f32 0.5, %v7190_v37  ;;  %v3496_v52 = vmul.f32 0.5, %v7224_v5  ;;  %v7414_v5 = vld [vmem:[%s775_s25] ss:$0 sm:$0xff]  ;;  %s7670_s25 = sld [smem:[#allocation61_spill]] }
 0xb7e   : > { %v3717_v42 = vadd.f32 1.0, %v5593_v46  ;;  %5606 = vtanh.f32 %v3658_v27  ;;  %v3494_v1 = vmul.f32 0.5, %v7657_v47  ;;  %v3498_v25 = vmul.f32 0.5, %v7234_v58 }
 0xb7f   : > { %v5595_v10 = vpop.eup %5594  ;;  %v3766_v33 = vpack.c.bf16 %v3746_v53, %v3742_v21 }
 0xb80   : > { %v5597_v48 = vpop.eup %5596  ;;  %v3721_v11 = vadd.f32 1.0, %v5595_v10  ;;  %v3749_v19 = vmul.f32 %v3717_v42, %v3493_v0 }
 0xb81   : > { %v5599_v6 = vpop.eup %5598  ;;  %4149 = vmatmul.mubr.bf16.gmra.mrb[92].mxu1 %v3766_v33  ;;  %v3719_v57 = vadd.f32 1.0, %v5597_v48 }
 0xb82   : > { %v3753_v31 = vmul.f32 %v3721_v11, %v3497_v60  ;;  %v3723_v44 = vadd.f32 1.0, %v5599_v6 }
 0xb83   : > { %v3751_v28 = vmul.f32 %v3719_v57, %v3495_v51  ;;  %v7662_v51 = vld [vmem:[#allocation34_spill] sm:$0xff]  ;;  %s7442_s0 = scalar_lea.hbm %s7670_s25, %s4635_s23 }
 0xb84   : > { %v3769_v61 = vpack.c.bf16 %v3753_v31, %v3749_v19  ;;  %v3755_v22 = vmul.f32 %v3723_v44, %v3499_v32  ;;  %v7663_v31 = vld [vmem:[#allocation35_spill] sm:$0xff] }
 0xb85   : > { %v5601_v35 = vpop.eup %5600 }
 0xb86   : > { %v5603_v36 = vpop.eup %5602  ;;  %4091 = vmatprep.mubr.bf16.mxu0 %v3769_v61  ;;  %v3771_v62 = vpack.c.bf16 %v3755_v22, %v3751_v28  ;;  %v3716_v40 = vadd.f32 1.0, %v5601_v35 }
 0xb87   : > { %v5605_v30 = vpop.eup %5604  ;;  %v3720_v18 = vadd.f32 1.0, %v5603_v36 }
 0xb88   : > { %v5607_v34 = vpop.eup %5606  ;;  %4156 = vmatprep.mubr.bf16.mxu1 %v3771_v62  ;;  %v3718_v29 = vadd.f32 1.0, %v5605_v30  ;;  %v3748_v54 = vmul.f32 %v3716_v40, %v3492_v59 }
 0xb89   : > { %v3752_v7 = vmul.f32 %v3720_v18, %v3496_v52  ;;  %v3722_v38 = vadd.f32 1.0, %v5607_v34 }
 0xb8a   : > { %v3750_v49 = vmul.f32 %v3718_v29, %v3494_v1 }
 0xb8b   : > { %v3768_v4 = vpack.c.bf16 %v3752_v7, %v3748_v54  ;;  %v3754_v41 = vmul.f32 %v3722_v38, %v3498_v25  ;;  %v7664_v54 = vld [vmem:[#allocation36_spill] sm:$0xff]  ;;  %v7665_v38 = vld [vmem:[#allocation37_spill] sm:$0xff] }
 0xb8d   : > { %4092 = vmatmul.mubr.bf16.gmra.mrb[96].mxu0 %v3768_v4  ;;  %v3770_v8 = vpack.c.bf16 %v3754_v41, %v3750_v49 }
 0xb8f   : > { %4157 = vmatmul.mubr.bf16.gmra.mrb[96].mxu1 %v3770_v8 }
 0xc3a   : > { %v4768_v37 = vpop.f32.mrb[84].mxu0 }
 0xc3b   : > { %v4769_v63 = vpop.f32.mrb[85].mxu0 }
 0xc3c   : > { %v4770_v14 = vadd.f32 %v4769_v63, %v4768_v37  ;;  %v4771_v43 = vpop.f32.mrb[86].mxu0 }
 0xc3d   : > { %v4808_v13 = vpop.f32.mrb[84].mxu1  ;;  %v4772_v58 = vpop.f32.mrb[87].mxu0 }
 0xc3e   : > { %v4070_v16 = vadd.f32 %v4770_v14, %v7414_v5  ;;  %v4809_v20 = vpop.f32.mrb[85].mxu1  ;;  %v4773_v45 = vadd.f32 %v4772_v58, %v4771_v43 }
 0xc3f   : > { %v4810_v17 = vadd.f32 %v4809_v20, %v4808_v13  ;;  %v4811_v56 = vpop.f32.mrb[86].mxu1 }
 0xc40   : > { %v4073_v50 = vadd.f32 %v4773_v45, %v7414_v5  ;;  %v4812_v47 = vpop.f32.mrb[87].mxu1 }
 0xc41   : > { %v4135_v2 = vadd.f32 %v4810_v17, %v4070_v16  ;;  %v4813_v9 = vadd.f32 %v4812_v47, %v4811_v56  ;;  %v7669_v47 = vld [vmem:[#allocation38_spill] sm:$0xff] }
 0xc43   : > { %v4165_v12 = vadd.f32 %v4135_v2, %v7660_v15  ;;  %v4138_v23 = vadd.f32 %v4813_v9, %v4073_v50  ;;  %v7671_v15 = vld [vmem:[#allocation39_spill] sm:$0xff] }
 0xc45   : > { %4173 = vst [vmem:[%s6304_s26] sm:$0xff] %v4165_v12  ;;  %v4166_v24 = vadd.f32 %v4138_v23, %v7661_v3  ;;  %v4774_v26 = vpop.f32.mrb[88].mxu0 }
 0xc46   : > { %v4775_v55 = vpop.f32.mrb[89].mxu0 }
 0xc47   : > { %4174 = vst [vmem:[%s6304_s26 + $0x8] sm:$0xff] %v4166_v24  ;;  %v4814_v39 = vpop.f32.mrb[88].mxu1  ;;  %v4776_v27 = vadd.f32 %v4775_v55, %v4774_v26  ;;  %v4777_v46 = vpop.f32.mrb[90].mxu0 }
 0xc48   : > { %v4815_v21 = vpop.f32.mrb[89].mxu1  ;;  %v4778_v53 = vpop.f32.mrb[91].mxu0 }
 0xc49   : > { %v4078_v42 = vadd.f32 %v4776_v27, %v7414_v5  ;;  %v4816_v10 = vadd.f32 %v4815_v21, %v4814_v39  ;;  %v4817_v33 = vpop.f32.mrb[90].mxu1  ;;  %v4779_v48 = vadd.f32 %v4778_v53, %v4777_v46 }
 0xc4a   : > { %v4818_v0 = vpop.f32.mrb[91].mxu1 }
 0xc4b   : > { %v4143_v60 = vadd.f32 %v4816_v10, %v4078_v42  ;;  %v4081_v11 = vadd.f32 %v4779_v48, %v7414_v5  ;;  %v4819_v6 = vadd.f32 %v4818_v0, %v4817_v33 }
 0xc4d   : > { %v4167_v57 = vadd.f32 %v4143_v60, %v7662_v51  ;;  %v4146_v19 = vadd.f32 %v4819_v6, %v4081_v11 }
 0xc4f   : > { %4175 = vst [vmem:[%s6304_s26 + $0x10] sm:$0xff] %v4167_v57  ;;  %v4168_v32 = vadd.f32 %v4146_v19, %v7663_v31  ;;  %v4780_v44 = vpop.f32.mrb[92].mxu0 }
 0xc50   : > { %v4781_v61 = vpop.f32.mrb[93].mxu0 }
 0xc51   : > { %4176 = vst [vmem:[%s6304_s26 + $0x18] sm:$0xff] %v4168_v32  ;;  %v4782_v28 = vadd.f32 %v4781_v61, %v4780_v44  ;;  %v4783_v22 = vpop.f32.mrb[94].mxu0 }
 0xc52   : > { %v4784_v35 = vpop.f32.mrb[95].mxu0 }
 0xc53   : > { %v4785_v36 = vadd.f32 %v4784_v35, %v4783_v22  ;;  %v4086_v40 = vadd.f32 %v4782_v28, %v7414_v5 }
 0xc54   : > { %v4820_v62 = vpop.f32.mrb[92].mxu1 }
 0xc55   : > { %v4821_v30 = vpop.f32.mrb[93].mxu1  ;;  %v4089_v18 = vadd.f32 %v4785_v36, %v7414_v5 }
 0xc56   : > { %v4822_v59 = vadd.f32 %v4821_v30, %v4820_v62  ;;  %v4823_v52 = vpop.f32.mrb[94].mxu1 }
 0xc57   : > { %v4824_v34 = vpop.f32.mrb[95].mxu1 }
 0xc58   : > { %v4151_v1 = vadd.f32 %v4822_v59, %v4086_v40  ;;  %v4825_v29 = vadd.f32 %v4824_v34, %v4823_v52 }
 0xc5a   : > { %v4169_v7 = vadd.f32 %v4151_v1, %v7664_v54  ;;  %v4154_v25 = vadd.f32 %v4825_v29, %v4089_v18 }
 0xc5c   : > { %4177 = vst [vmem:[%s6304_s26 + $0x20] sm:$0xff] %v4169_v7  ;;  %v4170_v4 = vadd.f32 %v4154_v25, %v7665_v38 }
 0xc5e   : > { %4178 = vst [vmem:[%s6304_s26 + $0x28] sm:$0xff] %v4170_v4 }
 0xc60   : > { %v4786_v49 = vpop.f32.mrb[96].mxu0 }
 0xc61   : > { %v4787_v41 = vpop.f32.mrb[97].mxu0 }
 0xc62   : > { %v4826_v8 = vpop.f32.mrb[96].mxu1  ;;  %v4788_v37 = vadd.f32 %v4787_v41, %v4786_v49  ;;  %v4789_v63 = vpop.f32.mrb[98].mxu0 }
 0xc63   : > { %v4827_v14 = vpop.f32.mrb[97].mxu1  ;;  %v4790_v43 = vpop.f32.mrb[99].mxu0 }
 0xc64   : > { %v4094_v13 = vadd.f32 %v4788_v37, %v7414_v5  ;;  %v4828_v58 = vadd.f32 %v4827_v14, %v4826_v8  ;;  %v4829_v16 = vpop.f32.mrb[98].mxu1  ;;  %v4791_v20 = vadd.f32 %v4790_v43, %v4789_v63 }
 0xc65   : > { %v4830_v45 = vpop.f32.mrb[99].mxu1 }
 0xc66   : > { %v4159_v17 = vadd.f32 %v4828_v58, %v4094_v13  ;;  %v4097_v56 = vadd.f32 %v4791_v20, %v7414_v5  ;;  %v4831_v50 = vadd.f32 %v4830_v45, %v4829_v16 }
 0xc68   : > { %v4171_v2 = vadd.f32 %v4159_v17, %v7669_v47  ;;  %v4162_v9 = vadd.f32 %v4831_v50, %v4097_v56 }
 0xc6a   : > { %4179 = vst [vmem:[%s6304_s26 + $0x30] sm:$0xff] %v4171_v2  ;;  %v4172_v12 = vadd.f32 %v4162_v9, %v7671_v15 }
 0xc6c   : > { %4180 = vst [vmem:[%s6304_s26 + $0x38] sm:$0xff] %v4172_v12 }
 0xc6d   : > { %5749 = shalt.err (!%p5746_p12)
}
 0xc6e   : > { %s5750_s26 = scalar_lea.hbm %s7442_s0, 1024  ;;  %s5754_s24 = scalar_lea.hbm %s7670_s25, 2048 }
 0xc6f   : > { %p5751_p3 = scmp.ne.s32.totalorder %s7442_s0, %s5750_s26  ;;  %p5755_p4 = scmp.lt.u32.totalorder %s7442_s0, %s7670_s25 }
 0xc70   : > { %p5756_p9 = scmp.lt.u32.totalorder %s5754_s24, %s5750_s26  ;;  %p5758_p1 = scmp.lt.u32.totalorder %s5750_s26, %s7442_s0 }
 0xc71   : > { %p5752_p6 = pnand %p5751_p3, %p7673_p2 }
 0xc72   : > { %p5757_p0 = por %p5756_p9, %p5755_p4 }
 0xc73   : > { %p5753_p8 = pneg %p5752_p6 }
 0xc74   : > { %p5759_p13 = por %p5758_p1, %p5757_p0 }
 0xc76   : > { %p5760_p7 = pnand %p5759_p13, %p5753_p8 }
 0xc78   : > { %5763 = shalt.err (!%p5760_p7)
}
 0xc79   : > { %s5878_s3 = smov 128   ;;  %s5879_s11 = smov 8  }
 0xc7a   : > { %5099 = dma.vmem_to_hbm [thread:$0]  (%p7673_p2), %s7444_s12, 1024, %s7442_s0, %s7451_s19, %s5878_s3, %s5878_s3, %s5879_s11  }
 0xc7b PF: > { %s7674_s27 = sld [smem:[#allocation23_spill]]  ;;  %s7675_s8 = sld [smem:[#allocation15_spill]] }
 0xc7c   : > { %s7676_s20 = sld [smem:[#allocation29_spill]] }
 0xc81   : > { %p5119_p10 = scmp.ge.s32.totalorder %s7674_s27, 2  ;;  %s4210_s6 = sand.u32 1, %s7675_s8  }
 0xc82   : > { %p7677_p5 = scmp.ne.s32.totalorder %s7676_s20, 0  ;;  %s4211_s16 = scalar_lea.sflag [#allocation4], %s4210_s6 }
 0xc84   : > { %p5115_p11 = pnand %p5119_p10, %p7677_p5 }
 0xc86   : > { %5821 = dma.done.wait (!%p5115_p11), %s4211_s16, 1024  }
 0xc87   : > { %5823 = vsyncadd (!%p5115_p11), %s4211_s16, 4294966272  ;;  %s36_s23 = sadd.s32 1, %s7674_s27   ;;  %s7678_s29 = sld [smem:[#allocation16_spill]] }
 0xc88   : > { %p33_p12 = scmp.ge.s32.totalorder %s36_s23, 6   ;;  %s7679_s30 = sld [smem:[#allocation17_spill]] }
 0xc89   : > { %s7680_s15 = sld [smem:[#allocation27_spill]]  ;;  %s7681_s16 = sld [smem:[#allocation18_spill]] }
 0xc8a   : > { %s7682_s17 = sld [smem:[#allocation19_spill]]  ;;  %s7683_s18 = sld [smem:[#allocation26_spill]] }
 0xc8b   : > { %s7684_s19 = sld [smem:[#allocation21_spill]]  ;;  %s7685_s20 = sld [smem:[#allocation22_spill]] }
 0xc8c   : > { %s7686_s21 = sld [smem:[#allocation24_spill]]  ;;  %s7687_s22 = sld [smem:[#allocation25_spill]] }
 0xc8d   :  { %35 = sbr.rel (!%p33_p12) target bundleno = 27 (0x1b), region = 192 }
 0xc94   :  { %4216 = vsyncpa [#allocation3], 1 }
 0xc95   :  { %4218 = vsyncpa [#allocation3 + $0x1], 1 }
 0xc96   :  { %4219 = vsyncpa [#allocation6], 1 }
 0xc97   :  { %4221 = vsyncpa [#allocation6 + $0x1], 1 }
 0xc98   :  { %4222 = vsyncpa [#allocation9], 1 }
 0xc99   :  { %4224 = vsyncpa [#allocation9 + $0x1], 1 }
 0xc9a   :  { %4225 = vsyncpa [#allocation4], 1 }
 0xc9b   :  { %4227 = vsyncpa [#allocation4 + $0x1], 1 }

</bundles_post_ra>
